<compile_context>
chip_gen: v7x
topology: tpu7x:2x2x1
jax: 0.10.0
libtpu: 0.0.40
codegen_flags: <defaults>
</compile_context>

<pallas_src>
import jax
import jax.numpy as jnp
from jax.experimental import pallas as pl
from jax.experimental.pallas import tpu as pltpu

BN_EPS = 1e-5              # PyTorch BatchNorm1d default eps
SOFTMAX_LOG_EPS = 1e-12    # only used by the PyTorch-style reference diagnostics
RENORM_EPS = 1e-9
NUM_SA_LAYERS = 4
VMEM_LIMIT_BYTES = 56 * 1024 * 1024   # explicit scoped-VMEM ceiling (< 64 MiB v7x)


def _vmem():
    return pl.BlockSpec(memory_space=pltpu.MemorySpace.VMEM)


def _smem():
    return pl.BlockSpec(memory_space=pltpu.MemorySpace.SMEM)


def _batchnorm_train(x, gamma, beta):
    """Training-mode BatchNorm1d on channels-last (B, N, C): stats over (B, N)."""
    mean = jnp.mean(x, axis=(0, 1), keepdims=True)
    var = jnp.mean((x - mean) ** 2, axis=(0, 1), keepdims=True)  # biased variance
    return gamma * (x - mean) * jax.lax.rsqrt(var + BN_EPS) + beta


# ----------------------------------------------------------------------------
# Single fused kernel: pos_xyz + conv1/bn1/relu + cdist + 4x SA_Layer + concat
# ----------------------------------------------------------------------------
def pct_fused_kernel(x_ref, xyz_ref,
                     w1_ref, g1_ref, b1_ref, wpos_ref, bpos_ref,
                     wqkv_ref, wt_ref, g_ref, b_ref,
                     out_ref, dist_ref, ent_ref):
    B, C, N = x_ref.shape
    # Module-native channels-first input -> channels-last working layout.
    # The transpose happens in VMEM (XLU); no wrapper-side HBM round-trip.
    x = jnp.transpose(x_ref[...], (0, 2, 1))          # (B, N, C) f32
    xyz = xyz_ref[...]                                 # (B, N, 3) f32

    # ---- pos_xyz: Conv1d(3, C, 1) + bias as 3 VPU multiply-adds (K=3 is far
    # too small to be worth an MXU push/drain).
    wpos = wpos_ref[...]                               # (3, C)
    xyz_emb = bpos_ref[...].reshape(1, 1, C)
    for k3 in range(3):
        xyz_emb = xyz_emb + xyz[:, :, k3:k3 + 1] * wpos[k3].reshape(1, 1, C)
    # xyz_emb: (B, N, C) f32

    # ---- conv1 (no bias) -> bn1 (batch statistics) -> relu.  bf16 MXU matmul.
    h = jnp.dot(x.reshape(B * N, C).astype(jnp.bfloat16),
                w1_ref[...].astype(jnp.bfloat16),
                preferred_element_type=jnp.float32).reshape(B, N, C)
    xi = jnp.maximum(_batchnorm_train(h, g1_ref[...], b1_ref[...]), 0.0)

    # ---- torch.cdist(xyz_emb, xyz_emb, p=2).  f32 gram (avoids bf16
    # cancellation for near-duplicate points); D is diagnostic-only, so it is
    # kept in bf16 to halve its VMEM footprint.
    gram = jnp.einsum('bnc,bmc->bnm', xyz_emb, xyz_emb,
                      preferred_element_type=jnp.float32)          # (B, N, N)
    sq = jnp.sum(xyz_emb * xyz_emb, axis=-1, keepdims=True)        # (B, N, 1)
    d2 = sq + jnp.swapaxes(sq, -1, -2) - 2.0 * gram
    D16 = jnp.sqrt(jnp.maximum(d2, 0.0)).astype(jnp.bfloat16)      # (B, N, N)

    outs = []
    for l in range(NUM_SA_LAYERS):
        x_in = xi + xyz_emb                                        # x = x + xyz

        # fused q|k|v projection: one (B*N, C) x (C, 3C) bf16 MXU matmul
        qkv = jnp.dot(x_in.reshape(B * N, C).astype(jnp.bfloat16),
                      wqkv_ref[l].astype(jnp.bfloat16),
                      preferred_element_type=jnp.float32).reshape(B, N, 3 * C)
        q = qkv[:, :, 0:C].astype(jnp.bfloat16)
        k = qkv[:, :, C:2 * C].astype(jnp.bfloat16)
        v = qkv[:, :, 2 * C:3 * C].astype(jnp.bfloat16)

        # energy (num_heads = 1)
        energy = jnp.einsum('bne,bme->bnm', q, k,
                            preferred_element_type=jnp.float32)    # (B, N, N)

        # softmax + diagnostics + renorm, all derived from (p, Z):
        #   - exact per-row denominators (no approx reciprocal)
        #   - entropy via log(Z) - sum(p*s)/Z : one log per row
        #   - the dim=-1 renormalization of the reference folds into a single
        #     per-row scale applied after attn@v (row scaling commutes with
        #     the matmul), so no attention matrix is ever materialized.
        m = jnp.max(energy, axis=-1, keepdims=True)
        s = energy - m
        p = jnp.exp(s)                                             # (B, N, N)
        z = jnp.sum(p, axis=-1, keepdims=True)                     # (B, N, 1)
        inv_z = 1.0 / z

        # diagnostics (torch.no_grad block); D and p are VMEM-resident.
        dist_ref[l] = jnp.mean(
            jnp.sum(p * D16, axis=-1, keepdims=True) * inv_z)
        ent_ref[l] = jnp.mean(
            jnp.log(z) - jnp.sum(p * s, axis=-1, keepdims=True) * inv_z)

        # attention = softmax / (1e-9 + sum(softmax))  ->  p * scale
        scale = inv_z / (RENORM_EPS + z * inv_z)                   # (B, N, 1)
        x_r = jnp.einsum('bnm,bme->bne', p.astype(jnp.bfloat16), v,
                         preferred_element_type=jnp.float32) * scale

        # trans_conv -> batchnorm (batch stats) -> relu, then residual.
        # NOTE: trans_conv's bias is dropped: training-mode BN subtracts the
        # per-channel batch mean, which cancels a constant bias exactly.
        h = jnp.dot((x_in - x_r).reshape(B * N, C).astype(jnp.bfloat16),
                    wt_ref[l].astype(jnp.bfloat16),
                    preferred_element_type=jnp.float32).reshape(B, N, C)
        h = _batchnorm_train(h, g_ref[l], b_ref[l])
        xi = x_in + jnp.maximum(h, 0.0)
        outs.append(xi)

    # channels-first output written directly (matches torch.cat(..., dim=1));
    # at the module's real channels=256 this (B, 4C, N) slab is lane-dense.
    out_ref[...] = jnp.transpose(jnp.concatenate(outs, axis=-1), (0, 2, 1))


# ----------------------------------------------------------------------------
# Plain-JAX glue (module-native layouts in and out; no wrapper transposes)
# ----------------------------------------------------------------------------
def point_transformer_last_forward(x_bcn, xyz_bn3, params):
    """x_bcn: (B, C, N) as in the PyTorch module; xyz_bn3: (B, N, 3)."""
    B, C, N = x_bcn.shape
    out_shapes = (
        jax.ShapeDtypeStruct((B, 4 * C, N), jnp.float32),
        jax.ShapeDtypeStruct((NUM_SA_LAYERS,), jnp.float32),
        jax.ShapeDtypeStruct((NUM_SA_LAYERS,), jnp.float32),
    )
    x_cat, dists, ents = pl.pallas_call(
        pct_fused_kernel,
        out_shape=out_shapes,
        in_specs=[_vmem()] * 11,
        out_specs=(_vmem(), _smem(), _smem()),
        compiler_params=pltpu.CompilerParams(vmem_limit_bytes=VMEM_LIMIT_BYTES),
    )(x_bcn.astype(jnp.float32), xyz_bn3.astype(jnp.float32),
      params["w_conv1"], params["bn1_gamma"], params["bn1_beta"],
      params["w_pos"], params["b_pos"],
      params["wqkv"], params["wt"],
      params["sa_gamma"], params["sa_beta"])
    return (x_cat,
            [dists[i] for i in range(NUM_SA_LAYERS)],
            [ents[i] for i in range(NUM_SA_LAYERS)])


# ----------------------------------------------------------------------------
# Plain-JAX mirror for verification.
# Main path: exactly the kernel's math (bf16 matmuls / f32 accum, renorm as a
# post-matmul row scale, dead trans_conv bias dropped) -- both are fp-level
# reorderings of the PyTorch ops.  Diagnostics: computed the PyTorch way
# (materialized softmax, log(attn+eps)) as an independent check of the
# kernel's analytic (p, Z) formulation.
# ----------------------------------------------------------------------------
def reference_forward(x_bcn, xyz_bn3, params):
    B, C, N = x_bcn.shape
    f32 = jnp.float32
    x = jnp.transpose(x_bcn, (0, 2, 1)).astype(f32)
    xyz = xyz_bn3.astype(f32)

    def mm(a, w):
        return jnp.dot(a.astype(jnp.bfloat16), w.astype(jnp.bfloat16),
                       preferred_element_type=f32)

    xyz_emb = params["b_pos"].reshape(1, 1, C)
    for k3 in range(3):
        xyz_emb = xyz_emb + xyz[:, :, k3:k3 + 1] * params["w_pos"][k3].reshape(1, 1, C)

    h = mm(x.reshape(B * N, C), params["w_conv1"]).reshape(B, N, C)
    xi = jnp.maximum(_batchnorm_train(h, params["bn1_gamma"], params["bn1_beta"]), 0.0)

    gram = jnp.einsum('bnc,bmc->bnm', xyz_emb, xyz_emb, preferred_element_type=f32)
    sq = jnp.sum(xyz_emb * xyz_emb, axis=-1, keepdims=True)
    D = jnp.sqrt(jnp.maximum(sq + jnp.swapaxes(sq, -1, -2) - 2.0 * gram, 0.0))

    outs, dists, ents = [], [], []
    for l in range(NUM_SA_LAYERS):
        x_in = xi + xyz_emb
        qkv = mm(x_in.reshape(B * N, C), params["wqkv"][l]).reshape(B, N, 3 * C)
        q = qkv[:, :, 0:C].astype(jnp.bfloat16)
        k = qkv[:, :, C:2 * C].astype(jnp.bfloat16)
        v = qkv[:, :, 2 * C:3 * C].astype(jnp.bfloat16)
        energy = jnp.einsum('bne,bme->bnm', q, k, preferred_element_type=f32)

        # PyTorch-style diagnostics (f32 D, explicit softmax, log(attn + eps))
        attn = jax.nn.softmax(energy, axis=-1)
        dists.append(jnp.mean(jnp.sum(attn * D, axis=-1)))
        ents.append(jnp.mean(
            -jnp.sum(attn * jnp.log(attn + SOFTMAX_LOG_EPS), axis=-1)))

        # main path: same formulation as the kernel
        m = jnp.max(energy, axis=-1, keepdims=True)
        p = jnp.exp(energy - m)
        z = jnp.sum(p, axis=-1, keepdims=True)
        inv_z = 1.0 / z
        scale = inv_z / (RENORM_EPS + z * inv_z)
        x_r = jnp.einsum('bnm,bme->bne', p.astype(jnp.bfloat16), v,
                         preferred_element_type=f32) * scale

        h = mm((x_in - x_r).reshape(B * N, C), params["wt"][l]).reshape(B, N, C)
        h = _batchnorm_train(h, params["sa_gamma"][l], params["sa_beta"][l])
        xi = x_in + jnp.maximum(h, 0.0)
        outs.append(xi)

    x_cat = jnp.transpose(jnp.concatenate(outs, axis=-1), (0, 2, 1))
    return x_cat, dists, ents


# ----------------------------------------------------------------------------
# Deterministic parameter initialization (shapes from the module's __init__;
# the demo uses channels == emb_dim == 32, the real module uses 256).
# ----------------------------------------------------------------------------
def init_params(key, channels):
    C = channels

    def conv_weight(k, cin, cout):
        bound = 1.0 / jnp.sqrt(jnp.float32(cin))
        return jax.random.uniform(k, (cin, cout), jnp.float32, -bound, bound)

    def conv_bias(k, cin, cout):
        bound = 1.0 / jnp.sqrt(jnp.float32(cin))
        return jax.random.uniform(k, (1, cout), jnp.float32, -bound, bound)

    keys = jax.random.split(key, 3 + NUM_SA_LAYERS * 5)
    params = {
        "w_conv1": conv_weight(keys[0], C, C),        # conv1 (no bias)
        "bn1_gamma": jnp.ones((1, C), jnp.float32),
        "bn1_beta": jnp.zeros((1, C), jnp.float32),
        "w_pos": conv_weight(keys[1], 3, C),          # pos_xyz weight (3, C)
        "b_pos": conv_bias(keys[2], 3, C),            # pos_xyz bias
    }
    wqkv, wt, bt = [], [], []
    kidx = 3
    for _ in range(NUM_SA_LAYERS):
        wq = conv_weight(keys[kidx + 0], C, C)
        wk = conv_weight(keys[kidx + 1], C, C)
        wv = conv_weight(keys[kidx + 2], C, C)
        wqkv.append(jnp.concatenate([wq, wk, wv], axis=1))     # (C, 3C)
        wt.append(conv_weight(keys[kidx + 3], C, C))
        # trans_conv bias: present in the module but exactly cancelled by
        # training-mode BatchNorm (batch-mean subtraction) -> not consumed.
        bt.append(conv_bias(keys[kidx + 4], C, C))
        kidx += 5
    params["wqkv"] = jnp.stack(wqkv)                            # (4, C, 3C)
    params["wt"] = jnp.stack(wt)                                # (4, C, C)
    params["bt"] = jnp.stack(bt)                                # (4, 1, C) unused
    params["sa_gamma"] = jnp.ones((NUM_SA_LAYERS, 1, C), jnp.float32)
    params["sa_beta"] = jnp.zeros((NUM_SA_LAYERS, 1, C), jnp.float32)
    return params


if __name__ == "__main__":
    B, C, N = 2, 32, 16        # small demo: channels == emb_dim == 32, 16 points
    key = jax.random.PRNGKey(0)
    kx, kxyz, kp = jax.random.split(key, 3)

    x = jax.random.normal(kx, (B, C, N), jnp.float32)       # module input x
    xyz = jax.random.normal(kxyz, (B, N, 3), jnp.float32)   # module input xyz
    params = init_params(kp, C)

    x_cat, attn_distances, attn_entropies = point_transformer_last_forward(x, xyz, params)

    x_cat = jax.block_until_ready(x_cat)
    attn_distances = [jax.block_until_ready(d) for d in attn_distances]
    attn_entropies = [jax.block_until_ready(e) for e in attn_entropies]

    assert x_cat.shape == (B, 4 * C, N), x_cat.shape
    assert len(attn_distances) == 4 and len(attn_entropies) == 4
    assert bool(jnp.all(jnp.isfinite(x_cat)))
    assert all(bool(jnp.isfinite(d)) for d in attn_distances)
    assert all(bool(jnp.isfinite(e)) for e in attn_entropies)

    # cross-check against the plain-JAX mirror
    x_ref, d_ref, e_ref = reference_forward(x, xyz, params)
    assert jnp.allclose(x_cat, x_ref, rtol=3e-2, atol=3e-2), \
        float(jnp.max(jnp.abs(x_cat - x_ref)))
    for a, b in zip(attn_distances, d_ref):
        assert abs(float(a) - float(b)) <= 3e-2 * max(1.0, abs(float(b)))
    for a, b in zip(attn_entropies, e_ref):
        assert abs(float(a) - float(b)) <= 3e-2 * max(1.0, abs(float(b)))

    print("KERNEL_OK")
</pallas_src>

<mosaic_0001>
module attributes {stable_mosaic.version = 11 : i64} {
  func.func @pct_fused_kernel(%arg0: memref<2x32x16xf32, #tpu.memory_space<vmem>>, %arg1: memref<2x16x3xf32, #tpu.memory_space<vmem>>, %arg2: memref<32x32xf32, #tpu.memory_space<vmem>>, %arg3: memref<1x32xf32, #tpu.memory_space<vmem>>, %arg4: memref<1x32xf32, #tpu.memory_space<vmem>>, %arg5: memref<3x32xf32, #tpu.memory_space<vmem>>, %arg6: memref<1x32xf32, #tpu.memory_space<vmem>>, %arg7: memref<4x32x96xf32, #tpu.memory_space<vmem>>, %arg8: memref<4x32x32xf32, #tpu.memory_space<vmem>>, %arg9: memref<4x1x32xf32, #tpu.memory_space<vmem>>, %arg10: memref<4x1x32xf32, #tpu.memory_space<vmem>>, %arg11: memref<2x128x16xf32, #tpu.memory_space<vmem>>, %arg12: memref<4xf32, #tpu.memory_space<smem>>, %arg13: memref<4xf32, #tpu.memory_space<smem>>) attributes {dimension_semantics = [], scalar_prefetch = 0 : i64, scratch_operands = 0 : i64, tpu.core_type = #tpu.core_type<tc>} {
    %c0 = arith.constant 0 : index
    %c0_0 = arith.constant 0 : index
    %c0_1 = arith.constant 0 : index
    %0 = vector.load %arg0[%c0, %c0_0, %c0_1] : memref<2x32x16xf32, #tpu.memory_space<vmem>>, vector<2x32x16xf32>
    %1 = tpu.transpose %0, [0, 2, 1] : vector<2x32x16xf32> -> vector<2x16x32xf32>
    %c0_2 = arith.constant 0 : index
    %c0_3 = arith.constant 0 : index
    %c0_4 = arith.constant 0 : index
    %2 = vector.load %arg1[%c0_2, %c0_3, %c0_4] : memref<2x16x3xf32, #tpu.memory_space<vmem>>, vector<2x16x3xf32>
    %c0_5 = arith.constant 0 : index
    %c0_6 = arith.constant 0 : index
    %3 = vector.load %arg5[%c0_5, %c0_6] : memref<3x32xf32, #tpu.memory_space<vmem>>, vector<3x32xf32>
    %c0_7 = arith.constant 0 : index
    %c0_8 = arith.constant 0 : index
    %4 = vector.load %arg6[%c0_7, %c0_8] : memref<1x32xf32, #tpu.memory_space<vmem>>, vector<1x32xf32>
    %5 = vector.shape_cast %4 : vector<1x32xf32> to vector<1x1x32xf32>
    %6 = vector.extract_strided_slice %2 {offsets = [0, 0, 0], sizes = [2, 16, 1], strides = [1, 1, 1]} : vector<2x16x3xf32> to vector<2x16x1xf32>
    %7 = vector.extract_strided_slice %3 {offsets = [0, 0], sizes = [1, 32], strides = [1, 1]} : vector<3x32xf32> to vector<1x32xf32>
    %8 = vector.shape_cast %7 : vector<1x32xf32> to vector<32xf32>
    %9 = vector.shape_cast %8 : vector<32xf32> to vector<1x1x32xf32>
    %10 = vector.broadcast %6 : vector<2x16x1xf32> to vector<2x16x32xf32>
    %11 = vector.broadcast %9 : vector<1x1x32xf32> to vector<2x16x32xf32>
    %12 = arith.mulf %10, %11 : vector<2x16x32xf32>
    %13 = vector.broadcast %5 : vector<1x1x32xf32> to vector<2x16x32xf32>
    %14 = arith.addf %13, %12 : vector<2x16x32xf32>
    %15 = vector.extract_strided_slice %2 {offsets = [0, 0, 1], sizes = [2, 16, 1], strides = [1, 1, 1]} : vector<2x16x3xf32> to vector<2x16x1xf32>
    %16 = vector.extract_strided_slice %3 {offsets = [1, 0], sizes = [1, 32], strides = [1, 1]} : vector<3x32xf32> to vector<1x32xf32>
    %17 = vector.shape_cast %16 : vector<1x32xf32> to vector<32xf32>
    %18 = vector.shape_cast %17 : vector<32xf32> to vector<1x1x32xf32>
    %19 = vector.broadcast %15 : vector<2x16x1xf32> to vector<2x16x32xf32>
    %20 = vector.broadcast %18 : vector<1x1x32xf32> to vector<2x16x32xf32>
    %21 = arith.mulf %19, %20 : vector<2x16x32xf32>
    %22 = arith.addf %14, %21 : vector<2x16x32xf32>
    %23 = vector.extract_strided_slice %2 {offsets = [0, 0, 2], sizes = [2, 16, 1], strides = [1, 1, 1]} : vector<2x16x3xf32> to vector<2x16x1xf32>
    %24 = vector.extract_strided_slice %3 {offsets = [2, 0], sizes = [1, 32], strides = [1, 1]} : vector<3x32xf32> to vector<1x32xf32>
    %25 = vector.shape_cast %24 : vector<1x32xf32> to vector<32xf32>
    %26 = vector.shape_cast %25 : vector<32xf32> to vector<1x1x32xf32>
    %27 = vector.broadcast %23 : vector<2x16x1xf32> to vector<2x16x32xf32>
    %28 = vector.broadcast %26 : vector<1x1x32xf32> to vector<2x16x32xf32>
    %29 = arith.mulf %27, %28 : vector<2x16x32xf32>
    %30 = arith.addf %22, %29 : vector<2x16x32xf32>
    %31 = vector.shape_cast %1 : vector<2x16x32xf32> to vector<32x32xf32>
    %32 = arith.truncf %31 : vector<32x32xf32> to vector<32x32xbf16>
    %c0_9 = arith.constant 0 : index
    %c0_10 = arith.constant 0 : index
    %33 = vector.load %arg2[%c0_9, %c0_10] : memref<32x32xf32, #tpu.memory_space<vmem>>, vector<32x32xf32>
    %34 = arith.truncf %33 : vector<32x32xf32> to vector<32x32xbf16>
    %cst = arith.constant dense<0.000000e+00> : vector<32x32xf32>
    %35 = tpu.matmul %32, %34, %cst {dimension_numbers = #tpu.dot_dimension_numbers<[1], [0], [0], [1], [0, 0, 1, 1], [], []>} : vector<32x32xbf16>, vector<32x32xbf16>, vector<32x32xf32> -> vector<32x32xf32>
    %36 = vector.shape_cast %35 : vector<32x32xf32> to vector<2x16x32xf32>
    %c0_11 = arith.constant 0 : index
    %c0_12 = arith.constant 0 : index
    %37 = vector.load %arg3[%c0_11, %c0_12] : memref<1x32xf32, #tpu.memory_space<vmem>>, vector<1x32xf32>
    %c0_13 = arith.constant 0 : index
    %c0_14 = arith.constant 0 : index
    %38 = vector.load %arg4[%c0_13, %c0_14] : memref<1x32xf32, #tpu.memory_space<vmem>>, vector<1x32xf32>
    %cst_15 = arith.constant dense<0.000000e+00> : vector<32xf32>
    %39 = vector.multi_reduction <add>, %36, %cst_15 [0, 1] : vector<2x16x32xf32> to vector<32xf32>
    %40 = vector.shape_cast %39 : vector<32xf32> to vector<1x1x32xf32>
    %cst_16 = arith.constant 3.200000e+01 : f32
    %41 = vector.broadcast %cst_16 : f32 to vector<1x1x32xf32>
    %42 = arith.divf %40, %41 : vector<1x1x32xf32>
    %43 = vector.broadcast %42 : vector<1x1x32xf32> to vector<2x16x32xf32>
    %44 = arith.subf %36, %43 : vector<2x16x32xf32>
    %45 = arith.mulf %44, %44 : vector<2x16x32xf32>
    %cst_17 = arith.constant dense<0.000000e+00> : vector<32xf32>
    %46 = vector.multi_reduction <add>, %45, %cst_17 [0, 1] : vector<2x16x32xf32> to vector<32xf32>
    %47 = vector.shape_cast %46 : vector<32xf32> to vector<1x1x32xf32>
    %cst_18 = arith.constant 3.200000e+01 : f32
    %48 = vector.broadcast %cst_18 : f32 to vector<1x1x32xf32>
    %49 = arith.divf %47, %48 : vector<1x1x32xf32>
    %50 = vector.broadcast %42 : vector<1x1x32xf32> to vector<2x16x32xf32>
    %51 = arith.subf %36, %50 : vector<2x16x32xf32>
    %52 = vector.shape_cast %37 : vector<1x32xf32> to vector<1x1x32xf32>
    %53 = vector.broadcast %52 : vector<1x1x32xf32> to vector<2x16x32xf32>
    %54 = arith.mulf %53, %51 : vector<2x16x32xf32>
    %cst_19 = arith.constant 9.99999974E-6 : f32
    %55 = vector.broadcast %cst_19 : f32 to vector<1x1x32xf32>
    %56 = arith.addf %49, %55 : vector<1x1x32xf32>
    %57 = math.rsqrt %56 : vector<1x1x32xf32>
    %58 = vector.broadcast %57 : vector<1x1x32xf32> to vector<2x16x32xf32>
    %59 = arith.mulf %54, %58 : vector<2x16x32xf32>
    %60 = vector.shape_cast %38 : vector<1x32xf32> to vector<1x1x32xf32>
    %61 = vector.broadcast %60 : vector<1x1x32xf32> to vector<2x16x32xf32>
    %62 = arith.addf %59, %61 : vector<2x16x32xf32>
    %cst_20 = arith.constant 0.000000e+00 : f32
    %63 = vector.broadcast %cst_20 : f32 to vector<2x16x32xf32>
    %64 = arith.maximumf %62, %63 : vector<2x16x32xf32>
    "tpu.trace_start"() <{level = 10 : i32, message = "bnc,bmc->bnm"}> : () -> ()
    %cst_21 = arith.constant dense<0.000000e+00> : vector<2x16x16xf32>
    %65 = tpu.matmul %30, %30, %cst_21 {dimension_numbers = #tpu.dot_dimension_numbers<[2], [2], [1], [1], [0, 0, 0, 1, 1, 1], [0], [0]>} : vector<2x16x32xf32>, vector<2x16x32xf32>, vector<2x16x16xf32> -> vector<2x16x16xf32>
    "tpu.trace_stop"() : () -> ()
    %66 = arith.mulf %30, %30 : vector<2x16x32xf32>
    %cst_22 = arith.constant dense<0.000000e+00> : vector<2x16xf32>
    %67 = vector.multi_reduction <add>, %66, %cst_22 [2] : vector<2x16x32xf32> to vector<2x16xf32>
    %68 = vector.shape_cast %67 : vector<2x16xf32> to vector<2x16x1xf32>
    %69 = tpu.transpose %68, [0, 2, 1] : vector<2x16x1xf32> -> vector<2x1x16xf32>
    %70 = vector.broadcast %68 : vector<2x16x1xf32> to vector<2x16x16xf32>
    %71 = vector.broadcast %69 : vector<2x1x16xf32> to vector<2x16x16xf32>
    %72 = arith.addf %70, %71 : vector<2x16x16xf32>
    %cst_23 = arith.constant 2.000000e+00 : f32
    %73 = vector.broadcast %cst_23 : f32 to vector<2x16x16xf32>
    %74 = arith.mulf %73, %65 : vector<2x16x16xf32>
    %75 = arith.subf %72, %74 : vector<2x16x16xf32>
    %cst_24 = arith.constant 0.000000e+00 : f32
    %76 = vector.broadcast %cst_24 : f32 to vector<2x16x16xf32>
    %77 = arith.maximumf %75, %76 : vector<2x16x16xf32>
    %78 = math.sqrt %77 : vector<2x16x16xf32>
    %79 = arith.truncf %78 : vector<2x16x16xf32> to vector<2x16x16xbf16>
    %80 = arith.addf %64, %30 : vector<2x16x32xf32>
    %81 = vector.shape_cast %80 : vector<2x16x32xf32> to vector<32x32xf32>
    %82 = arith.truncf %81 : vector<32x32xf32> to vector<32x32xbf16>
    %c0_25 = arith.constant 0 : index
    %c0_26 = arith.constant 0 : index
    %c0_27 = arith.constant 0 : index
    %83 = vector.load %arg7[%c0_25, %c0_26, %c0_27] : memref<4x32x96xf32, #tpu.memory_space<vmem>>, vector<1x32x96xf32>
    %84 = vector.shape_cast %83 : vector<1x32x96xf32> to vector<32x96xf32>
    %85 = arith.truncf %84 : vector<32x96xf32> to vector<32x96xbf16>
    %cst_28 = arith.constant dense<0.000000e+00> : vector<32x96xf32>
    %86 = tpu.matmul %82, %85, %cst_28 {dimension_numbers = #tpu.dot_dimension_numbers<[1], [0], [0], [1], [0, 0, 1, 1], [], []>} : vector<32x32xbf16>, vector<32x96xbf16>, vector<32x96xf32> -> vector<32x96xf32>
    %87 = vector.shape_cast %86 : vector<32x96xf32> to vector<2x16x96xf32>
    %88 = vector.extract_strided_slice %87 {offsets = [0, 0, 0], sizes = [2, 16, 32], strides = [1, 1, 1]} : vector<2x16x96xf32> to vector<2x16x32xf32>
    %89 = arith.truncf %88 : vector<2x16x32xf32> to vector<2x16x32xbf16>
    %90 = vector.extract_strided_slice %87 {offsets = [0, 0, 32], sizes = [2, 16, 32], strides = [1, 1, 1]} : vector<2x16x96xf32> to vector<2x16x32xf32>
    %91 = arith.truncf %90 : vector<2x16x32xf32> to vector<2x16x32xbf16>
    %92 = vector.extract_strided_slice %87 {offsets = [0, 0, 64], sizes = [2, 16, 32], strides = [1, 1, 1]} : vector<2x16x96xf32> to vector<2x16x32xf32>
    %93 = arith.truncf %92 : vector<2x16x32xf32> to vector<2x16x32xbf16>
    "tpu.trace_start"() <{level = 10 : i32, message = "bne,bme->bnm"}> : () -> ()
    %cst_29 = arith.constant dense<0.000000e+00> : vector<2x16x16xf32>
    %94 = tpu.matmul %89, %91, %cst_29 {dimension_numbers = #tpu.dot_dimension_numbers<[2], [2], [1], [1], [0, 0, 0, 1, 1, 1], [0], [0]>} : vector<2x16x32xbf16>, vector<2x16x32xbf16>, vector<2x16x16xf32> -> vector<2x16x16xf32>
    "tpu.trace_stop"() : () -> ()
    %cst_30 = arith.constant dense<0xFF800000> : vector<2x16xf32>
    %95 = vector.multi_reduction <maximumf>, %94, %cst_30 [2] : vector<2x16x16xf32> to vector<2x16xf32>
    %96 = vector.shape_cast %95 : vector<2x16xf32> to vector<2x16x1xf32>
    %97 = vector.broadcast %96 : vector<2x16x1xf32> to vector<2x16x16xf32>
    %98 = arith.subf %94, %97 : vector<2x16x16xf32>
    %99 = math.exp %98 : vector<2x16x16xf32>
    %cst_31 = arith.constant dense<0.000000e+00> : vector<2x16xf32>
    %100 = vector.multi_reduction <add>, %99, %cst_31 [2] : vector<2x16x16xf32> to vector<2x16xf32>
    %101 = vector.shape_cast %100 : vector<2x16xf32> to vector<2x16x1xf32>
    %cst_32 = arith.constant 1.000000e+00 : f32
    %102 = vector.broadcast %cst_32 : f32 to vector<2x16x1xf32>
    %103 = arith.divf %102, %101 : vector<2x16x1xf32>
    %104 = arith.extf %79 : vector<2x16x16xbf16> to vector<2x16x16xf32>
    %105 = arith.mulf %99, %104 : vector<2x16x16xf32>
    %cst_33 = arith.constant dense<0.000000e+00> : vector<2x16xf32>
    %106 = vector.multi_reduction <add>, %105, %cst_33 [2] : vector<2x16x16xf32> to vector<2x16xf32>
    %107 = vector.shape_cast %106 : vector<2x16xf32> to vector<2x16x1xf32>
    %108 = arith.mulf %107, %103 : vector<2x16x1xf32>
    %109 = vector.shape_cast %108 : vector<2x16x1xf32> to vector<1x2x16x1xf32>
    %cst_34 = arith.constant dense<0.000000e+00> : vector<1xf32>
    %110 = vector.multi_reduction <add>, %109, %cst_34 [1, 2, 3] : vector<1x2x16x1xf32> to vector<1xf32>
    %111 = vector.shape_cast %110 : vector<1xf32> to vector<1x1x1x1xf32>
    %112 = vector.extract %111[0, 0, 0, 0] : f32 from vector<1x1x1x1xf32>
    %cst_35 = arith.constant 3.200000e+01 : f32
    %113 = arith.divf %112, %cst_35 : f32
    %c0_36 = arith.constant 0 : index
    %114 = memref.load %arg12[%c0_36] : memref<4xf32, #tpu.memory_space<smem>>
    memref.store %113, %arg12[%c0_36] : memref<4xf32, #tpu.memory_space<smem>>
    %115 = math.log %101 : vector<2x16x1xf32>
    %116 = arith.mulf %99, %98 : vector<2x16x16xf32>
    %cst_37 = arith.constant dense<0.000000e+00> : vector<2x16xf32>
    %117 = vector.multi_reduction <add>, %116, %cst_37 [2] : vector<2x16x16xf32> to vector<2x16xf32>
    %118 = vector.shape_cast %117 : vector<2x16xf32> to vector<2x16x1xf32>
    %119 = arith.mulf %118, %103 : vector<2x16x1xf32>
    %120 = arith.subf %115, %119 : vector<2x16x1xf32>
    %121 = vector.shape_cast %120 : vector<2x16x1xf32> to vector<1x2x16x1xf32>
    %cst_38 = arith.constant dense<0.000000e+00> : vector<1xf32>
    %122 = vector.multi_reduction <add>, %121, %cst_38 [1, 2, 3] : vector<1x2x16x1xf32> to vector<1xf32>
    %123 = vector.shape_cast %122 : vector<1xf32> to vector<1x1x1x1xf32>
    %124 = vector.extract %123[0, 0, 0, 0] : f32 from vector<1x1x1x1xf32>
    %cst_39 = arith.constant 3.200000e+01 : f32
    %125 = arith.divf %124, %cst_39 : f32
    %c0_40 = arith.constant 0 : index
    %126 = memref.load %arg13[%c0_40] : memref<4xf32, #tpu.memory_space<smem>>
    memref.store %125, %arg13[%c0_40] : memref<4xf32, #tpu.memory_space<smem>>
    %127 = arith.mulf %101, %103 : vector<2x16x1xf32>
    %cst_41 = arith.constant 9.99999971E-10 : f32
    %128 = vector.broadcast %cst_41 : f32 to vector<2x16x1xf32>
    %129 = arith.addf %128, %127 : vector<2x16x1xf32>
    %130 = arith.divf %103, %129 : vector<2x16x1xf32>
    %131 = arith.truncf %99 : vector<2x16x16xf32> to vector<2x16x16xbf16>
    "tpu.trace_start"() <{level = 10 : i32, message = "bnm,bme->bne"}> : () -> ()
    %cst_42 = arith.constant dense<0.000000e+00> : vector<2x16x32xf32>
    %132 = tpu.matmul %131, %93, %cst_42 {dimension_numbers = #tpu.dot_dimension_numbers<[2], [1], [1], [2], [0, 0, 0, 1, 1, 2], [0], [0]>} : vector<2x16x16xbf16>, vector<2x16x32xbf16>, vector<2x16x32xf32> -> vector<2x16x32xf32>
    "tpu.trace_stop"() : () -> ()
    %133 = vector.broadcast %130 : vector<2x16x1xf32> to vector<2x16x32xf32>
    %134 = arith.mulf %132, %133 : vector<2x16x32xf32>
    %135 = arith.subf %80, %134 : vector<2x16x32xf32>
    %136 = vector.shape_cast %135 : vector<2x16x32xf32> to vector<32x32xf32>
    %137 = arith.truncf %136 : vector<32x32xf32> to vector<32x32xbf16>
    %c0_43 = arith.constant 0 : index
    %c0_44 = arith.constant 0 : index
    %c0_45 = arith.constant 0 : index
    %138 = vector.load %arg8[%c0_43, %c0_44, %c0_45] : memref<4x32x32xf32, #tpu.memory_space<vmem>>, vector<1x32x32xf32>
    %139 = vector.shape_cast %138 : vector<1x32x32xf32> to vector<32x32xf32>
    %140 = arith.truncf %139 : vector<32x32xf32> to vector<32x32xbf16>
    %cst_46 = arith.constant dense<0.000000e+00> : vector<32x32xf32>
    %141 = tpu.matmul %137, %140, %cst_46 {dimension_numbers = #tpu.dot_dimension_numbers<[1], [0], [0], [1], [0, 0, 1, 1], [], []>} : vector<32x32xbf16>, vector<32x32xbf16>, vector<32x32xf32> -> vector<32x32xf32>
    %142 = vector.shape_cast %141 : vector<32x32xf32> to vector<2x16x32xf32>
    %c0_47 = arith.constant 0 : index
    %c0_48 = arith.constant 0 : index
    %c0_49 = arith.constant 0 : index
    %143 = vector.load %arg9[%c0_47, %c0_48, %c0_49] : memref<4x1x32xf32, #tpu.memory_space<vmem>>, vector<1x1x32xf32>
    %144 = vector.shape_cast %143 : vector<1x1x32xf32> to vector<1x32xf32>
    %c0_50 = arith.constant 0 : index
    %c0_51 = arith.constant 0 : index
    %c0_52 = arith.constant 0 : index
    %145 = vector.load %arg10[%c0_50, %c0_51, %c0_52] : memref<4x1x32xf32, #tpu.memory_space<vmem>>, vector<1x1x32xf32>
    %146 = vector.shape_cast %145 : vector<1x1x32xf32> to vector<1x32xf32>
    %cst_53 = arith.constant dense<0.000000e+00> : vector<32xf32>
    %147 = vector.multi_reduction <add>, %142, %cst_53 [0, 1] : vector<2x16x32xf32> to vector<32xf32>
    %148 = vector.shape_cast %147 : vector<32xf32> to vector<1x1x32xf32>
    %cst_54 = arith.constant 3.200000e+01 : f32
    %149 = vector.broadcast %cst_54 : f32 to vector<1x1x32xf32>
    %150 = arith.divf %148, %149 : vector<1x1x32xf32>
    %151 = vector.broadcast %150 : vector<1x1x32xf32> to vector<2x16x32xf32>
    %152 = arith.subf %142, %151 : vector<2x16x32xf32>
    %153 = arith.mulf %152, %152 : vector<2x16x32xf32>
    %cst_55 = arith.constant dense<0.000000e+00> : vector<32xf32>
    %154 = vector.multi_reduction <add>, %153, %cst_55 [0, 1] : vector<2x16x32xf32> to vector<32xf32>
    %155 = vector.shape_cast %154 : vector<32xf32> to vector<1x1x32xf32>
    %cst_56 = arith.constant 3.200000e+01 : f32
    %156 = vector.broadcast %cst_56 : f32 to vector<1x1x32xf32>
    %157 = arith.divf %155, %156 : vector<1x1x32xf32>
    %158 = vector.broadcast %150 : vector<1x1x32xf32> to vector<2x16x32xf32>
    %159 = arith.subf %142, %158 : vector<2x16x32xf32>
    %160 = vector.shape_cast %144 : vector<1x32xf32> to vector<1x1x32xf32>
    %161 = vector.broadcast %160 : vector<1x1x32xf32> to vector<2x16x32xf32>
    %162 = arith.mulf %161, %159 : vector<2x16x32xf32>
    %cst_57 = arith.constant 9.99999974E-6 : f32
    %163 = vector.broadcast %cst_57 : f32 to vector<1x1x32xf32>
    %164 = arith.addf %157, %163 : vector<1x1x32xf32>
    %165 = math.rsqrt %164 : vector<1x1x32xf32>
    %166 = vector.broadcast %165 : vector<1x1x32xf32> to vector<2x16x32xf32>
    %167 = arith.mulf %162, %166 : vector<2x16x32xf32>
    %168 = vector.shape_cast %146 : vector<1x32xf32> to vector<1x1x32xf32>
    %169 = vector.broadcast %168 : vector<1x1x32xf32> to vector<2x16x32xf32>
    %170 = arith.addf %167, %169 : vector<2x16x32xf32>
    %cst_58 = arith.constant 0.000000e+00 : f32
    %171 = vector.broadcast %cst_58 : f32 to vector<2x16x32xf32>
    %172 = arith.maximumf %170, %171 : vector<2x16x32xf32>
    %173 = arith.addf %80, %172 : vector<2x16x32xf32>
    %174 = arith.addf %173, %30 : vector<2x16x32xf32>
    %175 = vector.shape_cast %174 : vector<2x16x32xf32> to vector<32x32xf32>
    %176 = arith.truncf %175 : vector<32x32xf32> to vector<32x32xbf16>
    %c1 = arith.constant 1 : index
    %c0_59 = arith.constant 0 : index
    %c0_60 = arith.constant 0 : index
    %177 = vector.load %arg7[%c1, %c0_59, %c0_60] : memref<4x32x96xf32, #tpu.memory_space<vmem>>, vector<1x32x96xf32>
    %178 = vector.shape_cast %177 : vector<1x32x96xf32> to vector<32x96xf32>
    %179 = arith.truncf %178 : vector<32x96xf32> to vector<32x96xbf16>
    %cst_61 = arith.constant dense<0.000000e+00> : vector<32x96xf32>
    %180 = tpu.matmul %176, %179, %cst_61 {dimension_numbers = #tpu.dot_dimension_numbers<[1], [0], [0], [1], [0, 0, 1, 1], [], []>} : vector<32x32xbf16>, vector<32x96xbf16>, vector<32x96xf32> -> vector<32x96xf32>
    %181 = vector.shape_cast %180 : vector<32x96xf32> to vector<2x16x96xf32>
    %182 = vector.extract_strided_slice %181 {offsets = [0, 0, 0], sizes = [2, 16, 32], strides = [1, 1, 1]} : vector<2x16x96xf32> to vector<2x16x32xf32>
    %183 = arith.truncf %182 : vector<2x16x32xf32> to vector<2x16x32xbf16>
    %184 = vector.extract_strided_slice %181 {offsets = [0, 0, 32], sizes = [2, 16, 32], strides = [1, 1, 1]} : vector<2x16x96xf32> to vector<2x16x32xf32>
    %185 = arith.truncf %184 : vector<2x16x32xf32> to vector<2x16x32xbf16>
    %186 = vector.extract_strided_slice %181 {offsets = [0, 0, 64], sizes = [2, 16, 32], strides = [1, 1, 1]} : vector<2x16x96xf32> to vector<2x16x32xf32>
    %187 = arith.truncf %186 : vector<2x16x32xf32> to vector<2x16x32xbf16>
    "tpu.trace_start"() <{level = 10 : i32, message = "bne,bme->bnm"}> : () -> ()
    %cst_62 = arith.constant dense<0.000000e+00> : vector<2x16x16xf32>
    %188 = tpu.matmul %183, %185, %cst_62 {dimension_numbers = #tpu.dot_dimension_numbers<[2], [2], [1], [1], [0, 0, 0, 1, 1, 1], [0], [0]>} : vector<2x16x32xbf16>, vector<2x16x32xbf16>, vector<2x16x16xf32> -> vector<2x16x16xf32>
    "tpu.trace_stop"() : () -> ()
    %cst_63 = arith.constant dense<0xFF800000> : vector<2x16xf32>
    %189 = vector.multi_reduction <maximumf>, %188, %cst_63 [2] : vector<2x16x16xf32> to vector<2x16xf32>
    %190 = vector.shape_cast %189 : vector<2x16xf32> to vector<2x16x1xf32>
    %191 = vector.broadcast %190 : vector<2x16x1xf32> to vector<2x16x16xf32>
    %192 = arith.subf %188, %191 : vector<2x16x16xf32>
    %193 = math.exp %192 : vector<2x16x16xf32>
    %cst_64 = arith.constant dense<0.000000e+00> : vector<2x16xf32>
    %194 = vector.multi_reduction <add>, %193, %cst_64 [2] : vector<2x16x16xf32> to vector<2x16xf32>
    %195 = vector.shape_cast %194 : vector<2x16xf32> to vector<2x16x1xf32>
    %cst_65 = arith.constant 1.000000e+00 : f32
    %196 = vector.broadcast %cst_65 : f32 to vector<2x16x1xf32>
    %197 = arith.divf %196, %195 : vector<2x16x1xf32>
    %198 = arith.extf %79 : vector<2x16x16xbf16> to vector<2x16x16xf32>
    %199 = arith.mulf %193, %198 : vector<2x16x16xf32>
    %cst_66 = arith.constant dense<0.000000e+00> : vector<2x16xf32>
    %200 = vector.multi_reduction <add>, %199, %cst_66 [2] : vector<2x16x16xf32> to vector<2x16xf32>
    %201 = vector.shape_cast %200 : vector<2x16xf32> to vector<2x16x1xf32>
    %202 = arith.mulf %201, %197 : vector<2x16x1xf32>
    %203 = vector.shape_cast %202 : vector<2x16x1xf32> to vector<1x2x16x1xf32>
    %cst_67 = arith.constant dense<0.000000e+00> : vector<1xf32>
    %204 = vector.multi_reduction <add>, %203, %cst_67 [1, 2, 3] : vector<1x2x16x1xf32> to vector<1xf32>
    %205 = vector.shape_cast %204 : vector<1xf32> to vector<1x1x1x1xf32>
    %206 = vector.extract %205[0, 0, 0, 0] : f32 from vector<1x1x1x1xf32>
    %cst_68 = arith.constant 3.200000e+01 : f32
    %207 = arith.divf %206, %cst_68 : f32
    %c1_69 = arith.constant 1 : index
    %208 = memref.load %arg12[%c1_69] : memref<4xf32, #tpu.memory_space<smem>>
    memref.store %207, %arg12[%c1_69] : memref<4xf32, #tpu.memory_space<smem>>
    %209 = math.log %195 : vector<2x16x1xf32>
    %210 = arith.mulf %193, %192 : vector<2x16x16xf32>
    %cst_70 = arith.constant dense<0.000000e+00> : vector<2x16xf32>
    %211 = vector.multi_reduction <add>, %210, %cst_70 [2] : vector<2x16x16xf32> to vector<2x16xf32>
    %212 = vector.shape_cast %211 : vector<2x16xf32> to vector<2x16x1xf32>
    %213 = arith.mulf %212, %197 : vector<2x16x1xf32>
    %214 = arith.subf %209, %213 : vector<2x16x1xf32>
    %215 = vector.shape_cast %214 : vector<2x16x1xf32> to vector<1x2x16x1xf32>
    %cst_71 = arith.constant dense<0.000000e+00> : vector<1xf32>
    %216 = vector.multi_reduction <add>, %215, %cst_71 [1, 2, 3] : vector<1x2x16x1xf32> to vector<1xf32>
    %217 = vector.shape_cast %216 : vector<1xf32> to vector<1x1x1x1xf32>
    %218 = vector.extract %217[0, 0, 0, 0] : f32 from vector<1x1x1x1xf32>
    %cst_72 = arith.constant 3.200000e+01 : f32
    %219 = arith.divf %218, %cst_72 : f32
    %c1_73 = arith.constant 1 : index
    %220 = memref.load %arg13[%c1_73] : memref<4xf32, #tpu.memory_space<smem>>
    memref.store %219, %arg13[%c1_73] : memref<4xf32, #tpu.memory_space<smem>>
    %221 = arith.mulf %195, %197 : vector<2x16x1xf32>
    %cst_74 = arith.constant 9.99999971E-10 : f32
    %222 = vector.broadcast %cst_74 : f32 to vector<2x16x1xf32>
    %223 = arith.addf %222, %221 : vector<2x16x1xf32>
    %224 = arith.divf %197, %223 : vector<2x16x1xf32>
    %225 = arith.truncf %193 : vector<2x16x16xf32> to vector<2x16x16xbf16>
    "tpu.trace_start"() <{level = 10 : i32, message = "bnm,bme->bne"}> : () -> ()
    %cst_75 = arith.constant dense<0.000000e+00> : vector<2x16x32xf32>
    %226 = tpu.matmul %225, %187, %cst_75 {dimension_numbers = #tpu.dot_dimension_numbers<[2], [1], [1], [2], [0, 0, 0, 1, 1, 2], [0], [0]>} : vector<2x16x16xbf16>, vector<2x16x32xbf16>, vector<2x16x32xf32> -> vector<2x16x32xf32>
    "tpu.trace_stop"() : () -> ()
    %227 = vector.broadcast %224 : vector<2x16x1xf32> to vector<2x16x32xf32>
    %228 = arith.mulf %226, %227 : vector<2x16x32xf32>
    %229 = arith.subf %174, %228 : vector<2x16x32xf32>
    %230 = vector.shape_cast %229 : vector<2x16x32xf32> to vector<32x32xf32>
    %231 = arith.truncf %230 : vector<32x32xf32> to vector<32x32xbf16>
    %c1_76 = arith.constant 1 : index
    %c0_77 = arith.constant 0 : index
    %c0_78 = arith.constant 0 : index
    %232 = vector.load %arg8[%c1_76, %c0_77, %c0_78] : memref<4x32x32xf32, #tpu.memory_space<vmem>>, vector<1x32x32xf32>
    %233 = vector.shape_cast %232 : vector<1x32x32xf32> to vector<32x32xf32>
    %234 = arith.truncf %233 : vector<32x32xf32> to vector<32x32xbf16>
    %cst_79 = arith.constant dense<0.000000e+00> : vector<32x32xf32>
    %235 = tpu.matmul %231, %234, %cst_79 {dimension_numbers = #tpu.dot_dimension_numbers<[1], [0], [0], [1], [0, 0, 1, 1], [], []>} : vector<32x32xbf16>, vector<32x32xbf16>, vector<32x32xf32> -> vector<32x32xf32>
    %236 = vector.shape_cast %235 : vector<32x32xf32> to vector<2x16x32xf32>
    %c1_80 = arith.constant 1 : index
    %c0_81 = arith.constant 0 : index
    %c0_82 = arith.constant 0 : index
    %237 = vector.load %arg9[%c1_80, %c0_81, %c0_82] : memref<4x1x32xf32, #tpu.memory_space<vmem>>, vector<1x1x32xf32>
    %238 = vector.shape_cast %237 : vector<1x1x32xf32> to vector<1x32xf32>
    %c1_83 = arith.constant 1 : index
    %c0_84 = arith.constant 0 : index
    %c0_85 = arith.constant 0 : index
    %239 = vector.load %arg10[%c1_83, %c0_84, %c0_85] : memref<4x1x32xf32, #tpu.memory_space<vmem>>, vector<1x1x32xf32>
    %240 = vector.shape_cast %239 : vector<1x1x32xf32> to vector<1x32xf32>
    %cst_86 = arith.constant dense<0.000000e+00> : vector<32xf32>
    %241 = vector.multi_reduction <add>, %236, %cst_86 [0, 1] : vector<2x16x32xf32> to vector<32xf32>
    %242 = vector.shape_cast %241 : vector<32xf32> to vector<1x1x32xf32>
    %cst_87 = arith.constant 3.200000e+01 : f32
    %243 = vector.broadcast %cst_87 : f32 to vector<1x1x32xf32>
    %244 = arith.divf %242, %243 : vector<1x1x32xf32>
    %245 = vector.broadcast %244 : vector<1x1x32xf32> to vector<2x16x32xf32>
    %246 = arith.subf %236, %245 : vector<2x16x32xf32>
    %247 = arith.mulf %246, %246 : vector<2x16x32xf32>
    %cst_88 = arith.constant dense<0.000000e+00> : vector<32xf32>
    %248 = vector.multi_reduction <add>, %247, %cst_88 [0, 1] : vector<2x16x32xf32> to vector<32xf32>
    %249 = vector.shape_cast %248 : vector<32xf32> to vector<1x1x32xf32>
    %cst_89 = arith.constant 3.200000e+01 : f32
    %250 = vector.broadcast %cst_89 : f32 to vector<1x1x32xf32>
    %251 = arith.divf %249, %250 : vector<1x1x32xf32>
    %252 = vector.broadcast %244 : vector<1x1x32xf32> to vector<2x16x32xf32>
    %253 = arith.subf %236, %252 : vector<2x16x32xf32>
    %254 = vector.shape_cast %238 : vector<1x32xf32> to vector<1x1x32xf32>
    %255 = vector.broadcast %254 : vector<1x1x32xf32> to vector<2x16x32xf32>
    %256 = arith.mulf %255, %253 : vector<2x16x32xf32>
    %cst_90 = arith.constant 9.99999974E-6 : f32
    %257 = vector.broadcast %cst_90 : f32 to vector<1x1x32xf32>
    %258 = arith.addf %251, %257 : vector<1x1x32xf32>
    %259 = math.rsqrt %258 : vector<1x1x32xf32>
    %260 = vector.broadcast %259 : vector<1x1x32xf32> to vector<2x16x32xf32>
    %261 = arith.mulf %256, %260 : vector<2x16x32xf32>
    %262 = vector.shape_cast %240 : vector<1x32xf32> to vector<1x1x32xf32>
    %263 = vector.broadcast %262 : vector<1x1x32xf32> to vector<2x16x32xf32>
    %264 = arith.addf %261, %263 : vector<2x16x32xf32>
    %cst_91 = arith.constant 0.000000e+00 : f32
    %265 = vector.broadcast %cst_91 : f32 to vector<2x16x32xf32>
    %266 = arith.maximumf %264, %265 : vector<2x16x32xf32>
    %267 = arith.addf %174, %266 : vector<2x16x32xf32>
    %268 = arith.addf %267, %30 : vector<2x16x32xf32>
    %269 = vector.shape_cast %268 : vector<2x16x32xf32> to vector<32x32xf32>
    %270 = arith.truncf %269 : vector<32x32xf32> to vector<32x32xbf16>
    %c2 = arith.constant 2 : index
    %c0_92 = arith.constant 0 : index
    %c0_93 = arith.constant 0 : index
    %271 = vector.load %arg7[%c2, %c0_92, %c0_93] : memref<4x32x96xf32, #tpu.memory_space<vmem>>, vector<1x32x96xf32>
    %272 = vector.shape_cast %271 : vector<1x32x96xf32> to vector<32x96xf32>
    %273 = arith.truncf %272 : vector<32x96xf32> to vector<32x96xbf16>
    %cst_94 = arith.constant dense<0.000000e+00> : vector<32x96xf32>
    %274 = tpu.matmul %270, %273, %cst_94 {dimension_numbers = #tpu.dot_dimension_numbers<[1], [0], [0], [1], [0, 0, 1, 1], [], []>} : vector<32x32xbf16>, vector<32x96xbf16>, vector<32x96xf32> -> vector<32x96xf32>
    %275 = vector.shape_cast %274 : vector<32x96xf32> to vector<2x16x96xf32>
    %276 = vector.extract_strided_slice %275 {offsets = [0, 0, 0], sizes = [2, 16, 32], strides = [1, 1, 1]} : vector<2x16x96xf32> to vector<2x16x32xf32>
    %277 = arith.truncf %276 : vector<2x16x32xf32> to vector<2x16x32xbf16>
    %278 = vector.extract_strided_slice %275 {offsets = [0, 0, 32], sizes = [2, 16, 32], strides = [1, 1, 1]} : vector<2x16x96xf32> to vector<2x16x32xf32>
    %279 = arith.truncf %278 : vector<2x16x32xf32> to vector<2x16x32xbf16>
    %280 = vector.extract_strided_slice %275 {offsets = [0, 0, 64], sizes = [2, 16, 32], strides = [1, 1, 1]} : vector<2x16x96xf32> to vector<2x16x32xf32>
    %281 = arith.truncf %280 : vector<2x16x32xf32> to vector<2x16x32xbf16>
    "tpu.trace_start"() <{level = 10 : i32, message = "bne,bme->bnm"}> : () -> ()
    %cst_95 = arith.constant dense<0.000000e+00> : vector<2x16x16xf32>
    %282 = tpu.matmul %277, %279, %cst_95 {dimension_numbers = #tpu.dot_dimension_numbers<[2], [2], [1], [1], [0, 0, 0, 1, 1, 1], [0], [0]>} : vector<2x16x32xbf16>, vector<2x16x32xbf16>, vector<2x16x16xf32> -> vector<2x16x16xf32>
    "tpu.trace_stop"() : () -> ()
    %cst_96 = arith.constant dense<0xFF800000> : vector<2x16xf32>
    %283 = vector.multi_reduction <maximumf>, %282, %cst_96 [2] : vector<2x16x16xf32> to vector<2x16xf32>
    %284 = vector.shape_cast %283 : vector<2x16xf32> to vector<2x16x1xf32>
    %285 = vector.broadcast %284 : vector<2x16x1xf32> to vector<2x16x16xf32>
    %286 = arith.subf %282, %285 : vector<2x16x16xf32>
    %287 = math.exp %286 : vector<2x16x16xf32>
    %cst_97 = arith.constant dense<0.000000e+00> : vector<2x16xf32>
    %288 = vector.multi_reduction <add>, %287, %cst_97 [2] : vector<2x16x16xf32> to vector<2x16xf32>
    %289 = vector.shape_cast %288 : vector<2x16xf32> to vector<2x16x1xf32>
    %cst_98 = arith.constant 1.000000e+00 : f32
    %290 = vector.broadcast %cst_98 : f32 to vector<2x16x1xf32>
    %291 = arith.divf %290, %289 : vector<2x16x1xf32>
    %292 = arith.extf %79 : vector<2x16x16xbf16> to vector<2x16x16xf32>
    %293 = arith.mulf %287, %292 : vector<2x16x16xf32>
    %cst_99 = arith.constant dense<0.000000e+00> : vector<2x16xf32>
    %294 = vector.multi_reduction <add>, %293, %cst_99 [2] : vector<2x16x16xf32> to vector<2x16xf32>
    %295 = vector.shape_cast %294 : vector<2x16xf32> to vector<2x16x1xf32>
    %296 = arith.mulf %295, %291 : vector<2x16x1xf32>
    %297 = vector.shape_cast %296 : vector<2x16x1xf32> to vector<1x2x16x1xf32>
    %cst_100 = arith.constant dense<0.000000e+00> : vector<1xf32>
    %298 = vector.multi_reduction <add>, %297, %cst_100 [1, 2, 3] : vector<1x2x16x1xf32> to vector<1xf32>
    %299 = vector.shape_cast %298 : vector<1xf32> to vector<1x1x1x1xf32>
    %300 = vector.extract %299[0, 0, 0, 0] : f32 from vector<1x1x1x1xf32>
    %cst_101 = arith.constant 3.200000e+01 : f32
    %301 = arith.divf %300, %cst_101 : f32
    %c2_102 = arith.constant 2 : index
    %302 = memref.load %arg12[%c2_102] : memref<4xf32, #tpu.memory_space<smem>>
    memref.store %301, %arg12[%c2_102] : memref<4xf32, #tpu.memory_space<smem>>
    %303 = math.log %289 : vector<2x16x1xf32>
    %304 = arith.mulf %287, %286 : vector<2x16x16xf32>
    %cst_103 = arith.constant dense<0.000000e+00> : vector<2x16xf32>
    %305 = vector.multi_reduction <add>, %304, %cst_103 [2] : vector<2x16x16xf32> to vector<2x16xf32>
    %306 = vector.shape_cast %305 : vector<2x16xf32> to vector<2x16x1xf32>
    %307 = arith.mulf %306, %291 : vector<2x16x1xf32>
    %308 = arith.subf %303, %307 : vector<2x16x1xf32>
    %309 = vector.shape_cast %308 : vector<2x16x1xf32> to vector<1x2x16x1xf32>
    %cst_104 = arith.constant dense<0.000000e+00> : vector<1xf32>
    %310 = vector.multi_reduction <add>, %309, %cst_104 [1, 2, 3] : vector<1x2x16x1xf32> to vector<1xf32>
    %311 = vector.shape_cast %310 : vector<1xf32> to vector<1x1x1x1xf32>
    %312 = vector.extract %311[0, 0, 0, 0] : f32 from vector<1x1x1x1xf32>
    %cst_105 = arith.constant 3.200000e+01 : f32
    %313 = arith.divf %312, %cst_105 : f32
    %c2_106 = arith.constant 2 : index
    %314 = memref.load %arg13[%c2_106] : memref<4xf32, #tpu.memory_space<smem>>
    memref.store %313, %arg13[%c2_106] : memref<4xf32, #tpu.memory_space<smem>>
    %315 = arith.mulf %289, %291 : vector<2x16x1xf32>
    %cst_107 = arith.constant 9.99999971E-10 : f32
    %316 = vector.broadcast %cst_107 : f32 to vector<2x16x1xf32>
    %317 = arith.addf %316, %315 : vector<2x16x1xf32>
    %318 = arith.divf %291, %317 : vector<2x16x1xf32>
    %319 = arith.truncf %287 : vector<2x16x16xf32> to vector<2x16x16xbf16>
    "tpu.trace_start"() <{level = 10 : i32, message = "bnm,bme->bne"}> : () -> ()
    %cst_108 = arith.constant dense<0.000000e+00> : vector<2x16x32xf32>
    %320 = tpu.matmul %319, %281, %cst_108 {dimension_numbers = #tpu.dot_dimension_numbers<[2], [1], [1], [2], [0, 0, 0, 1, 1, 2], [0], [0]>} : vector<2x16x16xbf16>, vector<2x16x32xbf16>, vector<2x16x32xf32> -> vector<2x16x32xf32>
    "tpu.trace_stop"() : () -> ()
    %321 = vector.broadcast %318 : vector<2x16x1xf32> to vector<2x16x32xf32>
    %322 = arith.mulf %320, %321 : vector<2x16x32xf32>
    %323 = arith.subf %268, %322 : vector<2x16x32xf32>
    %324 = vector.shape_cast %323 : vector<2x16x32xf32> to vector<32x32xf32>
    %325 = arith.truncf %324 : vector<32x32xf32> to vector<32x32xbf16>
    %c2_109 = arith.constant 2 : index
    %c0_110 = arith.constant 0 : index
    %c0_111 = arith.constant 0 : index
    %326 = vector.load %arg8[%c2_109, %c0_110, %c0_111] : memref<4x32x32xf32, #tpu.memory_space<vmem>>, vector<1x32x32xf32>
    %327 = vector.shape_cast %326 : vector<1x32x32xf32> to vector<32x32xf32>
    %328 = arith.truncf %327 : vector<32x32xf32> to vector<32x32xbf16>
    %cst_112 = arith.constant dense<0.000000e+00> : vector<32x32xf32>
    %329 = tpu.matmul %325, %328, %cst_112 {dimension_numbers = #tpu.dot_dimension_numbers<[1], [0], [0], [1], [0, 0, 1, 1], [], []>} : vector<32x32xbf16>, vector<32x32xbf16>, vector<32x32xf32> -> vector<32x32xf32>
    %330 = vector.shape_cast %329 : vector<32x32xf32> to vector<2x16x32xf32>
    %c2_113 = arith.constant 2 : index
    %c0_114 = arith.constant 0 : index
    %c0_115 = arith.constant 0 : index
    %331 = vector.load %arg9[%c2_113, %c0_114, %c0_115] : memref<4x1x32xf32, #tpu.memory_space<vmem>>, vector<1x1x32xf32>
    %332 = vector.shape_cast %331 : vector<1x1x32xf32> to vector<1x32xf32>
    %c2_116 = arith.constant 2 : index
    %c0_117 = arith.constant 0 : index
    %c0_118 = arith.constant 0 : index
    %333 = vector.load %arg10[%c2_116, %c0_117, %c0_118] : memref<4x1x32xf32, #tpu.memory_space<vmem>>, vector<1x1x32xf32>
    %334 = vector.shape_cast %333 : vector<1x1x32xf32> to vector<1x32xf32>
    %cst_119 = arith.constant dense<0.000000e+00> : vector<32xf32>
    %335 = vector.multi_reduction <add>, %330, %cst_119 [0, 1] : vector<2x16x32xf32> to vector<32xf32>
    %336 = vector.shape_cast %335 : vector<32xf32> to vector<1x1x32xf32>
    %cst_120 = arith.constant 3.200000e+01 : f32
    %337 = vector.broadcast %cst_120 : f32 to vector<1x1x32xf32>
    %338 = arith.divf %336, %337 : vector<1x1x32xf32>
    %339 = vector.broadcast %338 : vector<1x1x32xf32> to vector<2x16x32xf32>
    %340 = arith.subf %330, %339 : vector<2x16x32xf32>
    %341 = arith.mulf %340, %340 : vector<2x16x32xf32>
    %cst_121 = arith.constant dense<0.000000e+00> : vector<32xf32>
    %342 = vector.multi_reduction <add>, %341, %cst_121 [0, 1] : vector<2x16x32xf32> to vector<32xf32>
    %343 = vector.shape_cast %342 : vector<32xf32> to vector<1x1x32xf32>
    %cst_122 = arith.constant 3.200000e+01 : f32
    %344 = vector.broadcast %cst_122 : f32 to vector<1x1x32xf32>
    %345 = arith.divf %343, %344 : vector<1x1x32xf32>
    %346 = vector.broadcast %338 : vector<1x1x32xf32> to vector<2x16x32xf32>
    %347 = arith.subf %330, %346 : vector<2x16x32xf32>
    %348 = vector.shape_cast %332 : vector<1x32xf32> to vector<1x1x32xf32>
    %349 = vector.broadcast %348 : vector<1x1x32xf32> to vector<2x16x32xf32>
    %350 = arith.mulf %349, %347 : vector<2x16x32xf32>
    %cst_123 = arith.constant 9.99999974E-6 : f32
    %351 = vector.broadcast %cst_123 : f32 to vector<1x1x32xf32>
    %352 = arith.addf %345, %351 : vector<1x1x32xf32>
    %353 = math.rsqrt %352 : vector<1x1x32xf32>
    %354 = vector.broadcast %353 : vector<1x1x32xf32> to vector<2x16x32xf32>
    %355 = arith.mulf %350, %354 : vector<2x16x32xf32>
    %356 = vector.shape_cast %334 : vector<1x32xf32> to vector<1x1x32xf32>
    %357 = vector.broadcast %356 : vector<1x1x32xf32> to vector<2x16x32xf32>
    %358 = arith.addf %355, %357 : vector<2x16x32xf32>
    %cst_124 = arith.constant 0.000000e+00 : f32
    %359 = vector.broadcast %cst_124 : f32 to vector<2x16x32xf32>
    %360 = arith.maximumf %358, %359 : vector<2x16x32xf32>
    %361 = arith.addf %268, %360 : vector<2x16x32xf32>
    %362 = arith.addf %361, %30 : vector<2x16x32xf32>
    %363 = vector.shape_cast %362 : vector<2x16x32xf32> to vector<32x32xf32>
    %364 = arith.truncf %363 : vector<32x32xf32> to vector<32x32xbf16>
    %c3 = arith.constant 3 : index
    %c0_125 = arith.constant 0 : index
    %c0_126 = arith.constant 0 : index
    %365 = vector.load %arg7[%c3, %c0_125, %c0_126] : memref<4x32x96xf32, #tpu.memory_space<vmem>>, vector<1x32x96xf32>
    %366 = vector.shape_cast %365 : vector<1x32x96xf32> to vector<32x96xf32>
    %367 = arith.truncf %366 : vector<32x96xf32> to vector<32x96xbf16>
    %cst_127 = arith.constant dense<0.000000e+00> : vector<32x96xf32>
    %368 = tpu.matmul %364, %367, %cst_127 {dimension_numbers = #tpu.dot_dimension_numbers<[1], [0], [0], [1], [0, 0, 1, 1], [], []>} : vector<32x32xbf16>, vector<32x96xbf16>, vector<32x96xf32> -> vector<32x96xf32>
    %369 = vector.shape_cast %368 : vector<32x96xf32> to vector<2x16x96xf32>
    %370 = vector.extract_strided_slice %369 {offsets = [0, 0, 0], sizes = [2, 16, 32], strides = [1, 1, 1]} : vector<2x16x96xf32> to vector<2x16x32xf32>
    %371 = arith.truncf %370 : vector<2x16x32xf32> to vector<2x16x32xbf16>
    %372 = vector.extract_strided_slice %369 {offsets = [0, 0, 32], sizes = [2, 16, 32], strides = [1, 1, 1]} : vector<2x16x96xf32> to vector<2x16x32xf32>
    %373 = arith.truncf %372 : vector<2x16x32xf32> to vector<2x16x32xbf16>
    %374 = vector.extract_strided_slice %369 {offsets = [0, 0, 64], sizes = [2, 16, 32], strides = [1, 1, 1]} : vector<2x16x96xf32> to vector<2x16x32xf32>
    %375 = arith.truncf %374 : vector<2x16x32xf32> to vector<2x16x32xbf16>
    "tpu.trace_start"() <{level = 10 : i32, message = "bne,bme->bnm"}> : () -> ()
    %cst_128 = arith.constant dense<0.000000e+00> : vector<2x16x16xf32>
    %376 = tpu.matmul %371, %373, %cst_128 {dimension_numbers = #tpu.dot_dimension_numbers<[2], [2], [1], [1], [0, 0, 0, 1, 1, 1], [0], [0]>} : vector<2x16x32xbf16>, vector<2x16x32xbf16>, vector<2x16x16xf32> -> vector<2x16x16xf32>
    "tpu.trace_stop"() : () -> ()
    %cst_129 = arith.constant dense<0xFF800000> : vector<2x16xf32>
    %377 = vector.multi_reduction <maximumf>, %376, %cst_129 [2] : vector<2x16x16xf32> to vector<2x16xf32>
    %378 = vector.shape_cast %377 : vector<2x16xf32> to vector<2x16x1xf32>
    %379 = vector.broadcast %378 : vector<2x16x1xf32> to vector<2x16x16xf32>
    %380 = arith.subf %376, %379 : vector<2x16x16xf32>
    %381 = math.exp %380 : vector<2x16x16xf32>
    %cst_130 = arith.constant dense<0.000000e+00> : vector<2x16xf32>
    %382 = vector.multi_reduction <add>, %381, %cst_130 [2] : vector<2x16x16xf32> to vector<2x16xf32>
    %383 = vector.shape_cast %382 : vector<2x16xf32> to vector<2x16x1xf32>
    %cst_131 = arith.constant 1.000000e+00 : f32
    %384 = vector.broadcast %cst_131 : f32 to vector<2x16x1xf32>
    %385 = arith.divf %384, %383 : vector<2x16x1xf32>
    %386 = arith.extf %79 : vector<2x16x16xbf16> to vector<2x16x16xf32>
    %387 = arith.mulf %381, %386 : vector<2x16x16xf32>
    %cst_132 = arith.constant dense<0.000000e+00> : vector<2x16xf32>
    %388 = vector.multi_reduction <add>, %387, %cst_132 [2] : vector<2x16x16xf32> to vector<2x16xf32>
    %389 = vector.shape_cast %388 : vector<2x16xf32> to vector<2x16x1xf32>
    %390 = arith.mulf %389, %385 : vector<2x16x1xf32>
    %391 = vector.shape_cast %390 : vector<2x16x1xf32> to vector<1x2x16x1xf32>
    %cst_133 = arith.constant dense<0.000000e+00> : vector<1xf32>
    %392 = vector.multi_reduction <add>, %391, %cst_133 [1, 2, 3] : vector<1x2x16x1xf32> to vector<1xf32>
    %393 = vector.shape_cast %392 : vector<1xf32> to vector<1x1x1x1xf32>
    %394 = vector.extract %393[0, 0, 0, 0] : f32 from vector<1x1x1x1xf32>
    %cst_134 = arith.constant 3.200000e+01 : f32
    %395 = arith.divf %394, %cst_134 : f32
    %c3_135 = arith.constant 3 : index
    %396 = memref.load %arg12[%c3_135] : memref<4xf32, #tpu.memory_space<smem>>
    memref.store %395, %arg12[%c3_135] : memref<4xf32, #tpu.memory_space<smem>>
    %397 = math.log %383 : vector<2x16x1xf32>
    %398 = arith.mulf %381, %380 : vector<2x16x16xf32>
    %cst_136 = arith.constant dense<0.000000e+00> : vector<2x16xf32>
    %399 = vector.multi_reduction <add>, %398, %cst_136 [2] : vector<2x16x16xf32> to vector<2x16xf32>
    %400 = vector.shape_cast %399 : vector<2x16xf32> to vector<2x16x1xf32>
    %401 = arith.mulf %400, %385 : vector<2x16x1xf32>
    %402 = arith.subf %397, %401 : vector<2x16x1xf32>
    %403 = vector.shape_cast %402 : vector<2x16x1xf32> to vector<1x2x16x1xf32>
    %cst_137 = arith.constant dense<0.000000e+00> : vector<1xf32>
    %404 = vector.multi_reduction <add>, %403, %cst_137 [1, 2, 3] : vector<1x2x16x1xf32> to vector<1xf32>
    %405 = vector.shape_cast %404 : vector<1xf32> to vector<1x1x1x1xf32>
    %406 = vector.extract %405[0, 0, 0, 0] : f32 from vector<1x1x1x1xf32>
    %cst_138 = arith.constant 3.200000e+01 : f32
    %407 = arith.divf %406, %cst_138 : f32
    %c3_139 = arith.constant 3 : index
    %408 = memref.load %arg13[%c3_139] : memref<4xf32, #tpu.memory_space<smem>>
    memref.store %407, %arg13[%c3_139] : memref<4xf32, #tpu.memory_space<smem>>
    %409 = arith.mulf %383, %385 : vector<2x16x1xf32>
    %cst_140 = arith.constant 9.99999971E-10 : f32
    %410 = vector.broadcast %cst_140 : f32 to vector<2x16x1xf32>
    %411 = arith.addf %410, %409 : vector<2x16x1xf32>
    %412 = arith.divf %385, %411 : vector<2x16x1xf32>
    %413 = arith.truncf %381 : vector<2x16x16xf32> to vector<2x16x16xbf16>
    "tpu.trace_start"() <{level = 10 : i32, message = "bnm,bme->bne"}> : () -> ()
    %cst_141 = arith.constant dense<0.000000e+00> : vector<2x16x32xf32>
    %414 = tpu.matmul %413, %375, %cst_141 {dimension_numbers = #tpu.dot_dimension_numbers<[2], [1], [1], [2], [0, 0, 0, 1, 1, 2], [0], [0]>} : vector<2x16x16xbf16>, vector<2x16x32xbf16>, vector<2x16x32xf32> -> vector<2x16x32xf32>
    "tpu.trace_stop"() : () -> ()
    %415 = vector.broadcast %412 : vector<2x16x1xf32> to vector<2x16x32xf32>
    %416 = arith.mulf %414, %415 : vector<2x16x32xf32>
    %417 = arith.subf %362, %416 : vector<2x16x32xf32>
    %418 = vector.shape_cast %417 : vector<2x16x32xf32> to vector<32x32xf32>
    %419 = arith.truncf %418 : vector<32x32xf32> to vector<32x32xbf16>
    %c3_142 = arith.constant 3 : index
    %c0_143 = arith.constant 0 : index
    %c0_144 = arith.constant 0 : index
    %420 = vector.load %arg8[%c3_142, %c0_143, %c0_144] : memref<4x32x32xf32, #tpu.memory_space<vmem>>, vector<1x32x32xf32>
    %421 = vector.shape_cast %420 : vector<1x32x32xf32> to vector<32x32xf32>
    %422 = arith.truncf %421 : vector<32x32xf32> to vector<32x32xbf16>
    %cst_145 = arith.constant dense<0.000000e+00> : vector<32x32xf32>
    %423 = tpu.matmul %419, %422, %cst_145 {dimension_numbers = #tpu.dot_dimension_numbers<[1], [0], [0], [1], [0, 0, 1, 1], [], []>} : vector<32x32xbf16>, vector<32x32xbf16>, vector<32x32xf32> -> vector<32x32xf32>
    %424 = vector.shape_cast %423 : vector<32x32xf32> to vector<2x16x32xf32>
    %c3_146 = arith.constant 3 : index
    %c0_147 = arith.constant 0 : index
    %c0_148 = arith.constant 0 : index
    %425 = vector.load %arg9[%c3_146, %c0_147, %c0_148] : memref<4x1x32xf32, #tpu.memory_space<vmem>>, vector<1x1x32xf32>
    %426 = vector.shape_cast %425 : vector<1x1x32xf32> to vector<1x32xf32>
    %c3_149 = arith.constant 3 : index
    %c0_150 = arith.constant 0 : index
    %c0_151 = arith.constant 0 : index
    %427 = vector.load %arg10[%c3_149, %c0_150, %c0_151] : memref<4x1x32xf32, #tpu.memory_space<vmem>>, vector<1x1x32xf32>
    %428 = vector.shape_cast %427 : vector<1x1x32xf32> to vector<1x32xf32>
    %cst_152 = arith.constant dense<0.000000e+00> : vector<32xf32>
    %429 = vector.multi_reduction <add>, %424, %cst_152 [0, 1] : vector<2x16x32xf32> to vector<32xf32>
    %430 = vector.shape_cast %429 : vector<32xf32> to vector<1x1x32xf32>
    %cst_153 = arith.constant 3.200000e+01 : f32
    %431 = vector.broadcast %cst_153 : f32 to vector<1x1x32xf32>
    %432 = arith.divf %430, %431 : vector<1x1x32xf32>
    %433 = vector.broadcast %432 : vector<1x1x32xf32> to vector<2x16x32xf32>
    %434 = arith.subf %424, %433 : vector<2x16x32xf32>
    %435 = arith.mulf %434, %434 : vector<2x16x32xf32>
    %cst_154 = arith.constant dense<0.000000e+00> : vector<32xf32>
    %436 = vector.multi_reduction <add>, %435, %cst_154 [0, 1] : vector<2x16x32xf32> to vector<32xf32>
    %437 = vector.shape_cast %436 : vector<32xf32> to vector<1x1x32xf32>
    %cst_155 = arith.constant 3.200000e+01 : f32
    %438 = vector.broadcast %cst_155 : f32 to vector<1x1x32xf32>
    %439 = arith.divf %437, %438 : vector<1x1x32xf32>
    %440 = vector.broadcast %432 : vector<1x1x32xf32> to vector<2x16x32xf32>
    %441 = arith.subf %424, %440 : vector<2x16x32xf32>
    %442 = vector.shape_cast %426 : vector<1x32xf32> to vector<1x1x32xf32>
    %443 = vector.broadcast %442 : vector<1x1x32xf32> to vector<2x16x32xf32>
    %444 = arith.mulf %443, %441 : vector<2x16x32xf32>
    %cst_156 = arith.constant 9.99999974E-6 : f32
    %445 = vector.broadcast %cst_156 : f32 to vector<1x1x32xf32>
    %446 = arith.addf %439, %445 : vector<1x1x32xf32>
    %447 = math.rsqrt %446 : vector<1x1x32xf32>
    %448 = vector.broadcast %447 : vector<1x1x32xf32> to vector<2x16x32xf32>
    %449 = arith.mulf %444, %448 : vector<2x16x32xf32>
    %450 = vector.shape_cast %428 : vector<1x32xf32> to vector<1x1x32xf32>
    %451 = vector.broadcast %450 : vector<1x1x32xf32> to vector<2x16x32xf32>
    %452 = arith.addf %449, %451 : vector<2x16x32xf32>
    %cst_157 = arith.constant 0.000000e+00 : f32
    %453 = vector.broadcast %cst_157 : f32 to vector<2x16x32xf32>
    %454 = arith.maximumf %452, %453 : vector<2x16x32xf32>
    %455 = arith.addf %362, %454 : vector<2x16x32xf32>
    %456 = tpu.concatenate %173, %267, %361, %455 in 2 : vector<2x16x32xf32>, vector<2x16x32xf32>, vector<2x16x32xf32>, vector<2x16x32xf32> -> vector<2x16x128xf32>
    %457 = tpu.transpose %456, [0, 2, 1] : vector<2x16x128xf32> -> vector<2x128x16xf32>
    %c0_158 = arith.constant 0 : index
    %c0_159 = arith.constant 0 : index
    %c0_160 = arith.constant 0 : index
    %458 = vector.load %arg11[%c0_158, %c0_159, %c0_160] : memref<2x128x16xf32, #tpu.memory_space<vmem>>, vector<2x128x16xf32>
    tpu.vector_store %arg11[%c0_158, %c0_159, %c0_160], %457 {strides = array<i32>} : memref<2x128x16xf32, #tpu.memory_space<vmem>>, vector<2x128x16xf32>,
    return
  }
}

</mosaic_0001>

<bundles_post_ra>
// kernel: tpu_custom_call.1
= control target key start
LH: loop header
LB: loop body
LE: loop exit
PB: predicated region body
PF: predicated region fallthrough
CT: control target
= control target key end

     0   :  { %19 = vsyncpa [#allocation3], 0  ;;  %s5178_s0 = inlined_call_operand.vmem [shape: f32[2,32,16], index: 0, kind: input, shape index: {}]   ;;  %s5179_s1 = inlined_call_operand.vmem [shape: f32[2,16,3], index: 1, kind: input, shape index: {}]   ;;  %s5180_s2 = inlined_call_operand.vmem [shape: f32[32,32], index: 2, kind: input, shape index: {}]   ;;  %s5181_s3 = inlined_call_operand.hbm [shape: f32[1,32], index: 3, kind: input, shape index: {}]   ;;  %s5182_s4 = inlined_call_operand.hbm [shape: f32[1,32], index: 4, kind: input, shape index: {}]   ;;  %s5183_s5 = inlined_call_operand.hbm [shape: f32[3,32], index: 5, kind: input, shape index: {}]   ;;  %s5184_s6 = inlined_call_operand.hbm [shape: f32[1,32], index: 6, kind: input, shape index: {}]   ;;  %s5185_s7 = inlined_call_operand.vmem [shape: f32[4,32,96], index: 7, kind: input, shape index: {}]   ;;  %s5186_s8 = inlined_call_operand.hbm [shape: f32[4,32,32], index: 8, kind: input, shape index: {}]   ;;  %s5187_s9 = inlined_call_operand.vmem [shape: f32[4,1,32], index: 9, kind: input, shape index: {}]   ;;  %s5188_s10 = inlined_call_operand.vmem [shape: f32[4,1,32], index: 10, kind: input, shape index: {}]   ;;  %s5189_s11 = inlined_call_operand.vmem [shape: f32[2,128,16], index: 11, kind: output, shape index: {0}]   ;;  %s5190_s12 = inlined_call_operand.hbm [shape: f32[4], index: 12, kind: output, shape index: {1}]   ;;  %s5191_s13 = inlined_call_operand.hbm [shape: f32[4], index: 13, kind: output, shape index: {2}]  }
   0x1   :  { %20 = vsyncpa [#allocation6], 0 }
   0x2   :  { %21 = vsyncpa [#allocation9], 0 }
   0x3   :  { %22 = vsyncpa [#allocation4], 0 }
   0x4   :  { %23 = vsyncpa [#allocation13], 0  ;;  %s3846_s25 = smov [#allocation5]   ;;  %s3847_s27 = smov [#allocation8]  }
   0x5   :  { %s46_s26 = sshll.u32 %s3846_s25, 4  ;;  %s66_s28 = sshll.u32 %s3847_s27, 4  ;;  %s47_s26 = int_to_ptr.vmem [resolvable:$true] %s46_s26  ;;  %s67_s28 = int_to_ptr.vmem [resolvable:$true] %s66_s28 }
   0x6   :  { %s3706_s14 = scalar_lea.hbm %s5182_s4, 16 }
   0x7   :  { %p3707_p0 = scmp.ne.s32.totalorder %s5182_s4, %s3706_s14  ;;  %p3710_p1 = scmp.lt.u32.totalorder %s3706_s14, %s5182_s4 }
   0x9   :  { %p3712_p2 = pnand %p3710_p1, %p3707_p0 }
   0xb   :  { %3715 = shalt.err (!%p3712_p2)
}
   0xc   :  { %s3716_s19 = scalar_lea.vmem %s47_s26, 16  ;;  %s3720_s20 = scalar_lea.vmem %s47_s26, 32 }
   0xd   :  { %p3717_p3 = scmp.ne.s32.totalorder %s47_s26, %s3716_s19  ;;  %p3721_p4 = scmp.lt.s32.totalorder %s47_s26, %s47_s26 }
   0xe   :  { %p3722_p5 = scmp.lt.s32.totalorder %s3720_s20, %s3716_s19 }
  0x10   :  { %p3723_p6 = por %p3722_p5, %p3721_p4 }
  0x12   :  { %p3724_p7 = pnand %p3723_p6, %p3717_p3 }
  0x14   :  { %3727 = shalt.err (!%p3724_p7)
}
  0x15   :  { %49 = dma.hbm_to_vmem [thread:$0]  %s5182_s4, 16, %s47_s26, [#allocation6]  }
  0x16   :  { %s3728_s25 = scalar_lea.hbm %s5184_s6, 16 }
  0x17   :  { %p3729_p8 = scmp.ne.s32.totalorder %s5184_s6, %s3728_s25  ;;  %p3732_p9 = scmp.lt.u32.totalorder %s3728_s25, %s5184_s6 }
  0x19   :  { %p3734_p10 = pnand %p3732_p9, %p3729_p8 }
  0x1b   :  { %3737 = shalt.err (!%p3734_p10)
}
  0x1c   :  { %s3738_s15 = scalar_lea.vmem %s67_s28, 16  ;;  %s3742_s16 = scalar_lea.vmem %s67_s28, 32 }
  0x1d   :  { %p3739_p11 = scmp.ne.s32.totalorder %s67_s28, %s3738_s15  ;;  %p3743_p12 = scmp.lt.s32.totalorder %s67_s28, %s67_s28 }
  0x1e   :  { %p3744_p13 = scmp.lt.s32.totalorder %s3742_s16, %s3738_s15 }
  0x20   :  { %p3745_p0 = por %p3744_p13, %p3743_p12 }
  0x22   :  { %p3746_p1 = pnand %p3745_p0, %p3739_p11 }
  0x24   :  { %3749 = shalt.err (!%p3746_p1)
}
  0x25   :  { %69 = dma.hbm_to_vmem [thread:$0]  %s5184_s6, 16, %s67_s28, [#allocation9]  }
  0x26   :  { %s3848_s17 = smov [#allocation2]   ;;  %s3849_s19 = smov [#allocation7]  }
  0x27   :  { %s36_s18 = sshll.u32 %s3848_s17, 4  ;;  %s56_s20 = sshll.u32 %s3849_s19, 4  ;;  %s37_s18 = int_to_ptr.vmem [resolvable:$true] %s36_s18  ;;  %s57_s20 = int_to_ptr.vmem [resolvable:$true] %s56_s20 }
  0x28   :  { %s3750_s23 = scalar_lea.hbm %s5181_s3, 16 }
  0x29   :  { %p3751_p2 = scmp.ne.s32.totalorder %s5181_s3, %s3750_s23  ;;  %p3754_p3 = scmp.lt.u32.totalorder %s3750_s23, %s5181_s3 }
  0x2b   :  { %p3756_p4 = pnand %p3754_p3, %p3751_p2 }
  0x2d   :  { %3759 = shalt.err (!%p3756_p4)
}
  0x2e   :  { %s3760_s6 = scalar_lea.vmem %s37_s18, 16  ;;  %s3764_s28 = scalar_lea.vmem %s37_s18, 32 }
  0x2f   :  { %p3761_p5 = scmp.ne.s32.totalorder %s37_s18, %s3760_s6  ;;  %p3765_p6 = scmp.lt.s32.totalorder %s37_s18, %s37_s18 }
  0x30   :  { %p3766_p7 = scmp.lt.s32.totalorder %s3764_s28, %s3760_s6 }
  0x32   :  { %p3767_p8 = por %p3766_p7, %p3765_p6 }
  0x34   :  { %p3768_p9 = pnand %p3767_p8, %p3761_p5 }
  0x36   :  { %3771 = shalt.err (!%p3768_p9)
}
  0x37   :  { %39 = dma.hbm_to_vmem [thread:$0]  %s5181_s3, 16, %s37_s18, [#allocation3]  }
  0x38   :  { %s3772_s4 = scalar_lea.hbm %s5183_s5, 64 }
  0x39   :  { %p3773_p10 = scmp.ne.s32.totalorder %s5183_s5, %s3772_s4  ;;  %p3776_p11 = scmp.lt.u32.totalorder %s3772_s4, %s5183_s5 }
  0x3b   :  { %p3778_p12 = pnand %p3776_p11, %p3773_p10 }
  0x3d   :  { %3781 = shalt.err (!%p3778_p12)
}
  0x3e   :  { %s3782_s22 = scalar_lea.vmem %s57_s20, 64  ;;  %p3787_p0 = scmp.lt.s32.totalorder %s57_s20, %s57_s20 }
  0x3f   :  { %p3783_p13 = scmp.ne.s32.totalorder %s57_s20, %s3782_s22  ;;  %p3788_p1 = scmp.lt.s32.totalorder %s3782_s22, %s3782_s22 }
  0x41   :  { %p3789_p2 = por %p3788_p1, %p3787_p0 }
  0x43   :  { %p3790_p3 = pnand %p3789_p2, %p3783_p13 }
  0x45   :  { %3793 = shalt.err (!%p3790_p3)
}
  0x46   :  { %59 = dma.hbm_to_vmem [thread:$0]  %s5183_s5, 64, %s57_s20, [#allocation6]  }
  0x47   :  { %s3850_s23 = smov [#allocation10]   ;;  %s3794_s29 = scalar_lea.hbm %s5186_s8, 2048 }
  0x48   :  { %s77_s24 = sshll.u32 %s3850_s23, 4  ;;  %p3795_p4 = scmp.ne.s32.totalorder %s5186_s8, %s3794_s29  ;;  %s78_s24 = int_to_ptr.vmem [resolvable:$true] %s77_s24 }
  0x49   :  { %p3798_p5 = scmp.lt.u32.totalorder %s3794_s29, %s5186_s8 }
  0x4b   :  { %p3800_p6 = pnand %p3798_p5, %p3795_p4 }
  0x4d   :  { %3803 = shalt.err (!%p3800_p6)
}
  0x4e   :  { %s3804_s15 = scalar_lea.vmem %s78_s24, 2048  ;;  %p3809_p8 = scmp.lt.s32.totalorder %s78_s24, %s78_s24 }
  0x4f   :  { %p3805_p7 = scmp.ne.s32.totalorder %s78_s24, %s3804_s15  ;;  %p3810_p9 = scmp.lt.s32.totalorder %s3804_s15, %s3804_s15 }
  0x51   :  { %p3811_p10 = por %p3810_p9, %p3809_p8 }
  0x53   :  { %p3812_p11 = pnand %p3811_p10, %p3805_p7 }
  0x55   :  { %3815 = shalt.err (!%p3812_p11)
}
  0x56   :  { %s3851_s5 = smov 128   ;;  %s3852_s20 = smov 8  }
  0x57   :  { %83 = dma.hbm_to_vmem [thread:$0]  %s5186_s8, 2048, %s78_s24, [#allocation9], %s3851_s5, %s3851_s5, %s3852_s20  }
  0x58   :  { %3836 = dma.done.wait [#allocation3], 16  }
  0x59   :  { %3837 = vsyncadd [#allocation3], 4294967280 }
  0x5a   :  { %3838 = dma.done.wait [#allocation6], 80  }
  0x5b   :  { %3839 = vsyncadd [#allocation6], 4294967216 }
  0x5c   :  { %3840 = dma.done.wait [#allocation9], 2064  }
  0x5d   :  { %3841 = vsyncadd [#allocation9], 4294965232  ;;  %v104_v0 = vld [vmem:[%s5178_s0] sm:$0xff]  ;;  %v105_v2 = vld [vmem:[%s5178_s0 + $0x8] sm:$0xff]  ;;  %v3853_v19 = vmov 0   ;;  %v3854_v21 = vmov 1   ;;  %v202_v33 = vlaneseq }
  0x5e   :  { %v108_v1 = vld [vmem:[%s5178_s0 + $0x20] sm:$0xff]  ;;  %v109_v4 = vld [vmem:[%s5178_s0 + $0x28] sm:$0xff]  ;;  %v106_v8 = vld [vmem:[%s5178_s0 + $0x10] sm:$0xff]  ;;  %3553 = vset.pattern.permute.xlu1 %v3853_v19  ;;  %v3855_v22 = vmov 2   ;;  %vm284_vm0 = vcmask 261120   ;;  %vm3857_vm2 = vmmov 0  }
  0x5f   :  { %v3535_v3 = vpack.i.bf16 %v108_v1, %v104_v0  ;;  %v278_v5 = vld [vmem:[%s5180_s2] sm:$0xff]  ;;  %v3537_v6 = vpack.i.bf16 %v109_v4, %v105_v2  ;;  %v279_v7 = vld [vmem:[%s5180_s2 + $0x8] sm:$0xff]  ;;  %v110_v9 = vld [vmem:[%s5178_s0 + $0x30] sm:$0xff]  ;;  %v203_v35 = vshrl.u32 %v202_v33, 7  ;;  %s3858_s30 = smov 96   ;;  %vm874_vm3 = vcmask 130048  }
  0x60   :  { %v282_v10 = vpack.c.bf16 %v279_v7, %v278_v5  ;;  %v280_v11 = vld [vmem:[%s5180_s2 + $0x10] sm:$0xff]  ;;  %v281_v12 = vld [vmem:[%s5180_s2 + $0x18] sm:$0xff]  ;;  %v3539_v13 = vpack.i.bf16 %v110_v9, %v106_v8  ;;  %v176_v18 = vld [vmem:[%s5179_s1] sm:$0xff]  ;;  %s3859_s14 = smov 64   ;;  %vm943_vm12 = vcmask 7168   ;;  %vm3023_vm13 = vcmask 523264  }
  0x61   :  { %3536 = vxpose.xlu0.b32.start [1/4] (short) (narrow) %v3535_v3, 16  ;;  %v283_v14 = vpack.c.bf16 %v281_v12, %v280_v11  ;;  %v107_v15 = vld [vmem:[%s5178_s0 + $0x18] sm:$0xff]  ;;  %184 = vperm.xlu1 %3553, %v176_v18   ;;  %v177_v20 = vld [vmem:[%s5179_s1 + $0x8] sm:$0xff]  ;;  %v178_v23 = vld [vmem:[%s5179_s1 + $0x10] sm:$0xff]  ;;  %v4043_v36 = vsub.s32 0, %v203_v35  ;;  %v238_v44 = vsub.s32 1, %v203_v35 }
  0x62   :  { %3308 = vmatprep.subr.bf16.mxu0 %v282_v10  ;;  %v111_v16 = vld [vmem:[%s5178_s0 + $0x38] sm:$0xff]  ;;  %v180_v38 = vld [vmem:[#allocation7] sm:$0x7]  ;;  %v3161_v43 = vld [vmem:[#allocation8] ss:$0 sm:$0xff]  ;;  %v266_v49 = vsub.s32 2, %v203_v35 }
  0x63   :  { %3309 = vmatpush3.bf16.msra.mxu0 %v282_v10  ;;  %v3541_v17 = vpack.i.bf16 %v111_v16, %v107_v15  ;;  %v179_v24 = vld [vmem:[%s5179_s1 + $0x18] sm:$0xff]  ;;  %v205_v39 = vrot.slane %v180_v38, %v4043_v36  ;;  %v239_v48 = vrot.slane %v180_v38, %v238_v44  ;;  %vm4056_vm1 = vmpackc.low %vm284_vm0, %vm284_vm0  ;;  %vm3028_vm14 = vcmask 785408   ;;  %s3816_s21 = scalar_lea.hbm %s5190_s12, 16 }
  0x64   :  { %3310 = vmatprep.subr.bf16.mxu0 %v283_v14  ;;  %v267_v52 = vrot.slane %v180_v38, %v266_v49  ;;  %p3817_p12 = scmp.ne.s32.totalorder %s5190_s12, %s3816_s21  ;;  %p3820_p13 = scmp.lt.u32.totalorder %s3816_s21, %s5190_s12 }
  0x65   :  { %3538 = vxpose.xlu0.b32.cont [2/4] (short) (narrow) %v3537_v6, 16  ;;  %189 = vperm.xlu1 %3553, %v177_v20  }
  0x66   :  { %p3822_p0 = pnand %p3820_p13, %p3817_p12 }
  0x67   :  { %3311 = vmatpush3.bf16.msra.mxu0 %v283_v14 }
  0x69   :  { %3540 = vxpose.xlu0.b32.cont [3/4] (short) (narrow) %v3539_v13, 16  ;;  %3554 = vset.pattern.permute.xlu1 %v3854_v21 }
  0x6a   :  { %221 = vperm.xlu1 %3554, %v176_v18  }
  0x6d   :  { %3542 = vxpose.xlu0.b32.end [4/4] (short) (narrow) %v3541_v17, 16 }
  0x6e   :  { %225 = vperm.xlu1 %3554, %v177_v20  }
  0x72   :  { %3556 = vset.pattern.permute.xlu1 %v3855_v22 }
  0x73   :  { %253 = vperm.xlu1 %3556, %v177_v20  }
  0x77   :  { %3557 = vset.pattern.permute.xlu1 %v3853_v19  ;;  %v712_v19 = vld [vmem:[%s5185_s7 + $0x8] sm:$0xff] }
  0x78   :  { %194 = vperm.xlu1 %3557, %v178_v23  }
  0x7c   :  { %199 = vperm.xlu1 %3557, %v179_v24  }
  0x80   :  { %3558 = vset.pattern.permute.xlu1 %v3854_v21  ;;  %v713_v21 = vld [vmem:[%s5185_s7 + $0x10] sm:$0xff] }
  0x81   :  { %229 = vperm.xlu1 %3558, %v178_v23  }
  0x85   :  { %233 = vperm.xlu1 %3558, %v179_v24  }
  0x89   :  { %3559 = vset.pattern.permute.xlu1 %v3855_v22 }
  0x8a   :  { %257 = vperm.xlu1 %3559, %v178_v23  }
  0x8e   :  { %261 = vperm.xlu1 %3559, %v179_v24  }
  0x96   :  { %3555 = vset.pattern.permute.xlu0 %v3855_v22  ;;  %v714_v22 = vld [vmem:[%s5185_s7 + $0x18] sm:$0xff] }
  0x97   :  { %249 = vperm.xlu0 %3555, %v176_v18   ;;  %v711_v18 = vld [vmem:[%s5185_s7] sm:$0xff]  ;;  %v716_v23 = vpack.c.bf16 %v714_v22, %v713_v21 }
  0x98   :  { %v715_v20 = vpack.c.bf16 %v712_v19, %v711_v18 }
  0xe0   :  { %v185_v34 = vpop.permute.xlu1 %184 }
  0xe1   :  { %v3543_v25 = vpop.trf.xlu0  ;;  %v206_v41 = vmul.f32 %v205_v39, %v185_v34 }
  0xe2   :  { %v3547_v26 = vunpack.i.h.bf16 %v3543_v25  ;;  %v3544_v28 = vunpack.i.l.bf16 %v3543_v25 }
  0xe3   :  { %v216_v46 = vadd.f32 %v3161_v43, %v206_v41 }
  0xe4   :  { %v190_v37 = vpop.permute.xlu1 %189 }
  0xe5   :  { %v3548_v27 = vpop.trf.xlu0  ;;  %v207_v42 = vmul.f32 %v205_v39, %v190_v37 }
  0xe6   :  { %v3552_v29 = vunpack.i.h.bf16 %v3548_v27  ;;  %v3549_v30 = vunpack.i.l.bf16 %v3548_v27 }
  0xe7   :  { %v217_v47 = vadd.f32 %v3161_v43, %v207_v42 }
  0xe8   :  { %v276_v31 = vpack.c.bf16 %v3549_v30, %v3544_v28  ;;  %v277_v32 = vpack.c.bf16 %v3552_v29, %v3547_v26 }
  0xe9   :  { %v222_v40 = vpop.permute.xlu1 %221 }
  0xea   :  { %3312 = vmatprep.mubr.msk.bf16.mxu0 %vm284_vm0, %v276_v31  ;;  %v240_v50 = vmul.f32 %v239_v48, %v222_v40 }
  0xeb   :  { %3313 = vmatmul.mubr.msk.bf16.vlgmr.msra.gmra.mrb[0].mxu0 %vm284_vm0, %v277_v32 }
  0xec   :  { %v244_v55 = vadd.f32 %v240_v50, %v216_v46 }
  0xed   :  { %v226_v45 = vpop.permute.xlu1 %225 }
  0xee   :  { %v241_v51 = vmul.f32 %v239_v48, %v226_v45 }
  0xf0   :  { %v245_v56 = vadd.f32 %v241_v51, %v217_v47 }
  0xf2   :  { %v254_v53 = vpop.permute.xlu1 %253 }
  0xf3   :  { %v269_v57 = vmul.f32 %v267_v52, %v254_v53 }
  0xf5   :  { %v4046_v59 = vadd.f32 %v269_v57, %v245_v56 }
  0xf7   :  { %v195_v61 = vpop.permute.xlu1 %194 }
  0xf8   :  { %v208_v4 = vmul.f32 %v205_v39, %v195_v61 }
  0xfa   :  { %v218_v6 = vadd.f32 %v3161_v43, %v208_v4  ;;  %v3164_v4 = vld [vmem:[#allocation2] ss:$0 sm:$0xff] }
  0xfb   :  { %v200_v0 = vpop.permute.xlu1 %199 }
  0xfc   :  { %v209_v5 = vmul.f32 %v205_v39, %v200_v0 }
  0xfe   :  { %v219_v7 = vadd.f32 %v3161_v43, %v209_v5 }
 0x100   :  { %v230_v1 = vpop.permute.xlu1 %229 }
 0x101   :  { %v242_v8 = vmul.f32 %v239_v48, %v230_v1 }
 0x103   :  { %v246_v11 = vadd.f32 %v242_v8, %v218_v6 }
 0x104   :  { %v234_v2 = vpop.permute.xlu1 %233 }
 0x105   :  { %v243_v9 = vmul.f32 %v239_v48, %v234_v2 }
 0x107   :  { %v247_v12 = vadd.f32 %v243_v9, %v219_v7 }
 0x109   :  { %v258_v3 = vpop.permute.xlu1 %257 }
 0x10a   :  { %v270_v13 = vmul.f32 %v267_v52, %v258_v3 }
 0x10c   :  { %v4066_v15 = vadd.f32 %v270_v13, %v246_v11 }
 0x10d   :  { %v262_v10 = vpop.permute.xlu1 %261 }
 0x10e   :  { %v271_v14 = vmul.f32 %v267_v52, %v262_v10  ;;  %3327 = vmatprep.mubr.msk.f32.mxu0 %vm284_vm0, %v4066_v15  ;;  %v3165_v10 = vld [vmem:[#allocation5] ss:$0 sm:$0xff] }
 0x110   :  { %v4068_v16 = vadd.f32 %v271_v14, %v247_v12 }
 0x112   :  { %v3496_v17 = vpack.c.bf16 %v4068_v16, %v4066_v15 }
 0x114   :  { %3498 = vmatprep.subr.msk.bf16.mxu0 %vm4056_vm1, %v3496_v17 }
 0x115   :  { %3501 = vmatpush3.bf16.xpose.msk.msra.mxu0 %vm4056_vm1, %v3496_v17 }
 0x116   :  { %v250_v54 = vpop.permute.xlu0 %249 }
 0x117   :  { %v268_v58 = vmul.f32 %v267_v52, %v250_v54 }
 0x119   :  { %v4048_v60 = vadd.f32 %v268_v58, %v244_v55 }
 0x11b   :  { %v3490_v62 = vpack.c.bf16 %v4046_v59, %v4048_v60  ;;  %3320 = vmatprep.mubr.msk.f32.mxu1 %vm284_vm0, %v4048_v60 }
 0x11c   :  { %3328 = vmatmul.mubr.msk.f32.vlgmr.msra.gmra.mrb[4].mxu0 %vm284_vm0, %v4068_v16 }
 0x11d   :  { %3492 = vmatprep.subr.msk.bf16.mxu1 %vm4056_vm1, %v3490_v62 }
 0x11e   :  { %3495 = vmatpush3.bf16.xpose.msk.msra.mxu1 %vm4056_vm1, %v3490_v62 }
 0x11f   :  { %3330 = vmatprep.subr.bf16.mxu1 %v715_v20 }
 0x125   :  { %3321 = vmatmul.mubr.msk.f32.vlgmr.msra.gmra.mrb[0].mxu1 %vm284_vm0, %v4046_v59 }
 0x126   :  { %3331 = vmatpush3.bf16.msra.mxu1 %v715_v20 }
 0x127   :  { %3332 = vmatprep.subr.bf16.mxu1 %v716_v23 }
 0x12a   :  { %3333 = vmatpush3.bf16.msra.mxu1 %v716_v23 }
 0x1be   :  { %v3314_v24 = vpop.f32.mrb[0].mxu0 }
 0x1bf   :  { %v325_v25 = vpop.f32.mrb[1].mxu0  ;;  %v345_v31 = vsel %vm284_vm0, %v3314_v24, 0.0 }
 0x1c0   :  { %v3315_v26 = vpop.f32.mrb[2].mxu0  ;;  %v342_v28 = vsel %vm284_vm0, %v325_v25, 0.0 }
 0x1c1   :  { %v328_v27 = vpop.f32.mrb[3].mxu0  ;;  %v347_v33 = vsel %vm284_vm0, %v3315_v26, 0.0 }
 0x1c2   :  { %v343_v29 = vsel %vm284_vm0, %v328_v27, 0.0 }
 0x1c3   :  { %v344_v30 = vadd.f32 %v343_v29, %v342_v28 }
 0x1c5   :  { %v346_v32 = vadd.f32 %v345_v31, %v344_v30 }
 0x1c7   :  { %v348_v34 = vadd.f32 %v347_v33, %v346_v32 }
 0x1c9   :  { %v349_v35 = vrot.slane %v348_v34, 4 }
 0x1cb   :  { %v350_v37 = vadd.f32 %v349_v35, %v348_v34  ;;  %v5192_v35 = vmov 0.0  }
 0x1cc   :  { %3338 = vmatprep.subr.bf16.mxu0 %v5192_v35  ;;  %3344 = vmatprep.subr.bf16.mxu1 %v5192_v35 }
 0x1cd   :  { %v351_v38 = vrot.slane %v350_v37, 2  ;;  %3340 = vmatprep.mubr.msk.bf16.mxu0 %vm3857_vm2, %v5192_v35 }
 0x1cf   :  { %v352_v39 = vadd.f32 %v351_v38, %v350_v37 }
 0x1d1   :  { %v353_v40 = vrot.slane %v352_v39, 1 }
 0x1d3   :  { %v354_v41 = vadd.f32 %v353_v40, %v352_v39 }
 0x1d5   :  { %v356_v42 = vmul.f32 0.03125, %v354_v41 }
 0x1d7   :  { %v357_v43 = vsub.f32 %v325_v25, %v356_v42  ;;  %v358_v44 = vsub.f32 %v328_v27, %v356_v42  ;;  %v359_v45 = vsub.f32 %v3314_v24, %v356_v42  ;;  %v360_v46 = vsub.f32 %v3315_v26, %v356_v42 }
 0x1d9   :  { %v361_v47 = vmul.f32 %v357_v43, %v357_v43  ;;  %v362_v48 = vmul.f32 %v358_v44, %v358_v44  ;;  %v363_v49 = vmul.f32 %v359_v45, %v359_v45  ;;  %v364_v50 = vmul.f32 %v360_v46, %v360_v46 }
 0x1da   :  { %v385_v5 = vmul.f32 %v3164_v4, %v357_v43  ;;  %v386_v6 = vmul.f32 %v3164_v4, %v358_v44  ;;  %v387_v7 = vmul.f32 %v3164_v4, %v359_v45  ;;  %v388_v8 = vmul.f32 %v3164_v4, %v360_v46 }
 0x1db   :  { %v365_v51 = vsel %vm284_vm0, %v361_v47, 0.0  ;;  %v366_v52 = vsel %vm284_vm0, %v362_v48, 0.0  ;;  %v368_v54 = vsel %vm284_vm0, %v363_v49, 0.0  ;;  %v370_v56 = vsel %vm284_vm0, %v364_v50, 0.0 }
 0x1dc   :  { %v367_v53 = vadd.f32 %v366_v52, %v365_v51 }
 0x1de   :  { %v369_v55 = vadd.f32 %v368_v54, %v367_v53 }
 0x1e0   :  { %v371_v57 = vadd.f32 %v370_v56, %v369_v55 }
 0x1e2   :  { %v372_v58 = vrot.slane %v371_v57, 4 }
 0x1e4   :  { %v373_v61 = vadd.f32 %v372_v58, %v371_v57 }
 0x1e6   :  { %v374_v62 = vrot.slane %v373_v61, 2 }
 0x1e8   :  { %v375_v63 = vadd.f32 %v374_v62, %v373_v61 }
 0x1ea   :  { %v376_v0 = vrot.slane %v375_v63, 1 }
 0x1ec   :  { %v377_v1 = vadd.f32 %v376_v0, %v375_v63 }
 0x1ee   :  { %v378_v2 = vmul.f32 0.03125, %v377_v1 }
 0x1ef   :  { %v4122_v33 = vpop.f32.mrb[4].mxu0 }
 0x1f0   :  { %v389_v3 = vadd.f32 1e-05, %v378_v2  ;;  %v4124_v34 = vpop.f32.mrb[5].mxu0 }
 0x1f2   :  { %3560 = vrsqrt.f32 %v389_v3 }
 0x1f8   :  { %v4118_v31 = vpop.f32.mrb[0].mxu1 }
 0x1f9   :  { %v4120_v32 = vpop.f32.mrb[1].mxu1 }
 0x1fc   :  { %v3561_v9 = vpop.eup %3560 }
 0x1fd   :  { %v391_v11 = vmul.f32 %v3561_v9, %v385_v5  ;;  %v392_v12 = vmul.f32 %v3561_v9, %v386_v6  ;;  %v393_v13 = vmul.f32 %v3561_v9, %v387_v7  ;;  %v394_v14 = vmul.f32 %v3561_v9, %v388_v8 }
 0x1ff   :  { %v402_v17 = vadd.f32 %v3165_v10, %v392_v12  ;;  %v403_v18 = vadd.f32 %v3165_v10, %v393_v13  ;;  %v404_v19 = vadd.f32 %v3165_v10, %v394_v14  ;;  %v401_v20 = vadd.f32 %v3165_v10, %v391_v11 }
 0x201   :  { %v406_v21 = vmax.f32 %v402_v17, 0.0  ;;  %v407_v22 = vmax.f32 %v403_v18, 0.0  ;;  %v408_v23 = vmax.f32 %v404_v19, 0.0  ;;  %v405_v24 = vmax.f32 %v401_v20, 0.0 }
 0x203   :  { %v4101_v25 = vadd.f32 %v405_v24, %v4048_v60  ;;  %v4104_v26 = vadd.f32 %v406_v21, %v4046_v59  ;;  %v4107_v27 = vadd.f32 %v407_v22, %v4066_v15  ;;  %v4110_v28 = vadd.f32 %v408_v23, %v4068_v16  ;;  %v1140_v23 = vld [vmem:[#allocation10] sm:$0xff]  ;;  %v1141_v24 = vld [vmem:[#allocation10 + $0x8] sm:$0xff] }
 0x205   :  { %v709_v29 = vpack.c.bf16 %v4104_v26, %v4101_v25  ;;  %v710_v30 = vpack.c.bf16 %v4110_v28, %v4107_v27 }
 0x207   :  { %3334 = vmatprep.mubr.msk.bf16.mxu1 %vm284_vm0, %v709_v29  ;;  %v1144_v29 = vpack.c.bf16 %v1141_v24, %v1140_v23 }
 0x208   :  { %3335 = vmatmul.mubr.msk.bf16.vlgmr.msra.gmra.mrb[4].mxu1 %vm284_vm0, %v710_v30  ;;  %v1142_v30 = vld [vmem:[#allocation10 + $0x10] sm:$0xff] }
 0x209   :  { %3346 = vmatprep.mubr.msk.bf16.mxu1 %vm3857_vm2, %v5192_v35 }
 0x2db   :  { %v3336_v37 = vpop.f32.mrb[4].mxu1 }
 0x2dc   :  { %v757_v38 = vpop.f32.mrb[5].mxu1 }
 0x2dd   :  { %v3337_v39 = vpop.f32.mrb[6].mxu1 }
 0x2de   :  { %v773_v40 = vpack.c.bf16 %v3337_v39, %v3336_v37  ;;  %v760_v41 = vpop.f32.mrb[7].mxu1  ;;  %v1143_v37 = vld [vmem:[#allocation10 + $0x18] sm:$0xff] }
 0x2df   :  { %v772_v42 = vpack.c.bf16 %v760_v41, %v757_v38  ;;  %v1145_v38 = vpack.c.bf16 %v1143_v37, %v1142_v30 }
 0x2e1   :  { %775 = vrot.lane.b32.xlu1 %v772_v42, %s3858_s30 }
 0x2e5   :  { %825 = vrot.lane.b32.xlu1 %v773_v40, %s3858_s30 }
 0x353   :  { %v776_v43 = vpop.permute.xlu1 %775 }
 0x354   :  { %v781_v44 = vsel %vm284_vm0, %v776_v43, 0 }
 0x355   :  { %3339 = vmatpush3.bf16.xpose.msra.mxu0 %v781_v44 }
 0x356   :  { %3350 = vmatprep.subr.bf16.mxu0 %v5192_v35 }
 0x357   :  { %v826_v45 = vpop.permute.xlu1 %825 }
 0x358   :  { %v831_v46 = vsel %vm284_vm0, %v826_v45, 0 }
 0x359   :  { %3345 = vmatpush3.bf16.xpose.msra.mxu1 %v831_v46 }
 0x35a   :  { %3356 = vmatprep.subr.bf16.mxu1 %v5192_v35 }
 0x35c   :  { %3341 = vmatmul.mubr.msk.bf16.vlgmr.msra.gmra.mrb[8].mxu0 %vm284_vm0, %v772_v42 }
 0x35d   :  { %3352 = vmatprep.mubr.msk.bf16.mxu0 %vm3857_vm2, %v5192_v35 }
 0x360   :  { %3347 = vmatmul.mubr.msk.bf16.vlgmr.msra.gmra.mrb[8].mxu1 %vm284_vm0, %v773_v40 }
 0x361   :  { %3358 = vmatprep.mubr.msk.bf16.mxu1 %vm3857_vm2, %v5192_v35 }
 0x42f   :  { %v817_v47 = vpop.f32.mrb[8].mxu0 }
 0x430   :  { %v3342_v48 = vpop.f32.mrb[9].mxu0  ;;  %v875_v49 = vsel %vm874_vm3, %v817_v47, -inf }
 0x431   :  { %876 = vmax.xlane.f32.xlu1 %v875_v49  ;;  %v820_v50 = vpop.f32.mrb[10].mxu0 }
 0x432   :  { %v3343_v51 = vpop.f32.mrb[11].mxu0  ;;  %v878_v58 = vsel %vm874_vm3, %v820_v50, -inf }
 0x433   :  { %v867_v52 = vpop.f32.mrb[8].mxu1 }
 0x434   :  { %v3348_v53 = vpop.f32.mrb[9].mxu1  ;;  %v881_v54 = vsel %vm874_vm3, %v867_v52, -inf }
 0x435   :  { %882 = vmax.xlane.f32.xlu0 %v881_v54  ;;  %v870_v55 = vpop.f32.mrb[10].mxu1 }
 0x436   :  { %v3349_v56 = vpop.f32.mrb[11].mxu1  ;;  %v884_v57 = vsel %vm874_vm3, %v870_v55, -inf }
 0x437   :  { %885 = vmax.xlane.f32.xlu1 %v884_v57 }
 0x439   :  { %879 = vmax.xlane.f32.xlu0 %v878_v58 }
 0x448   :  { %1083 = vrot.lane.b32.xlu1 %v773_v40, %s3859_s14 }
 0x44f   :  { %1036 = vrot.lane.b32.xlu0 %v772_v42, %s3859_s14 }
 0x4be   :  { %v877_v61 = vpop.xlane.xlu1 %876 }
 0x4bf   :  { %v4150_v62 = vsub.f32 %v817_v47, %v877_v61 }
 0x4c1   :  { %v891_v63 = vmul.f32 1.442695, %v4150_v62 }
 0x4c2   :  { %v883_v0 = vpop.xlane.xlu0 %882 }
 0x4c3   :  { %3562 = vpow2.f32 %v891_v63  ;;  %v4153_v1 = vsub.f32 %v867_v52, %v883_v0 }
 0x4c4   :  { %v886_v2 = vpop.xlane.xlu1 %885 }
 0x4c5   :  { %v895_v3 = vmul.f32 1.442695, %v4153_v1  ;;  %v4156_v4 = vsub.f32 %v870_v55, %v886_v2 }
 0x4c6   :  { %v880_v5 = vpop.xlane.xlu0 %879 }
 0x4c7   :  { %v897_v6 = vmul.f32 1.442695, %v4156_v4  ;;  %v4159_v7 = vsub.f32 %v820_v50, %v880_v5  ;;  %3564 = vpow2.f32 %v895_v3 }
 0x4c8   :  { %v1084_v8 = vpop.permute.xlu1 %1083 }
 0x4c9   :  { %3566 = vpow2.f32 %v897_v6  ;;  %v893_v9 = vmul.f32 1.442695, %v4159_v7  ;;  %3357 = vmatpush3.bf16.msra.mxu1 %v1084_v8 }
 0x4ca   :  { %v1037_v10 = vpop.permute.xlu0 %1036 }
 0x4cb   :  { %3568 = vpow2.f32 %v893_v9  ;;  %3351 = vmatpush3.bf16.msra.mxu0 %v1037_v10 }
 0x4cc   :  { %3362 = vmatprep.subr.bf16.mxu0 %v1144_v29 }
 0x4cd   :  { %v4162_v11 = vpop.eup %3562 }
 0x4ce   :  { %v899_v12 = vsel %vm874_vm3, %v4162_v11, 0.0 }
 0x4cf   :  { %900 = vadd.xlane.f32.xlu1 %v899_v12 }
 0x4d1   :  { %v4166_v13 = vpop.eup %3564 }
 0x4d2   :  { %v905_v22 = vsel %vm874_vm3, %v4166_v13, 0.0 }
 0x4d3   :  { %v4168_v14 = vpop.eup %3566 }
 0x4d4   :  { %v908_v17 = vsel %vm874_vm3, %v4168_v14, 0.0  ;;  %v1035_v18 = vpack.c.bf16 %v4168_v14, %v4166_v13 }
 0x4d5   :  { %v4174_v19 = vpop.eup %3568  ;;  %909 = vadd.xlane.f32.xlu1 %v908_v17 }
 0x4d6   :  { %3359 = vmatmul.mubr.msk.bf16.vlgmr.msra.gmra.mrb[12].mxu1 %vm874_vm3, %v1035_v18  ;;  %v902_v20 = vsel %vm874_vm3, %v4174_v19, 0.0  ;;  %v1034_v21 = vpack.c.bf16 %v4174_v19, %v4162_v11 }
 0x4d7   :  { %903 = vadd.xlane.f32.xlu0 %v902_v20 }
 0x4d8   :  { %3353 = vmatmul.mubr.msk.bf16.vlgmr.msra.gmra.mrb[12].mxu0 %vm874_vm3, %v1034_v21 }
 0x4d9   :  { %3363 = vmatpush3.bf16.msra.mxu0 %v1144_v29 }
 0x4da   :  { %3364 = vmatprep.subr.bf16.mxu0 %v1145_v38 }
 0x4db   :  { %906 = vadd.xlane.f32.xlu0 %v905_v22 }
 0x4dd   :  { %3365 = vmatpush3.bf16.msra.mxu0 %v1145_v38 }
 0x4de   :  { %3378 = vmatprep.subr.bf16.mxu0 %v5192_v35 }
 0x55c   :  { %v4187_v40 = vpop.xlane.xlu1 %900 }
 0x55d   :  { %5254 = vst [vmem:[#allocation20_spill] sm:$0xff] %v4187_v40 }
 0x562   :  { %v4191_v42 = vpop.xlane.xlu1 %909 }
 0x563   :  { %5256 = vst [vmem:[#allocation22_spill] sm:$0xff] %v4191_v42 }
 0x564   :  { %v4185_v39 = vpop.xlane.xlu0 %903 }
 0x565   :  { %5253 = vst [vmem:[#allocation19_spill] sm:$0xff] %v4185_v39 }
 0x568   :  { %v4189_v41 = vpop.xlane.xlu0 %906 }
 0x569   :  { %5255 = vst [vmem:[#allocation21_spill] sm:$0xff] %v4189_v41  ;;  %3570 = vrcp.f32 %v4189_v41 }
 0x56a   :  { %3572 = vrcp.f32 %v4187_v40 }
 0x56b   :  { %3574 = vrcp.f32 %v4191_v42 }
 0x56c   :  { %3576 = vrcp.f32 %v4185_v39 }
 0x573   :  { %v4197_v43 = vpop.eup %3570 }
 0x574   :  { %5257 = vst [vmem:[#allocation23_spill] sm:$0xff] %v4197_v43  ;;  %v4199_v44 = vpop.eup %3572  ;;  %v1020_v46 = vmul.f32 %v4197_v43, %v4189_v41 }
 0x575   :  { %5258 = vst [vmem:[#allocation24_spill] sm:$0xff] %v4199_v44  ;;  %v4201_v45 = vpop.eup %3574  ;;  %v1018_v48 = vmul.f32 %v4199_v44, %v4187_v40 }
 0x576   :  { %5259 = vst [vmem:[#allocation25_spill] sm:$0xff] %v4201_v45  ;;  %v4205_v47 = vpop.eup %3576  ;;  %v1021_v49 = vmul.f32 %v4201_v45, %v4191_v42  ;;  %v1024_v51 = vadd.f32 1e-09, %v1020_v46  ;;  %v3184_v46 = vld [vmem:[%s5185_s7 + $0x20] sm:$0xff] }
 0x577   :  { %5260 = vst [vmem:[#allocation26_spill] sm:$0xff] %v4205_v47  ;;  %v1019_v50 = vmul.f32 %v4205_v47, %v4185_v39  ;;  %v1022_v52 = vadd.f32 1e-09, %v1018_v48  ;;  %v3185_v48 = vld [vmem:[%s5185_s7 + $0x28] sm:$0xff] }
 0x578   :  { %v1025_v53 = vadd.f32 1e-09, %v1021_v49  ;;  %3578 = vrcp.f32 %v1024_v51  ;;  %v1284_v49 = vpack.c.bf16 %v3185_v48, %v3184_v46  ;;  %v3187_v51 = vld [vmem:[%s5185_s7 + $0x38] sm:$0xff] }
 0x579   :  { %v1023_v54 = vadd.f32 1e-09, %v1019_v50  ;;  %3580 = vrcp.f32 %v1022_v52  ;;  %v3186_v50 = vld [vmem:[%s5185_s7 + $0x30] sm:$0xff] }
 0x57a   :  { %3582 = vrcp.f32 %v1025_v53  ;;  %3370 = vmatprep.subr.bf16.mxu1 %v1284_v49  ;;  %v1285_v52 = vpack.c.bf16 %v3187_v51, %v3186_v50 }
 0x57b   :  { %3584 = vrcp.f32 %v1023_v54  ;;  %3371 = vmatpush3.bf16.msra.mxu1 %v1284_v49 }
 0x57c   :  { %3372 = vmatprep.subr.bf16.mxu1 %v1285_v52 }
 0x57f   :  { %3373 = vmatpush3.bf16.msra.mxu1 %v1285_v52 }
 0x580   :  { %3384 = vmatprep.subr.bf16.mxu1 %v5192_v35 }
 0x582   :  { %v3579_v55 = vpop.eup %3578 }
 0x583   :  { %v3581_v56 = vpop.eup %3580  ;;  %v1031_v58 = vmul.f32 %v3579_v55, %v4197_v43 }
 0x584   :  { %v3583_v57 = vpop.eup %3582  ;;  %v1027_v3 = vmul.f32 %v3581_v56, %v4199_v44 }
 0x585   :  { %v3585_v61 = vpop.eup %3584  ;;  %v1033_v5 = vmul.f32 %v3583_v57, %v4201_v45 }
 0x586   :  { %v1029_v18 = vmul.f32 %v3585_v61, %v4205_v47 }
 0x5a9   :  { %v1123_v63 = vpop.f32.mrb[12].mxu1 }
 0x5aa   :  { %v1132_v0 = vmul.f32 %v1123_v63, %v1031_v58  ;;  %v3360_v2 = vpop.f32.mrb[13].mxu1 }
 0x5ab   :  { %v1076_v6 = vpop.f32.mrb[12].mxu0  ;;  %v1126_v8 = vpop.f32.mrb[14].mxu1 }
 0x5ac   :  { %v1130_v9 = vmul.f32 %v1076_v6, %v1027_v3  ;;  %v1133_v10 = vmul.f32 %v1126_v8, %v1033_v5  ;;  %v3354_v12 = vpop.f32.mrb[13].mxu0  ;;  %v3361_v17 = vpop.f32.mrb[15].mxu1  ;;  %v1136_v21 = vsub.f32 %v4107_v27, %v1132_v0 }
 0x5ad   :  { %v1079_v20 = vpop.f32.mrb[14].mxu0 }
 0x5ae   :  { %v1137_v22 = vsub.f32 %v4110_v28, %v1133_v10  ;;  %v1131_v23 = vmul.f32 %v1079_v20, %v1029_v18  ;;  %v3355_v24 = vpop.f32.mrb[15].mxu0  ;;  %v1134_v29 = vsub.f32 %v4101_v25, %v1130_v9 }
 0x5b0   :  { %v1139_v30 = vpack.c.bf16 %v1137_v22, %v1136_v21  ;;  %v1135_v37 = vsub.f32 %v4104_v26, %v1131_v23 }
 0x5b2   :  { %v1138_v38 = vpack.c.bf16 %v1135_v37, %v1134_v29 }
 0x5b4   :  { %3366 = vmatprep.mubr.msk.bf16.mxu0 %vm284_vm0, %v1138_v38 }
 0x5b5   :  { %3367 = vmatmul.mubr.msk.bf16.vlgmr.msra.gmra.mrb[16].mxu0 %vm284_vm0, %v1139_v30 }
 0x5b6   :  { %3380 = vmatprep.mubr.msk.bf16.mxu0 %vm3857_vm2, %v5192_v35 }
 0x688   :  { %v3368_v53 = vpop.f32.mrb[16].mxu0 }
 0x689   :  { %v1186_v54 = vpop.f32.mrb[17].mxu0  ;;  %v1206_v63 = vsel %vm284_vm0, %v3368_v53, 0.0 }
 0x68a   :  { %v3369_v55 = vpop.f32.mrb[18].mxu0  ;;  %v1203_v57 = vsel %vm284_vm0, %v1186_v54, 0.0 }
 0x68b   :  { %v1189_v56 = vpop.f32.mrb[19].mxu0  ;;  %v1208_v2 = vsel %vm284_vm0, %v3369_v55, 0.0 }
 0x68c   :  { %v1204_v58 = vsel %vm284_vm0, %v1189_v56, 0.0 }
 0x68d   :  { %v1205_v61 = vadd.f32 %v1204_v58, %v1203_v57 }
 0x68f   :  { %v1207_v0 = vadd.f32 %v1206_v63, %v1205_v61  ;;  %v3182_v63 = vld [vmem:[%s5187_s9] ss:$0 sm:$0xff] }
 0x691   :  { %v1209_v3 = vadd.f32 %v1208_v2, %v1207_v0 }
 0x693   :  { %v1210_v5 = vrot.slane %v1209_v3, 4 }
 0x695   :  { %v1211_v6 = vadd.f32 %v1210_v5, %v1209_v3 }
 0x697   :  { %v1212_v8 = vrot.slane %v1211_v6, 2 }
 0x699   :  { %v1213_v9 = vadd.f32 %v1212_v8, %v1211_v6  ;;  %v3183_v8 = vld [vmem:[%s5188_s10] ss:$0 sm:$0xff] }
 0x69b   :  { %v1214_v10 = vrot.slane %v1213_v9, 1 }
 0x69d   :  { %v1215_v12 = vadd.f32 %v1214_v10, %v1213_v9 }
 0x69f   :  { %v1216_v17 = vmul.f32 0.03125, %v1215_v12 }
 0x6a1   :  { %v1217_v18 = vsub.f32 %v1186_v54, %v1216_v17  ;;  %v1218_v20 = vsub.f32 %v1189_v56, %v1216_v17  ;;  %v1219_v21 = vsub.f32 %v3368_v53, %v1216_v17  ;;  %v1220_v22 = vsub.f32 %v3369_v55, %v1216_v17 }
 0x6a3   :  { %v1221_v23 = vmul.f32 %v1217_v18, %v1217_v18  ;;  %v1222_v24 = vmul.f32 %v1218_v20, %v1218_v20  ;;  %v1223_v29 = vmul.f32 %v1219_v21, %v1219_v21  ;;  %v1224_v30 = vmul.f32 %v1220_v22, %v1220_v22 }
 0x6a4   :  { %v1245_v0 = vmul.f32 %v3182_v63, %v1217_v18  ;;  %v1246_v2 = vmul.f32 %v3182_v63, %v1218_v20  ;;  %v1247_v3 = vmul.f32 %v3182_v63, %v1219_v21  ;;  %v1248_v5 = vmul.f32 %v3182_v63, %v1220_v22 }
 0x6a5   :  { %v1225_v37 = vsel %vm284_vm0, %v1221_v23, 0.0  ;;  %v1226_v38 = vsel %vm284_vm0, %v1222_v24, 0.0  ;;  %v1228_v48 = vsel %vm284_vm0, %v1223_v29, 0.0  ;;  %v1230_v50 = vsel %vm284_vm0, %v1224_v30, 0.0 }
 0x6a6   :  { %v1227_v46 = vadd.f32 %v1226_v38, %v1225_v37 }
 0x6a8   :  { %v1229_v49 = vadd.f32 %v1228_v48, %v1227_v46 }
 0x6aa   :  { %v1231_v51 = vadd.f32 %v1230_v50, %v1229_v49 }
 0x6ac   :  { %v1232_v52 = vrot.slane %v1231_v51, 4 }
 0x6ae   :  { %v1233_v54 = vadd.f32 %v1232_v52, %v1231_v51 }
 0x6b0   :  { %v1234_v56 = vrot.slane %v1233_v54, 2 }
 0x6b2   :  { %v1235_v53 = vadd.f32 %v1234_v56, %v1233_v54 }
 0x6b4   :  { %v1236_v55 = vrot.slane %v1235_v53, 1 }
 0x6b6   :  { %v1237_v57 = vadd.f32 %v1236_v55, %v1235_v53 }
 0x6b8   :  { %v1238_v58 = vmul.f32 0.03125, %v1237_v57 }
 0x6ba   :  { %v1249_v61 = vadd.f32 1e-05, %v1238_v58 }
 0x6bc   :  { %3586 = vrsqrt.f32 %v1249_v61 }
 0x6c6   :  { %v3587_v6 = vpop.eup %3586 }
 0x6c7   :  { %v1251_v9 = vmul.f32 %v3587_v6, %v1245_v0  ;;  %v1252_v10 = vmul.f32 %v3587_v6, %v1246_v2  ;;  %v1253_v12 = vmul.f32 %v3587_v6, %v1247_v3  ;;  %v1254_v17 = vmul.f32 %v3587_v6, %v1248_v5 }
 0x6c9   :  { %v1261_v23 = vadd.f32 %v3183_v8, %v1251_v9  ;;  %v1262_v24 = vadd.f32 %v3183_v8, %v1252_v10  ;;  %v1263_v29 = vadd.f32 %v3183_v8, %v1253_v12  ;;  %v1264_v30 = vadd.f32 %v3183_v8, %v1254_v17 }
 0x6cb   :  { %v1266_v37 = vmax.f32 %v1262_v24, 0.0  ;;  %v1267_v38 = vmax.f32 %v1263_v29, 0.0  ;;  %v1268_v46 = vmax.f32 %v1264_v30, 0.0  ;;  %v1265_v18 = vmax.f32 %v1261_v23, 0.0 }
 0x6cd   :  { %v4253_v20 = vadd.f32 %v1266_v37, %v4104_v26  ;;  %v4256_v21 = vadd.f32 %v1267_v38, %v4107_v27  ;;  %v4259_v22 = vadd.f32 %v1268_v46, %v4110_v28  ;;  %v4262_v48 = vadd.f32 %v1265_v18, %v4101_v25 }
 0x6cf   :  { %5261 = vst [vmem:[#allocation27_spill] sm:$0xff] %v4253_v20  ;;  %5262 = vst [vmem:[#allocation28_spill] sm:$0xff] %v4256_v21  ;;  %v4266_v49 = vadd.f32 %v4262_v48, %v4048_v60  ;;  %v4270_v50 = vadd.f32 %v4253_v20, %v4046_v59  ;;  %v4274_v26 = vadd.f32 %v4256_v21, %v4066_v15 }
 0x6d0   :  { %5263 = vst [vmem:[#allocation29_spill] sm:$0xff] %v4259_v22  ;;  %5264 = vst [vmem:[#allocation30_spill] sm:$0xff] %v4262_v48  ;;  %v4278_v27 = vadd.f32 %v4259_v22, %v4068_v16 }
 0x6d1   :  { %v1277_v25 = vpack.c.bf16 %v4270_v50, %v4266_v49 }
 0x6d2   :  { %v1278_v28 = vpack.c.bf16 %v4278_v27, %v4274_v26 }
 0x6d3   :  { %3374 = vmatprep.mubr.msk.bf16.mxu1 %vm284_vm0, %v1277_v25 }
 0x6d4   :  { %3375 = vmatmul.mubr.msk.bf16.vlgmr.msra.gmra.mrb[16].mxu1 %vm284_vm0, %v1278_v28 }
 0x6d5   :  { %3386 = vmatprep.mubr.msk.bf16.mxu1 %vm3857_vm2, %v5192_v35 }
 0x7a7   :  { %v3376_v51 = vpop.f32.mrb[16].mxu1 }
 0x7a8   :  { %v1326_v52 = vpop.f32.mrb[17].mxu1 }
 0x7a9   :  { %v3377_v54 = vpop.f32.mrb[18].mxu1 }
 0x7aa   :  { %v1342_v56 = vpack.c.bf16 %v3377_v54, %v3376_v51  ;;  %v1329_v53 = vpop.f32.mrb[19].mxu1 }
 0x7ab   :  { %v1341_v55 = vpack.c.bf16 %v1329_v53, %v1326_v52 }
 0x7ac   :  { %1394 = vrot.lane.b32.xlu1 %v1342_v56, %s3858_s30 }
 0x7ad   :  { %1344 = vrot.lane.b32.xlu0 %v1341_v55, %s3858_s30 }
 0x81e   :  { %v1395_v57 = vpop.permute.xlu1 %1394 }
 0x81f   :  { %v1400_v58 = vsel %vm284_vm0, %v1395_v57, 0  ;;  %v1345_v61 = vpop.permute.xlu0 %1344 }
 0x820   :  { %v1350_v63 = vsel %vm284_vm0, %v1345_v61, 0  ;;  %3385 = vmatpush3.bf16.xpose.msra.mxu1 %v1400_v58 }
 0x821   :  { %3379 = vmatpush3.bf16.xpose.msra.mxu0 %v1350_v63  ;;  %3396 = vmatprep.subr.bf16.mxu1 %v5192_v35 }
 0x822   :  { %3390 = vmatprep.subr.bf16.mxu0 %v5192_v35 }
 0x827   :  { %3387 = vmatmul.mubr.msk.bf16.vlgmr.msra.gmra.mrb[20].mxu1 %vm284_vm0, %v1342_v56 }
 0x828   :  { %3381 = vmatmul.mubr.msk.bf16.vlgmr.msra.gmra.mrb[20].mxu0 %vm284_vm0, %v1341_v55  ;;  %3398 = vmatprep.mubr.msk.bf16.mxu1 %vm3857_vm2, %v5192_v35 }
 0x829   :  { %3392 = vmatprep.mubr.msk.bf16.mxu0 %vm3857_vm2, %v5192_v35 }
 0x8fa   :  { %v1436_v0 = vpop.f32.mrb[20].mxu1 }
 0x8fb   :  { %v1386_v2 = vpop.f32.mrb[20].mxu0  ;;  %v3388_v3 = vpop.f32.mrb[21].mxu1  ;;  %v1449_v5 = vsel %vm874_vm3, %v1436_v0, -inf }
 0x8fc   :  { %v1439_v6 = vpop.f32.mrb[22].mxu1  ;;  %1450 = vmax.xlane.f32.xlu0 %v1449_v5  ;;  %v3382_v8 = vpop.f32.mrb[21].mxu0  ;;  %v1443_v9 = vsel %vm874_vm3, %v1386_v2, -inf }
 0x8fd   :  { %v3389_v10 = vpop.f32.mrb[23].mxu1  ;;  %1444 = vmax.xlane.f32.xlu1 %v1443_v9  ;;  %v1389_v12 = vpop.f32.mrb[22].mxu0  ;;  %v1452_v24 = vsel %vm874_vm3, %v1439_v6, -inf  ;;  %v1704_v9 = vld [vmem:[#allocation10 + $0x20] sm:$0xff] }
 0x8fe   :  { %v3383_v17 = vpop.f32.mrb[23].mxu0  ;;  %v1446_v23 = vsel %vm874_vm3, %v1389_v12, -inf  ;;  %v1705_v10 = vld [vmem:[#allocation10 + $0x28] sm:$0xff] }
 0x8ff   :  { %v1706_v17 = vld [vmem:[#allocation10 + $0x30] sm:$0xff] }
 0x900   :  { %1447 = vmax.xlane.f32.xlu0 %v1446_v23  ;;  %v1707_v23 = vld [vmem:[#allocation10 + $0x38] sm:$0xff] }
 0x901   :  { %1453 = vmax.xlane.f32.xlu1 %v1452_v24  ;;  %v1709_v24 = vpack.c.bf16 %v1707_v23, %v1706_v17 }
 0x912   :  { %1646 = vrot.lane.b32.xlu1 %v1342_v56, %s3859_s14 }
 0x916   :  { %1599 = vrot.lane.b32.xlu0 %v1341_v55, %s3859_s14 }
 0x989   :  { %v1451_v29 = vpop.xlane.xlu0 %1450 }
 0x98a   :  { %v4306_v30 = vsub.f32 %v1436_v0, %v1451_v29  ;;  %v1445_v37 = vpop.xlane.xlu1 %1444 }
 0x98b   :  { %v4308_v38 = vsub.f32 %v1386_v2, %v1445_v37 }
 0x98c   :  { %v1463_v46 = vmul.f32 1.442695, %v4306_v30 }
 0x98d   :  { %v1459_v18 = vmul.f32 1.442695, %v4308_v38  ;;  %v1448_v25 = vpop.xlane.xlu0 %1447 }
 0x98e   :  { %v4312_v28 = vsub.f32 %v1389_v12, %v1448_v25  ;;  %v1454_v51 = vpop.xlane.xlu1 %1453  ;;  %v1708_v12 = vpack.c.bf16 %v1705_v10, %v1704_v9 }
 0x98f   :  { %3588 = vpow2.f32 %v1459_v18  ;;  %v4314_v52 = vsub.f32 %v1439_v6, %v1454_v51 }
 0x990   :  { %v1461_v54 = vmul.f32 1.442695, %v4312_v28  ;;  %3590 = vpow2.f32 %v1463_v46 }
 0x991   :  { %v1465_v56 = vmul.f32 1.442695, %v4314_v52  ;;  %v1600_v53 = vpop.permute.xlu0 %1599 }
 0x992   :  { %3592 = vpow2.f32 %v1461_v54  ;;  %v1647_v55 = vpop.permute.xlu1 %1646  ;;  %3391 = vmatpush3.bf16.msra.mxu0 %v1600_v53 }
 0x993   :  { %3594 = vpow2.f32 %v1465_v56  ;;  %3397 = vmatpush3.bf16.msra.mxu1 %v1647_v55  ;;  %3402 = vmatprep.subr.bf16.mxu0 %v1708_v12 }
 0x999   :  { %v4318_v57 = vpop.eup %3588 }
 0x99a   :  { %v1467_v58 = vsel %vm874_vm3, %v4318_v57, 0.0  ;;  %v4322_v61 = vpop.eup %3590 }
 0x99b   :  { %1468 = vadd.xlane.f32.xlu1 %v1467_v58  ;;  %v1473_v8 = vsel %vm874_vm3, %v4322_v61, 0.0 }
 0x99c   :  { %v4324_v63 = vpop.eup %3592 }
 0x99d   :  { %v4326_v0 = vpop.eup %3594  ;;  %v1470_v2 = vsel %vm874_vm3, %v4324_v63, 0.0  ;;  %v1597_v3 = vpack.c.bf16 %v4324_v63, %v4318_v57 }
 0x99e   :  { %1471 = vadd.xlane.f32.xlu0 %v1470_v2  ;;  %v1476_v5 = vsel %vm874_vm3, %v4326_v0, 0.0  ;;  %v1598_v6 = vpack.c.bf16 %v4326_v0, %v4322_v61 }
 0x99f   :  { %1477 = vadd.xlane.f32.xlu1 %v1476_v5  ;;  %3393 = vmatmul.mubr.msk.bf16.vlgmr.msra.gmra.mrb[24].mxu0 %vm874_vm3, %v1597_v3 }
 0x9a0   :  { %3399 = vmatmul.mubr.msk.bf16.vlgmr.msra.gmra.mrb[24].mxu1 %vm874_vm3, %v1598_v6  ;;  %3403 = vmatpush3.bf16.msra.mxu0 %v1708_v12 }
 0x9a1   :  { %3404 = vmatprep.subr.bf16.mxu0 %v1709_v24 }
 0x9a2   :  { %1474 = vadd.xlane.f32.xlu0 %v1473_v8 }
 0x9a4   :  { %3405 = vmatpush3.bf16.msra.mxu0 %v1709_v24 }
 0x9a5   :  { %3418 = vmatprep.subr.bf16.mxu0 %v5192_v35 }
 0xa28   :  { %v4343_v37 = vpop.xlane.xlu1 %1468 }
 0xa29   :  { %3596 = vrcp.f32 %v4343_v37 }
 0xa2b   :  { %v4341_v29 = vpop.xlane.xlu0 %1471 }
 0xa2c   :  { %v4348_v18 = vpop.xlane.xlu1 %1477 }
 0xa2d   :  { %5266 = vst [vmem:[#allocation32_spill] sm:$0xff] %v4348_v18 }
 0xa2f   :  { %v4345_v46 = vpop.xlane.xlu0 %1474 }
 0xa30   :  { %5265 = vst [vmem:[#allocation31_spill] sm:$0xff] %v4345_v46  ;;  %3598 = vrcp.f32 %v4345_v46 }
 0xa31   :  { %3600 = vrcp.f32 %v4341_v29 }
 0xa32   :  { %3602 = vrcp.f32 %v4348_v18 }
 0xa33   :  { %v4353_v25 = vpop.eup %3596 }
 0xa34   :  { %5267 = vst [vmem:[#allocation33_spill] sm:$0xff] %v4353_v25  ;;  %v1581_v53 = vmul.f32 %v4353_v25, %v4343_v37 }
 0xa36   :  { %v1585_v3 = vadd.f32 1e-09, %v1581_v53 }
 0xa38   :  { %3604 = vrcp.f32 %v1585_v3 }
 0xa3a   :  { %v4355_v51 = vpop.eup %3598 }
 0xa3b   :  { %5268 = vst [vmem:[#allocation34_spill] sm:$0xff] %v4355_v51  ;;  %v4357_v54 = vpop.eup %3600  ;;  %v1583_v55 = vmul.f32 %v4355_v51, %v4345_v46 }
 0xa3c   :  { %5269 = vst [vmem:[#allocation35_spill] sm:$0xff] %v4357_v54  ;;  %v4359_v56 = vpop.eup %3602  ;;  %v1582_v58 = vmul.f32 %v4357_v54, %v4341_v29 }
 0xa3d   :  { %5270 = vst [vmem:[#allocation36_spill] sm:$0xff] %v4359_v56  ;;  %v1584_v2 = vmul.f32 %v4359_v56, %v4348_v18  ;;  %v1587_v5 = vadd.f32 1e-09, %v1583_v55 }
 0xa3e   :  { %v1586_v6 = vadd.f32 1e-09, %v1582_v58 }
 0xa3f   :  { %v1588_v8 = vadd.f32 1e-09, %v1584_v2  ;;  %3606 = vrcp.f32 %v1587_v5 }
 0xa40   :  { %3608 = vrcp.f32 %v1586_v6 }
 0xa41   :  { %3610 = vrcp.f32 %v1588_v8 }
 0xa42   :  { %v3605_v9 = vpop.eup %3604 }
 0xa43   :  { %v1590_v23 = vmul.f32 %v3605_v9, %v4353_v25 }
 0xa49   :  { %v3607_v10 = vpop.eup %3606 }
 0xa4a   :  { %v3609_v12 = vpop.eup %3608  ;;  %v1594_v35 = vmul.f32 %v3607_v10, %v4355_v51 }
 0xa4b   :  { %v3611_v17 = vpop.eup %3610  ;;  %v1592_v53 = vmul.f32 %v3609_v12, %v4357_v54 }
 0xa4c   :  { %v1596_v3 = vmul.f32 %v3611_v17, %v4359_v56 }
 0xa72   :  { %v1639_v24 = vpop.f32.mrb[24].mxu0 }
 0xa73   :  { %v1693_v20 = vmul.f32 %v1639_v24, %v1590_v23  ;;  %v3394_v22 = vpop.f32.mrb[25].mxu0  ;;  %v1686_v48 = vpop.f32.mrb[24].mxu1 }
 0xa74   :  { %v1695_v55 = vmul.f32 %v1686_v48, %v1594_v35  ;;  %v1642_v58 = vpop.f32.mrb[26].mxu0  ;;  %v3400_v2 = vpop.f32.mrb[25].mxu1  ;;  %v5271_v35 = vmov 0.0  }
 0xa75   :  { %v1694_v5 = vmul.f32 %v1642_v58, %v1592_v53  ;;  %v3395_v6 = vpop.f32.mrb[27].mxu0  ;;  %v1689_v8 = vpop.f32.mrb[26].mxu1  ;;  %v1697_v9 = vsub.f32 %v4266_v49, %v1693_v20  ;;  %v3201_v20 = vld [vmem:[%s5185_s7 + $0x48] sm:$0xff] }
 0xa76   :  { %v1696_v21 = vmul.f32 %v1689_v8, %v1596_v3  ;;  %v3401_v45 = vpop.f32.mrb[27].mxu1  ;;  %v1699_v10 = vsub.f32 %v4274_v26, %v1695_v55 }
 0xa77   :  { %v1698_v43 = vsub.f32 %v4270_v50, %v1694_v5  ;;  %v3200_v45 = vld [vmem:[%s5185_s7 + $0x40] sm:$0xff] }
 0xa78   :  { %v1700_v22 = vsub.f32 %v4278_v27, %v1696_v21  ;;  %v1850_v48 = vpack.c.bf16 %v3201_v20, %v3200_v45  ;;  %v3203_v21 = vld [vmem:[%s5185_s7 + $0x58] sm:$0xff] }
 0xa79   :  { %v1701_v23 = vpack.c.bf16 %v1698_v43, %v1697_v9  ;;  %v3202_v43 = vld [vmem:[%s5185_s7 + $0x50] sm:$0xff] }
 0xa7a   :  { %v1702_v12 = vpack.c.bf16 %v1700_v22, %v1699_v10  ;;  %3410 = vmatprep.subr.bf16.mxu1 %v1850_v48  ;;  %v1851_v17 = vpack.c.bf16 %v3203_v21, %v3202_v43 }
 0xa7b   :  { %3406 = vmatprep.mubr.msk.bf16.mxu0 %vm284_vm0, %v1701_v23  ;;  %3411 = vmatpush3.bf16.msra.mxu1 %v1850_v48 }
 0xa7c   :  { %3407 = vmatmul.mubr.msk.bf16.vlgmr.msra.gmra.mrb[28].mxu0 %vm284_vm0, %v1702_v12  ;;  %3412 = vmatprep.subr.bf16.mxu1 %v1851_v17 }
 0xa7d   :  { %3420 = vmatprep.mubr.msk.bf16.mxu0 %vm3857_vm2, %v5271_v35 }
 0xa7f   :  { %3413 = vmatpush3.bf16.msra.mxu1 %v1851_v17 }
 0xa80   :  { %3424 = vmatprep.subr.bf16.mxu1 %v5271_v35 }
 0xb4f   :  { %v3408_v24 = vpop.f32.mrb[28].mxu0 }
 0xb50   :  { %v1750_v53 = vpop.f32.mrb[29].mxu0  ;;  %v1772_v6 = vsel %vm284_vm0, %v3408_v24, 0.0 }
 0xb51   :  { %v3409_v55 = vpop.f32.mrb[30].mxu0  ;;  %v1769_v2 = vsel %vm284_vm0, %v1750_v53, 0.0 }
 0xb52   :  { %v1753_v58 = vpop.f32.mrb[31].mxu0  ;;  %v1774_v9 = vsel %vm284_vm0, %v3409_v55, 0.0 }
 0xb53   :  { %v1770_v3 = vsel %vm284_vm0, %v1753_v58, 0.0 }
 0xb54   :  { %v1771_v5 = vadd.f32 %v1770_v3, %v1769_v2 }
 0xb56   :  { %v1773_v8 = vadd.f32 %v1772_v6, %v1771_v5 }
 0xb58   :  { %v1775_v10 = vadd.f32 %v1774_v9, %v1773_v8 }
 0xb5a   :  { %v1776_v22 = vrot.slane %v1775_v10, 4 }
 0xb5c   :  { %v1777_v23 = vadd.f32 %v1776_v22, %v1775_v10 }
 0xb5e   :  { %v1778_v12 = vrot.slane %v1777_v23, 2 }
 0xb60   :  { %v1779_v45 = vadd.f32 %v1778_v12, %v1777_v23 }
 0xb62   :  { %v1780_v20 = vrot.slane %v1779_v45, 1 }
 0xb64   :  { %v1781_v48 = vadd.f32 %v1780_v20, %v1779_v45 }
 0xb66   :  { %v1782_v43 = vmul.f32 0.03125, %v1781_v48 }
 0xb68   :  { %v1783_v21 = vsub.f32 %v1750_v53, %v1782_v43  ;;  %v1784_v17 = vsub.f32 %v1753_v58, %v1782_v43  ;;  %v1785_v56 = vsub.f32 %v3408_v24, %v1782_v43  ;;  %v1786_v51 = vsub.f32 %v3409_v55, %v1782_v43 }
 0xb6a   :  { %v1787_v47 = vmul.f32 %v1783_v21, %v1783_v21  ;;  %v1788_v44 = vmul.f32 %v1784_v17, %v1784_v17  ;;  %v1789_v2 = vmul.f32 %v1785_v56, %v1785_v56  ;;  %v1790_v3 = vmul.f32 %v1786_v51, %v1786_v51 }
 0xb6c   :  { %v1791_v5 = vsel %vm284_vm0, %v1787_v47, 0.0  ;;  %v1792_v6 = vsel %vm284_vm0, %v1788_v44, 0.0  ;;  %v1794_v9 = vsel %vm284_vm0, %v1789_v2, 0.0  ;;  %v1796_v22 = vsel %vm284_vm0, %v1790_v3, 0.0  ;;  %v3198_v44 = vld [vmem:[%s5187_s9 + $0x1] ss:$0 sm:$0xff] }
 0xb6d   :  { %v1793_v8 = vadd.f32 %v1792_v6, %v1791_v5  ;;  %v1811_v47 = vmul.f32 %v3198_v44, %v1783_v21  ;;  %v1812_v43 = vmul.f32 %v3198_v44, %v1784_v17  ;;  %v1813_v2 = vmul.f32 %v3198_v44, %v1785_v56  ;;  %v3199_v3 = vld [vmem:[%s5188_s10 + $0x1] ss:$0 sm:$0xff] }
 0xb6e   :  { %v1814_v5 = vmul.f32 %v3198_v44, %v1786_v51 }
 0xb6f   :  { %v1795_v10 = vadd.f32 %v1794_v9, %v1793_v8 }
 0xb71   :  { %v1797_v23 = vadd.f32 %v1796_v22, %v1795_v10 }
 0xb73   :  { %v1798_v12 = vrot.slane %v1797_v23, 4 }
 0xb75   :  { %v1799_v53 = vadd.f32 %v1798_v12, %v1797_v23 }
 0xb77   :  { %v1800_v58 = vrot.slane %v1799_v53, 2 }
 0xb79   :  { %v1801_v24 = vadd.f32 %v1800_v58, %v1799_v53 }
 0xb7b   :  { %v1802_v55 = vrot.slane %v1801_v24, 1 }
 0xb7d   :  { %v1803_v45 = vadd.f32 %v1802_v55, %v1801_v24 }
 0xb7f   :  { %v1804_v20 = vmul.f32 0.03125, %v1803_v45 }
 0xb81   :  { %v1815_v48 = vadd.f32 1e-05, %v1804_v20 }
 0xb83   :  { %3612 = vrsqrt.f32 %v1815_v48 }
 0xb8d   :  { %v3613_v6 = vpop.eup %3612 }
 0xb8e   :  { %v1817_v8 = vmul.f32 %v3613_v6, %v1811_v47  ;;  %v1818_v9 = vmul.f32 %v3613_v6, %v1812_v43  ;;  %v1819_v10 = vmul.f32 %v3613_v6, %v1813_v2  ;;  %v1820_v22 = vmul.f32 %v3613_v6, %v1814_v5 }
 0xb90   :  { %v1827_v23 = vadd.f32 %v3199_v3, %v1817_v8  ;;  %v1828_v12 = vadd.f32 %v3199_v3, %v1818_v9  ;;  %v1829_v53 = vadd.f32 %v3199_v3, %v1819_v10  ;;  %v1830_v58 = vadd.f32 %v3199_v3, %v1820_v22 }
 0xb92   :  { %v1832_v24 = vmax.f32 %v1828_v12, 0.0  ;;  %v1833_v55 = vmax.f32 %v1829_v53, 0.0  ;;  %v1834_v45 = vmax.f32 %v1830_v58, 0.0  ;;  %v1831_v21 = vmax.f32 %v1827_v23, 0.0 }
 0xb94   :  { %v4409_v56 = vadd.f32 %v1832_v24, %v4270_v50  ;;  %v4412_v51 = vadd.f32 %v1833_v55, %v4274_v26  ;;  %v4415_v17 = vadd.f32 %v1834_v45, %v4278_v27  ;;  %v4418_v20 = vadd.f32 %v1831_v21, %v4266_v49 }
 0xb96   :  { %5272 = vst [vmem:[#allocation37_spill] sm:$0xff] %v4409_v56  ;;  %5273 = vst [vmem:[#allocation38_spill] sm:$0xff] %v4412_v51  ;;  %v4422_v48 = vadd.f32 %v4418_v20, %v4048_v60  ;;  %v4426_v44 = vadd.f32 %v4409_v56, %v4046_v59  ;;  %v4430_v50 = vadd.f32 %v4412_v51, %v4066_v15 }
 0xb97   :  { %5274 = vst [vmem:[#allocation39_spill] sm:$0xff] %v4415_v17  ;;  %5275 = vst [vmem:[#allocation40_spill] sm:$0xff] %v4418_v20  ;;  %v4434_v26 = vadd.f32 %v4415_v17, %v4068_v16 }
 0xb98   :  { %v1843_v49 = vpack.c.bf16 %v4426_v44, %v4422_v48 }
 0xb99   :  { %v1844_v27 = vpack.c.bf16 %v4434_v26, %v4430_v50 }
 0xb9a   :  { %3414 = vmatprep.mubr.msk.bf16.mxu1 %vm284_vm0, %v1843_v49 }
 0xb9b   :  { %3415 = vmatmul.mubr.msk.bf16.vlgmr.msra.gmra.mrb[28].mxu1 %vm284_vm0, %v1844_v27 }
 0xb9c   :  { %3426 = vmatprep.mubr.msk.bf16.mxu1 %vm3857_vm2, %v5271_v35 }
 0xc6e   :  { %v3416_v47 = vpop.f32.mrb[28].mxu1 }
 0xc6f   :  { %v1892_v43 = vpop.f32.mrb[29].mxu1 }
 0xc70   :  { %v3417_v2 = vpop.f32.mrb[30].mxu1 }
 0xc71   :  { %v1908_v5 = vpack.c.bf16 %v3417_v2, %v3416_v47  ;;  %v1895_v6 = vpop.f32.mrb[31].mxu1 }
 0xc72   :  { %v1907_v3 = vpack.c.bf16 %v1895_v6, %v1892_v43 }
 0xc73   :  { %1960 = vrot.lane.b32.xlu1 %v1908_v5, %s3858_s30 }
 0xc74   :  { %1910 = vrot.lane.b32.xlu0 %v1907_v3, %s3858_s30 }
 0xce5   :  { %v1961_v8 = vpop.permute.xlu1 %1960 }
 0xce6   :  { %v1966_v9 = vsel %vm284_vm0, %v1961_v8, 0  ;;  %v1911_v10 = vpop.permute.xlu0 %1910 }
 0xce7   :  { %v1916_v22 = vsel %vm284_vm0, %v1911_v10, 0  ;;  %3425 = vmatpush3.bf16.xpose.msra.mxu1 %v1966_v9 }
 0xce8   :  { %3419 = vmatpush3.bf16.xpose.msra.mxu0 %v1916_v22  ;;  %3436 = vmatprep.subr.bf16.mxu1 %v5271_v35 }
 0xce9   :  { %3430 = vmatprep.subr.bf16.mxu0 %v5271_v35 }
 0xcee   :  { %3427 = vmatmul.mubr.msk.bf16.vlgmr.msra.gmra.mrb[32].mxu1 %vm284_vm0, %v1908_v5 }
 0xcef   :  { %3421 = vmatmul.mubr.msk.bf16.vlgmr.msra.gmra.mrb[32].mxu0 %vm284_vm0, %v1907_v3  ;;  %3438 = vmatprep.mubr.msk.bf16.mxu1 %vm3857_vm2, %v5271_v35 }
 0xcf0   :  { %3432 = vmatprep.mubr.msk.bf16.mxu0 %vm3857_vm2, %v5271_v35 }
 0xdc1   :  { %v2002_v23 = vpop.f32.mrb[32].mxu1 }
 0xdc2   :  { %v1952_v12 = vpop.f32.mrb[32].mxu0  ;;  %v3428_v53 = vpop.f32.mrb[33].mxu1  ;;  %v2015_v58 = vsel %vm874_vm3, %v2002_v23, -inf }
 0xdc3   :  { %v2005_v24 = vpop.f32.mrb[34].mxu1  ;;  %2016 = vmax.xlane.f32.xlu0 %v2015_v58  ;;  %v3422_v55 = vpop.f32.mrb[33].mxu0  ;;  %v2009_v45 = vsel %vm874_vm3, %v1952_v12, -inf }
 0xdc4   :  { %v3429_v21 = vpop.f32.mrb[35].mxu1  ;;  %2010 = vmax.xlane.f32.xlu1 %v2009_v45  ;;  %v1955_v49 = vpop.f32.mrb[34].mxu0  ;;  %v2018_v43 = vsel %vm874_vm3, %v2005_v24, -inf }
 0xdc5   :  { %v3423_v27 = vpop.f32.mrb[35].mxu0  ;;  %v2012_v47 = vsel %vm874_vm3, %v1955_v49, -inf }
 0xdc7   :  { %2013 = vmax.xlane.f32.xlu0 %v2012_v47 }
 0xdc8   :  { %2019 = vmax.xlane.f32.xlu1 %v2018_v43 }
 0xdd9   :  { %2212 = vrot.lane.b32.xlu1 %v1908_v5, %s3859_s14 }
 0xddd   :  { %2165 = vrot.lane.b32.xlu0 %v1907_v3, %s3859_s14 }
 0xe50   :  { %v2017_v2 = vpop.xlane.xlu0 %2016 }
 0xe51   :  { %v4462_v6 = vsub.f32 %v2002_v23, %v2017_v2  ;;  %v2011_v8 = vpop.xlane.xlu1 %2010 }
 0xe52   :  { %v4464_v9 = vsub.f32 %v1952_v12, %v2011_v8 }
 0xe53   :  { %v2029_v10 = vmul.f32 1.442695, %v4462_v6 }
 0xe54   :  { %v2025_v22 = vmul.f32 1.442695, %v4464_v9  ;;  %v2014_v53 = vpop.xlane.xlu0 %2013 }
 0xe55   :  { %v4468_v58 = vsub.f32 %v1955_v49, %v2014_v53  ;;  %v2020_v55 = vpop.xlane.xlu1 %2019  ;;  %v2270_v53 = vld [vmem:[#allocation10 + $0x40] sm:$0xff] }
 0xe56   :  { %3614 = vpow2.f32 %v2025_v22  ;;  %v4470_v45 = vsub.f32 %v2005_v24, %v2020_v55  ;;  %v2271_v55 = vld [vmem:[#allocation10 + $0x48] sm:$0xff] }
 0xe57   :  { %v2027_v5 = vmul.f32 1.442695, %v4468_v58  ;;  %3616 = vpow2.f32 %v2029_v10 }
 0xe58   :  { %v2031_v3 = vmul.f32 1.442695, %v4470_v45  ;;  %v2166_v23 = vpop.permute.xlu0 %2165 }
 0xe59   :  { %3618 = vpow2.f32 %v2027_v5  ;;  %v2213_v12 = vpop.permute.xlu1 %2212  ;;  %3431 = vmatpush3.bf16.msra.mxu0 %v2166_v23  ;;  %v2274_v5 = vpack.c.bf16 %v2271_v55, %v2270_v53  ;;  %v2273_v23 = vld [vmem:[#allocation10 + $0x58] sm:$0xff] }
 0xe5a   :  { %3620 = vpow2.f32 %v2031_v3  ;;  %3437 = vmatpush3.bf16.msra.mxu1 %v2213_v12  ;;  %v2272_v3 = vld [vmem:[#allocation10 + $0x50] sm:$0xff] }
 0xe5b   :  { %3442 = vmatprep.subr.bf16.mxu0 %v2274_v5  ;;  %v2275_v12 = vpack.c.bf16 %v2273_v23, %v2272_v3 }
 0xe60   :  { %v4474_v21 = vpop.eup %3614 }
 0xe61   :  { %v2033_v49 = vsel %vm874_vm3, %v4474_v21, 0.0  ;;  %v4478_v27 = vpop.eup %3616 }
 0xe62   :  { %2034 = vadd.xlane.f32.xlu1 %v2033_v49  ;;  %v2039_v22 = vsel %vm874_vm3, %v4478_v27, 0.0 }
 0xe63   :  { %v4480_v24 = vpop.eup %3618 }
 0xe64   :  { %v4482_v47 = vpop.eup %3620  ;;  %v2036_v43 = vsel %vm874_vm3, %v4480_v24, 0.0  ;;  %v2163_v2 = vpack.c.bf16 %v4480_v24, %v4474_v21 }
 0xe65   :  { %2037 = vadd.xlane.f32.xlu0 %v2036_v43  ;;  %v2042_v8 = vsel %vm874_vm3, %v4482_v47, 0.0  ;;  %v2164_v10 = vpack.c.bf16 %v4482_v47, %v4478_v27 }
 0xe66   :  { %2043 = vadd.xlane.f32.xlu1 %v2042_v8  ;;  %3433 = vmatmul.mubr.msk.bf16.vlgmr.msra.gmra.mrb[36].mxu0 %vm874_vm3, %v2163_v2 }
 0xe67   :  { %3439 = vmatmul.mubr.msk.bf16.vlgmr.msra.gmra.mrb[36].mxu1 %vm874_vm3, %v2164_v10  ;;  %3443 = vmatpush3.bf16.msra.mxu0 %v2274_v5 }
 0xe68   :  { %3444 = vmatprep.subr.bf16.mxu0 %v2275_v12 }
 0xe69   :  { %2040 = vadd.xlane.f32.xlu0 %v2039_v22 }
 0xe6b   :  { %3445 = vmatpush3.bf16.msra.mxu0 %v2275_v12 }
 0xe6c   :  { %3458 = vmatprep.subr.bf16.mxu0 %v5271_v35 }
 0xeef   :  { %v4499_v43 = vpop.xlane.xlu1 %2034 }
 0xef0   :  { %5277 = vst [vmem:[#allocation42_spill] sm:$0xff] %v4499_v43  ;;  %3622 = vrcp.f32 %v4499_v43 }
 0xef2   :  { %v4497_v49 = vpop.xlane.xlu0 %2037 }
 0xef3   :  { %5276 = vst [vmem:[#allocation41_spill] sm:$0xff] %v4497_v49  ;;  %v4504_v8 = vpop.xlane.xlu1 %2043 }
 0xef4   :  { %5279 = vst [vmem:[#allocation44_spill] sm:$0xff] %v4504_v8 }
 0xef6   :  { %v4501_v2 = vpop.xlane.xlu0 %2040 }
 0xef7   :  { %5278 = vst [vmem:[#allocation43_spill] sm:$0xff] %v4501_v2  ;;  %3624 = vrcp.f32 %v4501_v2 }
 0xef8   :  { %3626 = vrcp.f32 %v4497_v49 }
 0xef9   :  { %3628 = vrcp.f32 %v4504_v8 }
 0xefa   :  { %v4509_v10 = vpop.eup %3622 }
 0xefb   :  { %5280 = vst [vmem:[#allocation45_spill] sm:$0xff] %v4509_v10  ;;  %v2147_v5 = vmul.f32 %v4509_v10, %v4499_v43 }
 0xefd   :  { %v2151_v56 = vadd.f32 1e-09, %v2147_v5 }
 0xeff   :  { %3630 = vrcp.f32 %v2151_v56 }
 0xf01   :  { %v4511_v22 = vpop.eup %3624 }
 0xf02   :  { %5281 = vst [vmem:[#allocation46_spill] sm:$0xff] %v4511_v22  ;;  %v4513_v53 = vpop.eup %3626  ;;  %v2149_v3 = vmul.f32 %v4511_v22, %v4501_v2 }
 0xf03   :  { %5282 = vst [vmem:[#allocation47_spill] sm:$0xff] %v4513_v53  ;;  %v4515_v55 = vpop.eup %3628  ;;  %v2148_v23 = vmul.f32 %v4513_v53, %v4497_v49 }
 0xf04   :  { %5283 = vst [vmem:[#allocation48_spill] sm:$0xff] %v4515_v55  ;;  %v2150_v12 = vmul.f32 %v4515_v55, %v4504_v8  ;;  %v2153_v17 = vadd.f32 1e-09, %v2149_v3 }
 0xf05   :  { %v2152_v20 = vadd.f32 1e-09, %v2148_v23 }
 0xf06   :  { %v2154_v51 = vadd.f32 1e-09, %v2150_v12  ;;  %3632 = vrcp.f32 %v2153_v17 }
 0xf07   :  { %3634 = vrcp.f32 %v2152_v20 }
 0xf08   :  { %3636 = vrcp.f32 %v2154_v51 }
 0xf09   :  { %v3631_v18 = vpop.eup %3630 }
 0xf0a   :  { %v2156_v2 = vmul.f32 %v3631_v18, %v4509_v10 }
 0xf10   :  { %v3633_v46 = vpop.eup %3632 }
 0xf11   :  { %v3635_v42 = vpop.eup %3634  ;;  %v2160_v40 = vmul.f32 %v3633_v46, %v4511_v22 }
 0xf12   :  { %v3637_v41 = vpop.eup %3636  ;;  %v2158_v5 = vmul.f32 %v3635_v42, %v4513_v53 }
 0xf13   :  { %v2162_v17 = vmul.f32 %v3637_v41, %v4515_v55  ;;  %v3217_v41 = vld [vmem:[%s5185_s7 + $0x68] sm:$0xff] }
 0xf39   :  { %v2205_v39 = vpop.f32.mrb[36].mxu0 }
 0xf3a   :  { %v2259_v25 = vmul.f32 %v2205_v39, %v2156_v2  ;;  %v3434_v54 = vpop.f32.mrb[37].mxu0  ;;  %v2252_v8 = vpop.f32.mrb[36].mxu1 }
 0xf3b   :  { %v2261_v3 = vmul.f32 %v2252_v8, %v2160_v40  ;;  %v2208_v23 = vpop.f32.mrb[38].mxu0  ;;  %v3440_v56 = vpop.f32.mrb[37].mxu1  ;;  %v3216_v40 = vld [vmem:[%s5185_s7 + $0x60] sm:$0xff] }
 0xf3c   :  { %v2260_v51 = vmul.f32 %v2208_v23, %v2158_v5  ;;  %v3435_v20 = vpop.f32.mrb[39].mxu0  ;;  %v2255_v12 = vpop.f32.mrb[38].mxu1  ;;  %v2263_v18 = vsub.f32 %v4422_v48, %v2259_v25  ;;  %v2416_v25 = vpack.c.bf16 %v3217_v41, %v3216_v40 }
 0xf3d   :  { %v2262_v43 = vmul.f32 %v2255_v12, %v2162_v17  ;;  %v3441_v49 = vpop.f32.mrb[39].mxu1  ;;  %v2265_v39 = vsub.f32 %v4430_v50, %v2261_v3 }
 0xf3e   :  { %v2264_v10 = vsub.f32 %v4426_v44, %v2260_v51  ;;  %v3218_v49 = vld [vmem:[%s5185_s7 + $0x70] sm:$0xff]  ;;  %3450 = vmatprep.subr.bf16.mxu1 %v2416_v25 }
 0xf3f   :  { %v2266_v46 = vsub.f32 %v4434_v26, %v2262_v43  ;;  %v3219_v43 = vld [vmem:[%s5185_s7 + $0x78] sm:$0xff]  ;;  %3451 = vmatpush3.bf16.msra.mxu1 %v2416_v25 }
 0xf40   :  { %v2267_v54 = vpack.c.bf16 %v2264_v10, %v2263_v18  ;;  %v2417_v2 = vpack.c.bf16 %v3219_v43, %v3218_v49 }
 0xf41   :  { %v2268_v42 = vpack.c.bf16 %v2266_v46, %v2265_v39 }
 0xf42   :  { %3446 = vmatprep.mubr.msk.bf16.mxu0 %vm284_vm0, %v2267_v54  ;;  %3452 = vmatprep.subr.bf16.mxu1 %v2417_v2 }
 0xf43   :  { %3447 = vmatmul.mubr.msk.bf16.vlgmr.msra.gmra.mrb[40].mxu0 %vm284_vm0, %v2268_v42  ;;  %3453 = vmatpush3.bf16.msra.mxu1 %v2417_v2 }
 0xf44   :  { %3460 = vmatprep.mubr.msk.bf16.mxu0 %vm3857_vm2, %v5271_v35  ;;  %3464 = vmatprep.subr.bf16.mxu1 %v5271_v35 }
0x1016   :  { %v3448_v8 = vpop.f32.mrb[40].mxu0 }
0x1017   :  { %v2316_v10 = vpop.f32.mrb[41].mxu0  ;;  %v2338_v51 = vsel %vm284_vm0, %v3448_v8, 0.0 }
0x1018   :  { %v3449_v5 = vpop.f32.mrb[42].mxu0  ;;  %v2335_v23 = vsel %vm284_vm0, %v2316_v10, 0.0 }
0x1019   :  { %v2319_v3 = vpop.f32.mrb[43].mxu0  ;;  %v2340_v12 = vsel %vm284_vm0, %v3449_v5, 0.0 }
0x101a   :  { %v2336_v56 = vsel %vm284_vm0, %v2319_v3, 0.0 }
0x101b   :  { %v2337_v17 = vadd.f32 %v2336_v56, %v2335_v23 }
0x101d   :  { %v2339_v20 = vadd.f32 %v2338_v51, %v2337_v17 }
0x101f   :  { %v2341_v18 = vadd.f32 %v2340_v12, %v2339_v20 }
0x1021   :  { %v2342_v39 = vrot.slane %v2341_v18, 4 }
0x1023   :  { %v2343_v46 = vadd.f32 %v2342_v39, %v2341_v18 }
0x1025   :  { %v2344_v54 = vrot.slane %v2343_v46, 2 }
0x1027   :  { %v2345_v42 = vadd.f32 %v2344_v54, %v2343_v46 }
0x1029   :  { %v2346_v40 = vrot.slane %v2345_v42, 1 }
0x102b   :  { %v2347_v41 = vadd.f32 %v2346_v40, %v2345_v42 }
0x102d   :  { %v2348_v25 = vmul.f32 0.03125, %v2347_v41 }
0x102f   :  { %v2349_v49 = vsub.f32 %v2316_v10, %v2348_v25  ;;  %v2350_v43 = vsub.f32 %v2319_v3, %v2348_v25  ;;  %v2351_v2 = vsub.f32 %v3448_v8, %v2348_v25  ;;  %v2352_v55 = vsub.f32 %v3449_v5, %v2348_v25 }
0x1031   :  { %v2353_v22 = vmul.f32 %v2349_v49, %v2349_v49  ;;  %v2354_v53 = vmul.f32 %v2350_v43, %v2350_v43  ;;  %v2355_v23 = vmul.f32 %v2351_v2, %v2351_v2  ;;  %v2356_v56 = vmul.f32 %v2352_v55, %v2352_v55 }
0x1033   :  { %v2357_v17 = vsel %vm284_vm0, %v2353_v22, 0.0  ;;  %v2358_v51 = vsel %vm284_vm0, %v2354_v53, 0.0  ;;  %v2360_v12 = vsel %vm284_vm0, %v2355_v23, 0.0  ;;  %v2362_v39 = vsel %vm284_vm0, %v2356_v56, 0.0  ;;  %v3214_v22 = vld [vmem:[%s5187_s9 + $0x2] ss:$0 sm:$0xff] }
0x1034   :  { %v2359_v20 = vadd.f32 %v2358_v51, %v2357_v17  ;;  %v2377_v53 = vmul.f32 %v3214_v22, %v2349_v49  ;;  %v2378_v25 = vmul.f32 %v3214_v22, %v2350_v43  ;;  %v2379_v23 = vmul.f32 %v3214_v22, %v2351_v2  ;;  %v3215_v56 = vld [vmem:[%s5188_s10 + $0x2] ss:$0 sm:$0xff] }
0x1035   :  { %v2380_v17 = vmul.f32 %v3214_v22, %v2352_v55 }
0x1036   :  { %v2361_v18 = vadd.f32 %v2360_v12, %v2359_v20 }
0x1038   :  { %v2363_v46 = vadd.f32 %v2362_v39, %v2361_v18 }
0x103a   :  { %v2364_v54 = vrot.slane %v2363_v46, 4 }
0x103c   :  { %v2365_v10 = vadd.f32 %v2364_v54, %v2363_v46 }
0x103e   :  { %v2366_v3 = vrot.slane %v2365_v10, 2 }
0x1040   :  { %v2367_v8 = vadd.f32 %v2366_v3, %v2365_v10 }
0x1042   :  { %v2368_v5 = vrot.slane %v2367_v8, 1 }
0x1044   :  { %v2369_v42 = vadd.f32 %v2368_v5, %v2367_v8 }
0x1046   :  { %v2370_v40 = vmul.f32 0.03125, %v2369_v42 }
0x1048   :  { %v2381_v41 = vadd.f32 1e-05, %v2370_v40 }
0x104a   :  { %3638 = vrsqrt.f32 %v2381_v41 }
0x1054   :  { %v3639_v51 = vpop.eup %3638 }
0x1055   :  { %v2383_v20 = vmul.f32 %v3639_v51, %v2377_v53  ;;  %v2384_v12 = vmul.f32 %v3639_v51, %v2378_v25  ;;  %v2385_v18 = vmul.f32 %v3639_v51, %v2379_v23  ;;  %v2386_v39 = vmul.f32 %v3639_v51, %v2380_v17 }
0x1057   :  { %v2393_v46 = vadd.f32 %v3215_v56, %v2383_v20  ;;  %v2394_v54 = vadd.f32 %v3215_v56, %v2384_v12  ;;  %v2395_v10 = vadd.f32 %v3215_v56, %v2385_v18  ;;  %v2396_v3 = vadd.f32 %v3215_v56, %v2386_v39 }
0x1059   :  { %v2398_v8 = vmax.f32 %v2394_v54, 0.0  ;;  %v2399_v5 = vmax.f32 %v2395_v10, 0.0  ;;  %v2400_v42 = vmax.f32 %v2396_v3, 0.0  ;;  %v2397_v49 = vmax.f32 %v2393_v46, 0.0 }
0x105b   :  { %v4565_v43 = vadd.f32 %v2398_v8, %v4426_v44  ;;  %v4568_v55 = vadd.f32 %v2399_v5, %v4430_v50  ;;  %v4571_v2 = vadd.f32 %v2400_v42, %v4434_v26  ;;  %v4574_v40 = vadd.f32 %v2397_v49, %v4422_v48 }
0x105d   :  { %5284 = vst [vmem:[#allocation49_spill] sm:$0xff] %v4565_v43  ;;  %5285 = vst [vmem:[#allocation50_spill] sm:$0xff] %v4568_v55  ;;  %v4578_v41 = vadd.f32 %v4574_v40, %v4048_v60  ;;  %v4582_v22 = vadd.f32 %v4565_v43, %v4046_v59  ;;  %v4586_v44 = vadd.f32 %v4568_v55, %v4066_v15 }
0x105e   :  { %5286 = vst [vmem:[#allocation51_spill] sm:$0xff] %v4571_v2  ;;  %5287 = vst [vmem:[#allocation52_spill] sm:$0xff] %v4574_v40  ;;  %v4590_v50 = vadd.f32 %v4571_v2, %v4068_v16  ;;  %v973_v2 = vmul.f32 %v4162_v11, %v4150_v62 }
0x105f   :  { %5288 = vst [vmem:[#allocation53_spill] sm:$0xff] %v4578_v41  ;;  %5289 = vst [vmem:[#allocation54_spill] sm:$0xff] %v4582_v22  ;;  %v2409_v48 = vpack.c.bf16 %v4582_v22, %v4578_v41 }
0x1060   :  { %5290 = vst [vmem:[#allocation55_spill] sm:$0xff] %v4590_v50  ;;  %v2410_v26 = vpack.c.bf16 %v4590_v50, %v4586_v44 }
0x1061   :  { %3454 = vmatprep.mubr.msk.bf16.mxu1 %vm284_vm0, %v2409_v48 }
0x1062   :  { %3455 = vmatmul.mubr.msk.bf16.vlgmr.msra.gmra.mrb[40].mxu1 %vm284_vm0, %v2410_v26 }
0x1063   :  { %3466 = vmatprep.mubr.msk.bf16.mxu1 %vm3857_vm2, %v5271_v35 }
0x1135   :  { %v3456_v53 = vpop.f32.mrb[40].mxu1 }
0x1136   :  { %v2458_v25 = vpop.f32.mrb[41].mxu1 }
0x1137   :  { %v3457_v23 = vpop.f32.mrb[42].mxu1 }
0x1138   :  { %v2474_v17 = vpack.c.bf16 %v3457_v23, %v3456_v53  ;;  %v2461_v51 = vpop.f32.mrb[43].mxu1 }
0x1139   :  { %v2473_v56 = vpack.c.bf16 %v2461_v51, %v2458_v25 }
0x113a   :  { %2526 = vrot.lane.b32.xlu1 %v2474_v17, %s3858_s30 }
0x113b   :  { %2476 = vrot.lane.b32.xlu0 %v2473_v56, %s3858_s30 }
0x11ac   :  { %v2527_v20 = vpop.permute.xlu1 %2526 }
0x11ad   :  { %v2532_v12 = vsel %vm284_vm0, %v2527_v20, 0  ;;  %v2477_v18 = vpop.permute.xlu0 %2476 }
0x11ae   :  { %v2482_v39 = vsel %vm284_vm0, %v2477_v18, 0  ;;  %3465 = vmatpush3.bf16.xpose.msra.mxu1 %v2532_v12 }
0x11af   :  { %3459 = vmatpush3.bf16.xpose.msra.mxu0 %v2482_v39  ;;  %3476 = vmatprep.subr.bf16.mxu1 %v5271_v35 }
0x11b0   :  { %3470 = vmatprep.subr.bf16.mxu0 %v5271_v35 }
0x11b5   :  { %3467 = vmatmul.mubr.msk.bf16.vlgmr.msra.gmra.mrb[44].mxu1 %vm284_vm0, %v2474_v17 }
0x11b6   :  { %3461 = vmatmul.mubr.msk.bf16.vlgmr.msra.gmra.mrb[44].mxu0 %vm284_vm0, %v2473_v56  ;;  %3478 = vmatprep.mubr.msk.bf16.mxu1 %vm3857_vm2, %v5271_v35 }
0x11b7   :  { %3472 = vmatprep.mubr.msk.bf16.mxu0 %vm3857_vm2, %v5271_v35 }
0x1288   :  { %v2568_v46 = vpop.f32.mrb[44].mxu1 }
0x1289   :  { %v2518_v54 = vpop.f32.mrb[44].mxu0  ;;  %v3468_v10 = vpop.f32.mrb[45].mxu1  ;;  %v2581_v3 = vsel %vm874_vm3, %v2568_v46, -inf }
0x128a   :  { %v2571_v8 = vpop.f32.mrb[46].mxu1  ;;  %2582 = vmax.xlane.f32.xlu0 %v2581_v3  ;;  %v3462_v5 = vpop.f32.mrb[45].mxu0  ;;  %v2575_v42 = vsel %vm874_vm3, %v2518_v54, -inf }
0x128b   :  { %v3469_v49 = vpop.f32.mrb[47].mxu1  ;;  %2576 = vmax.xlane.f32.xlu1 %v2575_v42  ;;  %v2521_v48 = vpop.f32.mrb[46].mxu0  ;;  %v2584_v25 = vsel %vm874_vm3, %v2571_v8, -inf }
0x128c   :  { %v3463_v26 = vpop.f32.mrb[47].mxu0  ;;  %v2578_v53 = vsel %vm874_vm3, %v2521_v48, -inf }
0x128e   :  { %2579 = vmax.xlane.f32.xlu0 %v2578_v53 }
0x128f   :  { %2585 = vmax.xlane.f32.xlu1 %v2584_v25 }
0x12a0   :  { %2778 = vrot.lane.b32.xlu1 %v2474_v17, %s3859_s14 }
0x12a4   :  { %2731 = vrot.lane.b32.xlu0 %v2473_v56, %s3859_s14 }
0x1317   :  { %v2583_v35 = vpop.xlane.xlu0 %2582 }
0x1318   :  { %v4618_v23 = vsub.f32 %v2568_v46, %v2583_v35  ;;  %v2577_v51 = vpop.xlane.xlu1 %2576 }
0x1319   :  { %v4620_v20 = vsub.f32 %v2518_v54, %v2577_v51 }
0x131a   :  { %v2595_v12 = vmul.f32 1.442695, %v4618_v23 }
0x131b   :  { %5291 = vst [vmem:[#allocation56_spill] sm:$0xff] %v4620_v20  ;;  %v2591_v18 = vmul.f32 1.442695, %v4620_v20  ;;  %v2580_v39 = vpop.xlane.xlu0 %2579  ;;  %v1537_v20 = vmul.f32 %v4324_v63, %v4312_v28 }
0x131c   :  { %v4624_v10 = vsub.f32 %v2521_v48, %v2580_v39  ;;  %v2586_v3 = vpop.xlane.xlu1 %2585  ;;  %v571_v39 = vmul.f32 %v4048_v60, %v4048_v60  ;;  %v2836_v60 = vld [vmem:[#allocation10 + $0x60] sm:$0xff] }
0x131d   :  { %3640 = vpow2.f32 %v2591_v18  ;;  %v4626_v5 = vsub.f32 %v2571_v8, %v2586_v3  ;;  %v1543_v62 = vsel %vm874_vm3, %v1537_v20, 0.0 }
0x131e   :  { %v2593_v17 = vmul.f32 1.442695, %v4624_v10  ;;  %3642 = vpow2.f32 %v2595_v12  ;;  %v572_v12 = vmul.f32 %v4046_v59, %v4046_v59  ;;  %v575_v59 = vsel %vm284_vm0, %v571_v39, 0.0 }
0x131f   :  { %v2597_v56 = vmul.f32 1.442695, %v4626_v5  ;;  %v2732_v46 = vpop.permute.xlu0 %2731 }
0x1320   :  { %3644 = vpow2.f32 %v2593_v17  ;;  %v2779_v54 = vpop.permute.xlu1 %2778  ;;  %3471 = vmatpush3.bf16.msra.mxu0 %v2732_v46  ;;  %v578_v3 = vsel %vm284_vm0, %v572_v12, 0.0  ;;  %v574_v17 = vmul.f32 %v4068_v16, %v4068_v16  ;;  %v2839_v16 = vld [vmem:[#allocation10 + $0x78] sm:$0xff] }
0x1321   :  { %3646 = vpow2.f32 %v2597_v56  ;;  %3477 = vmatpush3.bf16.msra.mxu1 %v2779_v54  ;;  %v573_v56 = vmul.f32 %v4066_v15, %v4066_v15 }
0x1322   :  { %v584_v46 = vsel %vm284_vm0, %v574_v17, 0.0 }
0x1323   :  { %v581_v54 = vsel %vm284_vm0, %v573_v56, 0.0 }
0x1327   :  { %v4630_v42 = vpop.eup %3640 }
0x1328   :  { %v2599_v49 = vsel %vm874_vm3, %v4630_v42, 0.0  ;;  %v4634_v48 = vpop.eup %3642 }
0x1329   :  { %2600 = vadd.xlane.f32.xlu1 %v2599_v49  ;;  %v2605_v18 = vsel %vm874_vm3, %v4634_v48, 0.0  ;;  %v2837_v49 = vld [vmem:[#allocation10 + $0x68] sm:$0xff] }
0x132a   :  { %v4636_v8 = vpop.eup %3644 }
0x132b   :  { %5292 = vst [vmem:[#allocation57_spill] sm:$0xff] %v4636_v8  ;;  %v4638_v26 = vpop.eup %3646  ;;  %v2602_v53 = vsel %vm874_vm3, %v4636_v8, 0.0  ;;  %v2729_v25 = vpack.c.bf16 %v4636_v8, %v4630_v42 }
0x132c   :  { %2603 = vadd.xlane.f32.xlu0 %v2602_v53  ;;  %v2608_v35 = vsel %vm874_vm3, %v4638_v26, 0.0  ;;  %v2730_v51 = vpack.c.bf16 %v4638_v26, %v4634_v48  ;;  %v2840_v53 = vpack.c.bf16 %v2837_v49, %v2836_v60 }
0x132d   :  { %2609 = vadd.xlane.f32.xlu1 %v2608_v35  ;;  %3473 = vmatmul.mubr.msk.bf16.vlgmr.msra.gmra.mrb[48].mxu0 %vm874_vm3, %v2729_v25  ;;  %v2838_v25 = vld [vmem:[#allocation10 + $0x70] sm:$0xff] }
0x132e   :  { %3479 = vmatmul.mubr.msk.bf16.vlgmr.msra.gmra.mrb[48].mxu1 %vm874_vm3, %v2730_v51  ;;  %3482 = vmatprep.subr.bf16.mxu0 %v2840_v53  ;;  %v2841_v35 = vpack.c.bf16 %v2839_v16, %v2838_v25  ;;  %v974_v16 = vmul.f32 %v4174_v19, %v4159_v7  ;;  %v1536_v7 = vmul.f32 %v4318_v57, %v4308_v38 }
0x132f   :  { %3483 = vmatpush3.bf16.msra.mxu0 %v2840_v53 }
0x1330   :  { %2606 = vadd.xlane.f32.xlu0 %v2605_v18  ;;  %3484 = vmatprep.subr.bf16.mxu0 %v2841_v35  ;;  %v1540_v28 = vsel %vm874_vm3, %v1536_v7, 0.0 }
0x1331   :  { %579 = vadd.xlane.f32.xlu1 %v578_v3 }
0x1333   :  { %3485 = vmatpush3.bf16.msra.mxu0 %v2841_v35 }
0x1334   :  { %576 = vadd.xlane.f32.xlu0 %v575_v59 }
0x1335   :  { %585 = vadd.xlane.f32.xlu1 %v584_v46 }
0x1338   :  { %582 = vadd.xlane.f32.xlu0 %v581_v54 }
0x13b6   :  { %v4664_v51 = vpop.xlane.xlu1 %2600 }
0x13b7   :  { %5293 = vst [vmem:[#allocation58_spill] sm:$0xff] %v4664_v51  ;;  %3648 = vrcp.f32 %v4664_v51 }
0x13b9   :  { %v4666_v15 = vpop.xlane.xlu0 %2603 }
0x13ba   :  { %5294 = vst [vmem:[#allocation59_spill] sm:$0xff] %v4666_v15  ;;  %v4668_v12 = vpop.xlane.xlu1 %2609 }
0x13bb   :  { %5295 = vst [vmem:[#allocation60_spill] sm:$0xff] %v4668_v12 }
0x13bd   :  { %v4670_v18 = vpop.xlane.xlu0 %2606 }
0x13be   :  { %v4675_v3 = vpop.xlane.xlu1 %579  ;;  %3650 = vrcp.f32 %v4670_v18 }
0x13bf   :  { %3652 = vrcp.f32 %v4666_v15 }
0x13c0   :  { %3654 = vrcp.f32 %v4668_v12 }
0x13c1   :  { %v4672_v39 = vpop.xlane.xlu0 %576  ;;  %v4688_v56 = vpop.eup %3648 }
0x13c2   :  { %587 = vxpose.xlu0.b32.start [1/2] (short) (narrow) %v4672_v39, 8  ;;  %v4681_v59 = vpop.xlane.xlu1 %585  ;;  %5296 = vst [vmem:[#allocation61_spill] sm:$0xff] %v4688_v56  ;;  %v2713_v49 = vmul.f32 %v4688_v56, %v4664_v51  ;;  %v980_v51 = vsel %vm874_vm3, %v974_v16, 0.0 }
0x13c4   :  { %v2717_v43 = vadd.f32 1e-09, %v2713_v49  ;;  %v2103_v49 = vmul.f32 %v4480_v24, %v4468_v58 }
0x13c5   :  { %v4677_v17 = vpop.xlane.xlu0 %582 }
0x13c6   :  { %588 = vxpose.xlu0.b32.end [2/2] (short) (narrow) %v4675_v3, 8  ;;  %619 = vxpose.xlu1.b32.start [1/2] (short) (narrow) %v4677_v17, 8  ;;  %3656 = vrcp.f32 %v2717_v43  ;;  %v2102_v43 = vmul.f32 %v4474_v21, %v4464_v9 }
0x13c8   :  { %v4690_v46 = vpop.eup %3650  ;;  %v2106_v38 = vsel %vm874_vm3, %v2102_v43, 0.0 }
0x13c9   :  { %v4692_v54 = vpop.eup %3652  ;;  %v2715_v53 = vmul.f32 %v4690_v46, %v4670_v18 }
0x13ca   :  { %620 = vxpose.xlu1.b32.end [2/2] (short) (narrow) %v4681_v59, 8  ;;  %v4694_v60 = vpop.eup %3654  ;;  %v2714_v25 = vmul.f32 %v4692_v54, %v4666_v15  ;;  %v977_v15 = vsel %vm874_vm3, %v973_v2, 0.0  ;;  %v2109_v2 = vsel %vm874_vm3, %v2103_v49, 0.0 }
0x13cb   :  { %v2716_v35 = vmul.f32 %v4694_v60, %v4668_v12  ;;  %v2719_v55 = vadd.f32 1e-09, %v2715_v53 }
0x13cc   :  { %v2718_v40 = vadd.f32 1e-09, %v2714_v25 }
0x13cd   :  { %v2720_v8 = vadd.f32 1e-09, %v2716_v35  ;;  %3658 = vrcp.f32 %v2719_v55 }
0x13ce   :  { %3660 = vrcp.f32 %v2718_v40 }
0x13cf   :  { %3662 = vrcp.f32 %v2720_v8 }
0x13d0   :  { %v3657_v55 = vpop.eup %3656 }
0x13d1   :  { %v2722_v58 = vmul.f32 %v3657_v55, %v4688_v56 }
0x13d7   :  { %v3659_v40 = vpop.eup %3658 }
0x13d8   :  { %v3661_v20 = vpop.eup %3660 }
0x13d9   :  { %v2724_v9 = vmul.f32 %v3661_v20, %v4692_v54 }
0x13f1   :  { %981 = vadd.xlane.f32.xlu1 %v980_v51  ;;  %v3663_v51 = vpop.eup %3662 }
0x13f2   :  { %v2728_v49 = vmul.f32 %v3663_v51, %v4694_v60 }
0x13f3   :  { %978 = vadd.xlane.f32.xlu0 %v977_v15  ;;  %v2726_v15 = vmul.f32 %v3659_v40, %v4690_v46 }
0x13f5   :  { %1544 = vadd.xlane.f32.xlu1 %v1543_v62 }
0x13f7   :  { %1541 = vadd.xlane.f32.xlu0 %v1540_v28 }
0x13f9   :  { %2110 = vadd.xlane.f32.xlu1 %v2109_v2 }
0x13fb   :  { %2107 = vadd.xlane.f32.xlu0 %v2106_v38 }
0x1400   :  { %v2771_v8 = vpop.f32.mrb[48].mxu0 }
0x1401   :  { %v2825_v53 = vmul.f32 %v2771_v8, %v2722_v58  ;;  %v3474_v25 = vpop.f32.mrb[49].mxu0  ;;  %v2818_v16 = vpop.f32.mrb[48].mxu1 }
0x1402   :  { %v2827_v35 = vmul.f32 %v2818_v16, %v2726_v15  ;;  %v2774_v7 = vpop.f32.mrb[50].mxu0  ;;  %v3480_v62 = vpop.f32.mrb[49].mxu1  ;;  %v664_v25 = vmul.f32 2.0, %v4118_v31 }
0x1403   :  { %v2826_v28 = vmul.f32 %v2774_v7, %v2724_v9  ;;  %v3475_v43 = vpop.f32.mrb[51].mxu0  ;;  %v2821_v2 = vpop.f32.mrb[50].mxu1  ;;  %v2829_v55 = vsub.f32 %v4578_v41, %v2825_v53  ;;  %v666_v62 = vmul.f32 2.0, %v4122_v33 }
0x1404   :  { %v2828_v38 = vmul.f32 %v2821_v2, %v2728_v49  ;;  %v3481_v12 = vpop.f32.mrb[51].mxu1  ;;  %v2831_v40 = vsub.f32 %v4586_v44, %v2827_v35  ;;  %v665_v49 = vmul.f32 2.0, %v4124_v34 }
0x1405   :  { %v2830_v56 = vsub.f32 %v4582_v22, %v2826_v28  ;;  %v663_v12 = vmul.f32 2.0, %v4120_v32 }
0x1406   :  { %v2832_v58 = vsub.f32 %v4590_v50, %v2828_v38 }
0x1407   :  { %v2833_v8 = vpack.c.bf16 %v2830_v56, %v2829_v55 }
0x1408   :  { %v2834_v20 = vpack.c.bf16 %v2832_v58, %v2831_v40 }
0x1409   :  { %3486 = vmatprep.mubr.msk.bf16.mxu0 %vm284_vm0, %v2833_v8 }
0x140a   :  { %3487 = vmatmul.mubr.msk.bf16.vlgmr.msra.gmra.mrb[52].mxu0 %vm284_vm0, %v2834_v20 }
0x1442   :  { %v603_v51 = vpop.trf.xlu0 }
0x1443   :  { %v654_v15 = vrot.slane %v603_v51, %v4043_v36 }
0x1445   :  { %v659_v53 = vadd.f32 %v654_v15, %v4672_v39  ;;  %v660_v16 = vadd.f32 %v654_v15, %v4675_v3 }
0x1446   :  { %v635_v9 = vpop.trf.xlu1 }
0x1447   :  { %v667_v35 = vsub.f32 %v659_v53, %v663_v12  ;;  %v668_v7 = vsub.f32 %v660_v16, %v664_v25  ;;  %v658_v56 = vrot.slane %v635_v9, %v4043_v36 }
0x1449   :  { %v671_v28 = vmax.f32 %v667_v35, 0.0  ;;  %v672_v43 = vmax.f32 %v668_v7, 0.0  ;;  %v661_v2 = vadd.f32 %v658_v56, %v4677_v17  ;;  %v662_v31 = vadd.f32 %v658_v56, %v4681_v59 }
0x144b   :  { %3664 = vrsqrt.f32 %v671_v28  ;;  %v669_v32 = vsub.f32 %v661_v2, %v665_v49  ;;  %v670_v39 = vsub.f32 %v662_v31, %v666_v62  ;;  %vm677_vm4 = vcmp.eq.f32.partialorder %v671_v28, inf }
0x144c   :  { %3666 = vrsqrt.f32 %v672_v43  ;;  %v680_v33 = vand.u32 2147483648, %v671_v28  ;;  %vm679_vm5 = vcmp.eq.f32.partialorder %v671_v28, 0.0  ;;  %vm684_vm6 = vcmp.eq.f32.partialorder %v672_v43, inf }
0x144d   :  { %v673_v3 = vmax.f32 %v669_v32, 0.0  ;;  %v674_v38 = vmax.f32 %v670_v39, 0.0  ;;  %v687_v17 = vand.u32 2147483648, %v672_v43  ;;  %vm686_vm7 = vcmp.eq.f32.partialorder %v672_v43, 0.0 }
0x144f   :  { %3668 = vrsqrt.f32 %v673_v3  ;;  %vm691_vm8 = vcmp.eq.f32.partialorder %v673_v3, inf  ;;  %vm693_vm9 = vcmp.eq.f32.partialorder %v673_v3, 0.0  ;;  %v694_v53 = vand.u32 2147483648, %v673_v3 }
0x1450   :  { %3670 = vrsqrt.f32 %v674_v38  ;;  %vm698_vm10 = vcmp.eq.f32.partialorder %v674_v38, inf  ;;  %vm700_vm11 = vcmp.eq.f32.partialorder %v674_v38, 0.0  ;;  %v701_v35 = vand.u32 2147483648, %v674_v38 }
0x1451   :  { %3672 = vlog2.f32 %v4341_v29 }
0x1452   :  { %3674 = vlog2.f32 %v4343_v37 }
0x1455   :  { %v3665_v55 = vpop.eup %3664 }
0x1456   :  { %v3667_v36 = vpop.eup %3666  ;;  %v676_v40 = vmul.f32 %v3665_v55, %v671_v28  ;;  %v975_v55 = vmul.f32 %v4166_v13, %v4153_v1 }
0x1457   :  { %v683_v34 = vmul.f32 %v3667_v36, %v672_v43 }
0x1458   :  { %v678_v58 = vsel %vm677_vm4, %v671_v28, %v676_v40 }
0x1459   :  { %v3669_v8 = vpop.eup %3668  ;;  %v681_v59 = vsel %vm679_vm5, %v680_v33, %v678_v58  ;;  %v685_v20 = vsel %vm684_vm6, %v672_v43, %v683_v34  ;;  %v2670_v58 = vmul.f32 %v4634_v48, %v4618_v23 }
0x145a   :  { %v3671_v51 = vpop.eup %3670  ;;  %v688_v15 = vsel %vm686_vm7, %v687_v17, %v685_v20  ;;  %v690_v25 = vmul.f32 %v3669_v8, %v673_v3 }
0x145b   :  { %v703_v12 = vpack.c.bf16 %v688_v15, %v681_v59  ;;  %v697_v16 = vmul.f32 %v3671_v51, %v674_v38 }
0x145c   :  { %v692_v9 = vsel %vm691_vm8, %v673_v3, %v690_v25 }
0x145d   :  { %v4742_v7 = vunpack.c.h.bf16 %v703_v12  ;;  %v4744_v56 = vunpack.c.l.bf16 %v703_v12  ;;  %v695_v62 = vsel %vm693_vm9, %v694_v53, %v692_v9  ;;  %v699_v49 = vsel %vm698_vm10, %v674_v38, %v697_v16  ;;  %v5297_v12 = vld [vmem:[#allocation41_spill] sm:$0xff]  ;;  %v3673_v16 = vpop.eup %3672 }
0x145e   :  { %v702_v28 = vsel %vm700_vm11, %v701_v35, %v699_v49  ;;  %3676 = vlog2.f32 %v5297_v12 }
0x145f   :  { %v924_v43 = vmul.f32 %v4174_v19, %v4742_v7  ;;  %v923_v2 = vmul.f32 %v4162_v11, %v4744_v56  ;;  %v704_v31 = vpack.c.bf16 %v702_v28, %v695_v62  ;;  %v1487_v3 = vmul.f32 %v4318_v57, %v4744_v56  ;;  %v3675_v28 = vpop.eup %3674 }
0x1460   :  { %v983_v19 = vsel %vm874_vm3, %v975_v55, 0.0  ;;  %v1538_v11 = vmul.f32 %v4322_v61, %v4306_v30  ;;  %v1488_v36 = vmul.f32 %v4324_v63, %v4742_v7  ;;  %v2054_v1 = vmul.f32 %v4480_v24, %v4742_v7 }
0x1461   :  { %v930_v32 = vsel %vm874_vm3, %v924_v43, 0.0  ;;  %v927_v39 = vsel %vm874_vm3, %v923_v2, 0.0  ;;  %v1491_v38 = vsel %vm874_vm3, %v1487_v3, 0.0  ;;  %v2053_v33 = vmul.f32 %v4474_v21, %v4744_v56 }
0x1462   :  { %931 = vadd.xlane.f32.xlu1 %v930_v32  ;;  %928 = vadd.xlane.f32.xlu0 %v927_v39  ;;  %v1546_v40 = vsel %vm874_vm3, %v1538_v11, 0.0  ;;  %v1494_v57 = vsel %vm874_vm3, %v1488_v36, 0.0  ;;  %v2104_v30 = vmul.f32 %v4478_v27, %v4462_v6  ;;  %v2060_v34 = vsel %vm874_vm3, %v2054_v1, 0.0  ;;  %v5301_v1 = vld [vmem:[#allocation47_spill] sm:$0xff] }
0x1463   :  { %v2057_v63 = vsel %vm874_vm3, %v2053_v33, 0.0  ;;  %v921_v17 = vunpack.c.l.bf16 %v704_v31  ;;  %v2678_v24 = vsel %vm874_vm3, %v2670_v58, 0.0  ;;  %v976_v21 = vmul.f32 %v4168_v14, %v4156_v4 }
0x1464   :  { %v2112_v8 = vsel %vm874_vm3, %v2104_v30, 0.0  ;;  %v1539_v6 = vmul.f32 %v4326_v0, %v4314_v52  ;;  %v4791_v25 = vunpack.c.h.bf16 %v704_v31  ;;  %v1531_v43 = vmul.f32 0.6931472, %v3673_v16 }
0x1465   :  { %v925_v59 = vmul.f32 %v4166_v13, %v921_v17  ;;  %v986_v20 = vsel %vm874_vm3, %v976_v21, 0.0  ;;  %v1489_v51 = vmul.f32 %v4322_v61, %v921_v17  ;;  %v2105_v13 = vmul.f32 %v4482_v47, %v4470_v45  ;;  %v5298_v61 = vld [vmem:[#allocation42_spill] sm:$0xff] }
0x1466   :  { %1492 = vadd.xlane.f32.xlu1 %v1491_v38  ;;  %984 = vadd.xlane.f32.xlu0 %v983_v19  ;;  %v1549_v4 = vsel %vm874_vm3, %v1539_v6, 0.0  ;;  %v2055_v52 = vmul.f32 %v4478_v27, %v921_v17  ;;  %3678 = vlog2.f32 %v5298_v61  ;;  %v1490_v53 = vmul.f32 %v4326_v0, %v4791_v25  ;;  %v5300_v19 = vld [vmem:[#allocation33_spill] sm:$0xff] }
0x1467   :  { %v933_v23 = vsel %vm874_vm3, %v925_v59, 0.0  ;;  %v1497_v15 = vsel %vm874_vm3, %v1489_v51, 0.0  ;;  %v2115_v29 = vsel %vm874_vm3, %v2105_v13, 0.0  ;;  %v2621_v45 = vmul.f32 %v4634_v48, %v921_v17  ;;  %v5299_v48 = vld [vmem:[#allocation35_spill] sm:$0xff] }
0x1468   :  { %v2063_v37 = vsel %vm874_vm3, %v2055_v52, 0.0  ;;  %v1500_v35 = vsel %vm874_vm3, %v1490_v53, 0.0  ;;  %v926_v49 = vmul.f32 %v4168_v14, %v4791_v25  ;;  %v3677_v31 = vpop.eup %3676  ;;  %v2056_v39 = vmul.f32 %v4482_v47, %v4791_v25 }
0x1469   :  { %v2629_v62 = vsel %vm874_vm3, %v2621_v45, 0.0  ;;  %v1529_v38 = vmul.f32 0.6931472, %v3675_v28  ;;  %v5303_v28 = vld [vmem:[#allocation20_spill] sm:$0xff] }
0x146a   :  { %1547 = vadd.xlane.f32.xlu1 %v1546_v40  ;;  %1495 = vadd.xlane.f32.xlu0 %v1494_v57  ;;  %v936_v36 = vsel %vm874_vm3, %v926_v49, 0.0  ;;  %v2097_v57 = vmul.f32 0.6931472, %v3677_v31  ;;  %3680 = vlog2.f32 %v5303_v28 }
0x146e   :  { %2061 = vadd.xlane.f32.xlu1 %v2060_v34  ;;  %2058 = vadd.xlane.f32.xlu0 %v2057_v63  ;;  %v2066_v63 = vsel %vm874_vm3, %v2056_v39, 0.0 }
0x1470   :  { %v3679_v3 = vpop.eup %3678 }
0x1471   :  { %v2095_v30 = vmul.f32 0.6931472, %v3679_v3 }
0x1472   :  { %2679 = vadd.xlane.f32.xlu1 %v2678_v24  ;;  %2113 = vadd.xlane.f32.xlu0 %v2112_v8  ;;  %v5302_v24 = vld [vmem:[#allocation45_spill] sm:$0xff] }
0x1476   :  { %987 = vadd.xlane.f32.xlu1 %v986_v20  ;;  %934 = vadd.xlane.f32.xlu0 %v933_v23 }
0x147a   :  { %1550 = vadd.xlane.f32.xlu1 %v1549_v4  ;;  %1498 = vadd.xlane.f32.xlu0 %v1497_v15 }
0x147e   :  { %2116 = vadd.xlane.f32.xlu1 %v2115_v29  ;;  %2064 = vadd.xlane.f32.xlu0 %v2063_v37  ;;  %v4800_v27 = vpop.xlane.xlu1 %981 }
0x1480   :  { %v4802_v9 = vpop.xlane.xlu0 %978 }
0x1482   :  { %1501 = vadd.xlane.f32.xlu1 %v1500_v35  ;;  %2630 = vadd.xlane.f32.xlu0 %v2629_v62  ;;  %v1545_v0 = vpop.xlane.xlu1 %1544 }
0x1483   :  { %v1553_v2 = vmul.f32 %v5299_v48, %v1545_v0 }
0x1484   :  { %v1542_v32 = vpop.xlane.xlu0 %1541 }
0x1485   :  { %v1557_v55 = vsub.f32 %v1531_v43, %v1553_v2  ;;  %v1552_v11 = vmul.f32 %v5300_v19, %v1542_v32  ;;  %v5304_v2 = vld [vmem:[#allocation19_spill] sm:$0xff]  ;;  %v5305_v32 = vld [vmem:[#allocation21_spill] sm:$0xff] }
0x1486   :  { %937 = vadd.xlane.f32.xlu0 %v936_v36  ;;  %v2111_v14 = vpop.xlane.xlu1 %2110  ;;  %3682 = vlog2.f32 %v5304_v2  ;;  %v5307_v36 = vld [vmem:[#allocation31_spill] sm:$0xff]  ;;  %v5313_v2 = vld [vmem:[#allocation44_spill] sm:$0xff] }
0x1487   :  { %v1556_v40 = vsub.f32 %v1529_v38, %v1552_v11  ;;  %v2119_v33 = vmul.f32 %v5301_v1, %v2111_v14  ;;  %v1561_v47 = vsel %vm943_vm12, %v1557_v55, 0.0  ;;  %3684 = vlog2.f32 %v5305_v32  ;;  %v5306_v38 = vld [vmem:[#allocation22_spill] sm:$0xff] }
0x1488   :  { %v2108_v34 = vpop.xlane.xlu0 %2107  ;;  %3686 = vlog2.f32 %v4670_v18  ;;  %v5308_v18 = vld [vmem:[#allocation32_spill] sm:$0xff] }
0x1489   :  { %v1560_v58 = vsel %vm943_vm12, %v1556_v40, 0.0  ;;  %v2123_v17 = vsub.f32 %v2097_v57, %v2119_v33  ;;  %v2118_v8 = vmul.f32 %v5302_v24, %v2108_v34  ;;  %3688 = vlog2.f32 %v5306_v38 }
0x148a   :  { %v4818_v21 = vadd.f32 %v1561_v47, %v1560_v58  ;;  %2067 = vadd.xlane.f32.xlu0 %v2066_v63  ;;  %3690 = vlog2.f32 %v5307_v36 }
0x148b   :  { %v2122_v59 = vsub.f32 %v2095_v30, %v2118_v8  ;;  %v2127_v6 = vsel %vm943_vm12, %v2123_v17, 0.0  ;;  %3692 = vlog2.f32 %v5308_v18  ;;  %v3681_v17 = vpop.eup %3680  ;;  %v5309_v8 = vld [vmem:[#allocation43_spill] sm:$0xff] }
0x148c   :  { %3694 = vlog2.f32 %v5309_v8 }
0x148d   :  { %v2126_v20 = vsel %vm943_vm12, %v2122_v59, 0.0  ;;  %3696 = vlog2.f32 %v5313_v2 }
0x148e   :  { %v4822_v23 = vadd.f32 %v2127_v6, %v2126_v20  ;;  %v5310_v6 = vld [vmem:[#allocation24_spill] sm:$0xff] }
0x148f   :  { %v989_v20 = vmul.f32 %v5310_v6, %v4802_v9  ;;  %v5312_v9 = vld [vmem:[#allocation23_spill] sm:$0xff] }
0x1490   :  { %v3683_v59 = vpop.eup %3682 }
0x14dd   :  { %v3488_v51 = vpop.f32.mrb[52].mxu0 }
0x14de   :  { %v2882_v4 = vpop.f32.mrb[53].mxu0  ;;  %v2904_v29 = vsel %vm284_vm0, %v3488_v51, 0.0 }
0x14df   :  { %v3489_v13 = vpop.f32.mrb[54].mxu0  ;;  %v2901_v52 = vsel %vm284_vm0, %v2882_v4, 0.0 }
0x14e0   :  { %v2885_v15 = vpop.f32.mrb[55].mxu0  ;;  %v2906_v53 = vsel %vm284_vm0, %v3489_v13, 0.0 }
0x14e1   :  { %v2902_v12 = vsel %vm284_vm0, %v2885_v15, 0.0 }
0x14e2   :  { %v2903_v61 = vadd.f32 %v2902_v12, %v2901_v52  ;;  %v5311_v52 = vld [vmem:[#allocation26_spill] sm:$0xff] }
0x14e3   :  { %v990_v12 = vmul.f32 %v5311_v52, %v4800_v27 }
0x14e4   :  { %v2905_v37 = vadd.f32 %v2904_v29, %v2903_v61 }
0x14e6   :  { %v2907_v45 = vadd.f32 %v2906_v53, %v2905_v37  ;;  %v966_v53 = vmul.f32 0.6931472, %v3681_v17 }
0x14e8   :  { %v2908_v16 = vrot.slane %v2907_v45, 4 }
0x14ea   :  { %v2909_v35 = vadd.f32 %v2908_v16, %v2907_v45 }
0x14ec   :  { %v2910_v62 = vrot.slane %v2909_v35, 2 }
0x14ee   :  { %v2911_v49 = vadd.f32 %v2910_v62, %v2909_v35  ;;  %v968_v62 = vmul.f32 0.6931472, %v3683_v59 }
0x14ef   :  { %v4829_v0 = vpop.xlane.xlu1 %931  ;;  %v4831_v43 = vpop.xlane.xlu0 %928 }
0x14f0   :  { %v2912_v31 = vrot.slane %v2911_v49, 1  ;;  %v994_v38 = vsub.f32 %v968_v62, %v990_v12 }
0x14f2   :  { %v2913_v39 = vadd.f32 %v2912_v31, %v2911_v49  ;;  %v993_v31 = vsub.f32 %v966_v53, %v989_v20 }
0x14f3   :  { %v4836_v3 = vpop.xlane.xlu1 %1492  ;;  %v985_v55 = vpop.xlane.xlu0 %984 }
0x14f4   :  { %v2914_v11 = vmul.f32 0.03125, %v2913_v39  ;;  %v991_v16 = vmul.f32 %v5312_v9, %v985_v55  ;;  %v997_v20 = vsel %vm943_vm12, %v993_v31, 0.0 }
0x14f6   :  { %v4840_v14 = vsub.f32 %v2882_v4, %v2914_v11  ;;  %v4842_v40 = vsub.f32 %v2885_v15, %v2914_v11  ;;  %v4844_v57 = vsub.f32 %v3488_v51, %v2914_v11  ;;  %v4846_v33 = vsub.f32 %v3489_v13, %v2914_v11  ;;  %v3685_v15 = vpop.eup %3684 }
0x14f7   :  { %v1548_v30 = vpop.xlane.xlu1 %1547  ;;  %v4848_v34 = vpop.xlane.xlu0 %1495  ;;  %v970_v27 = vmul.f32 0.6931472, %v3685_v15  ;;  %v998_v15 = vsel %vm943_vm12, %v994_v38, 0.0 }
0x14f8   :  { %v2919_v63 = vmul.f32 %v4840_v14, %v4840_v14  ;;  %v2920_v47 = vmul.f32 %v4842_v40, %v4842_v40  ;;  %v2921_v58 = vmul.f32 %v4844_v57, %v4844_v57  ;;  %v2922_v51 = vmul.f32 %v4846_v33, %v4846_v33  ;;  %v3687_v35 = vpop.eup %3686 }
0x14f9   :  { %v3689_v28 = vpop.eup %3688  ;;  %v4875_v17 = vmul.f32 0.6931472, %v3687_v35  ;;  %v5315_v35 = vld [vmem:[#allocation46_spill] sm:$0xff] }
0x14fa   :  { %v2923_v4 = vsel %vm284_vm0, %v2919_v63, 0.0  ;;  %v2924_v13 = vsel %vm284_vm0, %v2920_v47, 0.0  ;;  %v2926_v45 = vsel %vm284_vm0, %v2921_v58, 0.0  ;;  %v2928_v32 = vsel %vm284_vm0, %v2922_v51, 0.0  ;;  %v3691_v39 = vpop.eup %3690  ;;  %v5314_v47 = vld [vmem:[#allocation34_spill] sm:$0xff] }
0x14fb   :  { %v2925_v61 = vadd.f32 %v2924_v13, %v2923_v4  ;;  %v4866_v29 = vpop.xlane.xlu1 %2061  ;;  %v4868_v37 = vpop.xlane.xlu0 %2058  ;;  %v995_v63 = vsub.f32 %v970_v27, %v991_v16  ;;  %v1554_v58 = vmul.f32 %v5314_v47, %v1548_v30  ;;  %v1533_v4 = vmul.f32 0.6931472, %v3691_v39 }
0x14fc   :  { %v3693_v59 = vpop.eup %3692 }
0x14fd   :  { %v2927_v49 = vadd.f32 %v2926_v45, %v2925_v61  ;;  %v3695_v13 = vpop.eup %3694  ;;  %v972_v61 = vmul.f32 0.6931472, %v3689_v28  ;;  %v1000_v45 = vsel %vm943_vm12, %v995_v63, 0.0  ;;  %v1558_v16 = vsub.f32 %v1533_v4, %v1554_v58  ;;  %v5317_v58 = vld [vmem:[#allocation36_spill] sm:$0xff] }
0x14fe   :  { %v2099_v27 = vmul.f32 0.6931472, %v3695_v13  ;;  %v1535_v22 = vmul.f32 0.6931472, %v3693_v59  ;;  %v940_v13 = vmul.f32 %v5311_v52, %v4829_v0 }
0x14ff   :  { %v2929_v11 = vadd.f32 %v2928_v32, %v2927_v49  ;;  %v2680_v36 = vpop.xlane.xlu1 %2679  ;;  %v2114_v18 = vpop.xlane.xlu0 %2113  ;;  %v5316_v49 = vld [vmem:[#allocation25_spill] sm:$0xff]  ;;  %v999_v32 = vadd.f32 %v998_v15, %v997_v20  ;;  %v1563_v28 = vsel %vm943_vm12, %v1558_v16, 0.0 }
0x1500   :  { %v4878_v55 = vmul.f32 %v4690_v46, %v2680_v36  ;;  %v2120_v62 = vmul.f32 %v5315_v35, %v2114_v18  ;;  %v1564_v15 = vadd.f32 %v1563_v28, %v4818_v21 }
0x1501   :  { %v2930_v8 = vrot.slane %v2929_v11, 4  ;;  %v1001_v51 = vadd.f32 %v1000_v45, %v999_v32  ;;  %v939_v45 = vmul.f32 %v5310_v6, %v4831_v43  ;;  %v1504_v6 = vmul.f32 %v5299_v48, %v4848_v34 }
0x1503   :  { %v2931_v12 = vadd.f32 %v2930_v8, %v2929_v11  ;;  %v988_v53 = vpop.xlane.xlu1 %987  ;;  %v935_v30 = vpop.xlane.xlu0 %934  ;;  %v2124_v8 = vsub.f32 %v2099_v27, %v2120_v62  ;;  %v5318_v62 = vld [vmem:[#allocation48_spill] sm:$0xff]  ;;  %v944_v43 = vsel %vm943_vm12, %v939_v45, 0.0  ;;  %v1508_v34 = vsel %vm943_vm12, %v1504_v6, 0.0 }
0x1504   :  { %v992_v2 = vmul.f32 %v5316_v49, %v988_v53  ;;  %v3697_v11 = vpop.eup %3696  ;;  %v941_v32 = vmul.f32 %v5312_v9, %v935_v30  ;;  %v2619_v9 = vmul.f32 %v4630_v42, %v4744_v56 }
0x1505   :  { %v2932_v31 = vrot.slane %v2931_v12, 2  ;;  %v2101_v59 = vmul.f32 0.6931472, %v3697_v11  ;;  %v2129_v16 = vsel %vm943_vm12, %v2124_v8, 0.0  ;;  %v2070_v8 = vmul.f32 %v5301_v1, %v4866_v29  ;;  %v3230_v1 = vld [vmem:[%s5187_s9 + $0x3] ss:$0 sm:$0xff] }
0x1506   :  { %v996_v39 = vsub.f32 %v972_v61, %v992_v2  ;;  %v2130_v21 = vadd.f32 %v2129_v16, %v4822_v23  ;;  %v1503_v23 = vmul.f32 %v5300_v19, %v4836_v3  ;;  %v947_v30 = vsel %vm943_vm12, %v941_v32, 0.0  ;;  %s3860_s9 = smov 32  }
0x1507   :  { %v2933_v36 = vadd.f32 %v2932_v31, %v2931_v12  ;;  %v1551_v41 = vpop.xlane.xlu1 %1550  ;;  %v1499_v38 = vpop.xlane.xlu0 %1498  ;;  %v945_v31 = vsel %vm943_vm12, %v940_v13, 0.0  ;;  %v2623_v19 = vsel %vm874_vm3, %v2619_v9, 0.0  ;;  %v2945_v45 = vmul.f32 %v3230_v1, %v4844_v57  ;;  %v5324_v9 = vld [vmem:[#allocation40_spill] sm:$0xff] }
0x1508   :  { %v1002_v63 = vsel %vm943_vm12, %v996_v39, 0.0  ;;  %v1555_v4 = vmul.f32 %v5317_v58, %v1551_v41  ;;  %v1505_v11 = vmul.f32 %v5314_v47, %v1499_v38  ;;  %v946_v28 = vadd.f32 %v945_v31, %v944_v43 }
0x1509   :  { %v2934_v18 = vrot.slane %v2933_v36, 1  ;;  %v1003_v50 = vadd.f32 %v1002_v63, %v1001_v51  ;;  %v2069_v63 = vmul.f32 %v5302_v24, %v4868_v37  ;;  %v2671_v47 = vmul.f32 %v4638_v26, %v4626_v5 }
0x150a   :  { %v1559_v53 = vsub.f32 %v1535_v22, %v1555_v4  ;;  %v948_v3 = vadd.f32 %v947_v30, %v946_v28  ;;  %v1507_v29 = vsel %vm943_vm12, %v1503_v23, 0.0  ;;  %v1510_v38 = vsel %vm943_vm12, %v1505_v11, 0.0  ;;  %v5325_v23 = vld [vmem:[#allocation39_spill] sm:$0xff]  ;;  %v5326_v30 = vld [vmem:[#allocation37_spill] sm:$0xff] }
0x150b   :  { %v2935_v20 = vadd.f32 %v2934_v18, %v2933_v36  ;;  %v2117_v12 = vpop.xlane.xlu1 %2116  ;;  %1004 = vadd.xlane.f32.xlu1 %v1003_v50  ;;  %v2065_v61 = vpop.xlane.xlu0 %2064  ;;  %v2073_v5 = vsel %vm943_vm12, %v2069_v63, 0.0  ;;  %v2946_v16 = vmul.f32 %v3230_v1, %v4846_v33  ;;  %v5328_v11 = vld [vmem:[#allocation49_spill] sm:$0xff]  ;;  %v5329_v63 = vld [vmem:[#allocation58_spill] sm:$0xff] }
0x150c   :  { %v1565_v41 = vsel %vm943_vm12, %v1559_v53, 0.0  ;;  %v2121_v51 = vmul.f32 %v5318_v62, %v2117_v12  ;;  %v2071_v24 = vmul.f32 %v5315_v35, %v2065_v61  ;;  %v2074_v53 = vsel %vm943_vm12, %v2070_v8, 0.0 }
0x150d   :  { %v2936_v22 = vmul.f32 0.03125, %v2935_v20  ;;  %v1566_v2 = vadd.f32 %v1565_v41, %v1564_v15  ;;  %v2943_v15 = vmul.f32 %v3230_v1, %v4840_v14  ;;  %v2622_v12 = vmul.f32 %v4638_v26, %v4791_v25 }
0x150e   :  { %v2125_v0 = vsub.f32 %v2101_v59, %v2121_v51  ;;  %v2681_v59 = vsel %vm874_vm3, %v2671_v47, 0.0  ;;  %v2944_v61 = vmul.f32 %v3230_v1, %v4842_v40  ;;  %v2076_v41 = vsel %vm943_vm12, %v2071_v24, 0.0  ;;  %v5319_v40 = vld [vmem:[#allocation57_spill] sm:$0xff] }
0x150f   :  { %v2947_v52 = vadd.f32 1e-05, %v2936_v22  ;;  %1567 = vadd.xlane.f32.xlu1 %v1566_v2  ;;  %v4900_v50 = vpop.xlane.xlu0 %2630  ;;  %v1502_v39 = vpop.xlane.xlu1 %1501  ;;  %v2075_v51 = vadd.f32 %v2074_v53, %v2073_v5  ;;  %v2669_v57 = vmul.f32 %v5319_v40, %v4624_v10  ;;  %v2632_v33 = vsel %vm874_vm3, %v2622_v12, 0.0  ;;  %v5321_v10 = vld [vmem:[#allocation38_spill] sm:$0xff] }
0x1510   :  { %v2131_v27 = vsel %vm943_vm12, %v2125_v0, 0.0  ;;  %v1506_v56 = vmul.f32 %v5317_v58, %v1502_v39  ;;  %v1509_v58 = vadd.f32 %v1508_v34, %v1507_v29 }
0x1511   :  { %3698 = vrsqrt.f32 %v2947_v52  ;;  %v2132_v36 = vadd.f32 %v2131_v27, %v2130_v21  ;;  %v2077_v25 = vadd.f32 %v2076_v41, %v2075_v51  ;;  %v5320_v21 = vld [vmem:[#allocation56_spill] sm:$0xff]  ;;  %v2675_v43 = vsel %vm874_vm3, %v2669_v57, 0.0 }
0x1512   :  { %v1512_v13 = vsel %vm943_vm12, %v1506_v56, 0.0  ;;  %v1511_v35 = vadd.f32 %v1510_v38, %v1509_v58  ;;  %v2668_v31 = vmul.f32 %v4630_v42, %v5320_v21  ;;  %v2620_v27 = vmul.f32 %v5319_v40, %v4742_v7  ;;  %v5323_v42 = vld [vmem:[#allocation50_spill] sm:$0xff]  ;;  %v5327_v7 = vld [vmem:[#allocation51_spill] sm:$0xff] }
0x1513   :  { %2133 = vadd.xlane.f32.xlu1 %v2132_v36  ;;  %v938_v48 = vpop.xlane.xlu0 %937  ;;  %v5322_v36 = vld [vmem:[#allocation52_spill] sm:$0xff]  ;;  %3700 = vlog2.f32 %v5329_v63  ;;  %v2637_v63 = vmul.f32 %v4690_v46, %v4900_v50 }
0x1514   :  { %v942_v4 = vmul.f32 %v5316_v49, %v938_v48  ;;  %v1513_v22 = vadd.f32 %v1512_v13, %v1511_v35  ;;  %v2672_v6 = vsel %vm874_vm3, %v2668_v31, 0.0  ;;  %v2626_v39 = vsel %vm874_vm3, %v2620_v27, 0.0 }
0x1516   :  { %v949_v37 = vsel %vm943_vm12, %v942_v4, 0.0 }
0x1517   :  { %2624 = vadd.xlane.f32.xlu1 %v2623_v19  ;;  %v2068_v49 = vpop.xlane.xlu0 %2067  ;;  %v950_v18 = vadd.f32 %v949_v37, %v948_v3  ;;  %v5330_v19 = vld [vmem:[#allocation59_spill] sm:$0xff]  ;;  %v5331_v37 = vld [vmem:[#allocation60_spill] sm:$0xff] }
0x1518   :  { %v2072_v20 = vmul.f32 %v5318_v62, %v2068_v49  ;;  %3702 = vlog2.f32 %v5330_v19 }
0x1519   :  { %951 = vadd.xlane.f32.xlu0 %v950_v18  ;;  %3704 = vlog2.f32 %v5331_v37 }
0x151a   :  { %v2078_v14 = vsel %vm943_vm12, %v2072_v20, 0.0 }
0x151b   :  { %v3699_v62 = vpop.eup %3698  ;;  %2682 = vadd.xlane.f32.xlu1 %v2681_v59  ;;  %v2079_v52 = vadd.f32 %v2078_v14, %v2077_v25 }
0x151c   :  { %v4943_v2 = vmul.f32 %v3699_v62, %v2944_v61  ;;  %v4945_v32 = vmul.f32 %v3699_v62, %v2945_v45  ;;  %v4947_v0 = vmul.f32 %v3699_v62, %v2946_v16  ;;  %v4949_v26 = vmul.f32 %v3699_v62, %v2943_v15 }
0x151d   :  { %1514 = vadd.xlane.f32.xlu0 %v1513_v22  ;;  %v3701_v59 = vpop.eup %3700 }
0x151f   :  { %2633 = vadd.xlane.f32.xlu1 %v2632_v33  ;;  %v2661_v33 = vmul.f32 0.6931472, %v3701_v59 }
0x1521   :  { %2080 = vadd.xlane.f32.xlu0 %v2079_v52 }
0x1522   :  { %v3703_v12 = vpop.eup %3702 }
0x1523   :  { %2676 = vadd.xlane.f32.xlu1 %v2675_v43  ;;  %v2663_v40 = vmul.f32 0.6931472, %v3703_v12 }
0x1525   :  { %2673 = vadd.xlane.f32.xlu0 %v2672_v6  ;;  %v3705_v6 = vpop.eup %3704 }
0x1529   :  { %2627 = vadd.xlane.f32.xlu0 %v2626_v39 }
0x1534   :  { %2979 = vrot.lane.b32.xlu1 %v5321_v10, %s3860_s9 }
0x1538   :  { %2991 = vrot.lane.b32.xlu1 %v5322_v36, %s3859_s14 }
0x153c   :  { %2995 = vrot.lane.b32.xlu1 %v5323_v42, %s3859_s14 }
0x153f   :  { %2975 = vrot.lane.b32.xlu0 %v5324_v9, %s3860_s9 }
0x1540   :  { %2981 = vrot.lane.b32.xlu1 %v5325_v23, %s3860_s9 }
0x1543   :  { %2977 = vrot.lane.b32.xlu0 %v5326_v30, %s3860_s9  ;;  %v5332_v30 = vld [vmem:[#allocation61_spill] sm:$0xff] }
0x1544   :  { %2997 = vrot.lane.b32.xlu1 %v5327_v7, %s3859_s14 }
0x1547   :  { %2993 = vrot.lane.b32.xlu0 %v5328_v11, %s3859_s14 }
0x1598   :  { %v1005_v28 = vpop.xlane.xlu1 %1004 }
0x1599   :  { %v1006_v48 = vrot.slane %v1005_v28, 4 }
0x159b   :  { %v1007_v56 = vadd.f32 %v1006_v48, %v1005_v28 }
0x159c   :  { %v1568_v8 = vpop.xlane.xlu1 %1567 }
0x159d   :  { %v1569_v4 = vrot.slane %v1568_v8, 4  ;;  %v1008_v47 = vrot.slane %v1007_v56, 2 }
0x159f   :  { %v1570_v1 = vadd.f32 %v1569_v4, %v1568_v8  ;;  %v1009_v20 = vadd.f32 %v1008_v47, %v1007_v56  ;;  %v2667_v8 = vmul.f32 0.6931472, %v3705_v6 }
0x15a0   :  { %v2134_v34 = vpop.xlane.xlu1 %2133 }
0x15a1   :  { %v2135_v29 = vrot.slane %v2134_v34, 4  ;;  %v1571_v18 = vrot.slane %v1570_v1, 2  ;;  %v1010_v62 = vrot.slane %v1009_v20, 1 }
0x15a3   :  { %v2136_v53 = vadd.f32 %v2135_v29, %v2134_v34  ;;  %v1572_v51 = vadd.f32 %v1571_v18, %v1570_v1  ;;  %v1011_v10 = vadd.f32 %v1010_v62, %v1009_v20 }
0x15a4   :  { %v2625_v3 = vpop.xlane.xlu1 %2624 }
0x15a5   :  { %v2137_v16 = vrot.slane %v2136_v53, 2  ;;  %v1573_v36 = vrot.slane %v1572_v51, 1  ;;  %v2635_v28 = vmul.f32 %v5332_v30, %v2625_v3 }
0x15a6   :  { %v952_v38 = vpop.xlane.xlu0 %951 }
0x15a7   :  { %v953_v24 = vrot.slane %v952_v38, 4  ;;  %v2138_v42 = vadd.f32 %v2137_v16, %v2136_v53  ;;  %v1574_v4 = vadd.f32 %v1573_v36, %v1572_v51  ;;  %v2639_v50 = vsel %vm943_vm12, %v2635_v28, 0.0  ;;  %v5337_v36 = vld [vmem:[#allocation28_spill] sm:$0xff] }
0x15a8   :  { %v2683_v58 = vpop.xlane.xlu1 %2682 }
0x15a9   :  { %v954_v49 = vadd.f32 %v953_v24, %v952_v38  ;;  %v2687_v27 = vmul.f32 %v4694_v60, %v2683_v58  ;;  %v2139_v47 = vrot.slane %v2138_v42, 1  ;;  %v5333_v58 = vsub.f32 %v4875_v17, %v4878_v55 }
0x15aa   :  { %v1515_v5 = vpop.xlane.xlu0 %1514 }
0x15ab   :  { %v955_v13 = vrot.slane %v954_v49, 2  ;;  %v1516_v15 = vrot.slane %v1515_v5, 4  ;;  %v2691_v1 = vsub.f32 %v2667_v8, %v2687_v27  ;;  %v2695_v46 = vsel %vm943_vm12, %v5333_v58, 0.0 }
0x15ac   :  { %v2634_v35 = vpop.xlane.xlu1 %2633 }
0x15ad   :  { %v1517_v61 = vadd.f32 %v1516_v15, %v1515_v5  ;;  %v956_v45 = vadd.f32 %v955_v13, %v954_v49  ;;  %v2638_v49 = vmul.f32 %v4694_v60, %v2634_v35  ;;  %v2697_v13 = vsel %vm943_vm12, %v2691_v1, 0.0  ;;  %v3231_v60 = vld [vmem:[%s5188_s10 + $0x3] ss:$0 sm:$0xff] }
0x15ae   :  { %v2081_v41 = vpop.xlane.xlu0 %2080  ;;  %v2140_v15 = vadd.f32 %v2139_v47, %v2138_v42  ;;  %v2961_v35 = vadd.f32 %v3231_v60, %v4945_v32  ;;  %v2959_v16 = vadd.f32 %v3231_v60, %v4949_v26  ;;  %v2960_v51 = vadd.f32 %v3231_v60, %v4943_v2 }
0x15af   :  { %v1518_v22 = vrot.slane %v1517_v61, 2  ;;  %v2082_v14 = vrot.slane %v2081_v41, 4  ;;  %v957_v25 = vrot.slane %v956_v45, 1  ;;  %v2644_v17 = vsel %vm943_vm12, %v2638_v49, 0.0 }
0x15b0   :  { %v2677_v57 = vpop.xlane.xlu1 %2676 }
0x15b1   :  { %v2083_v52 = vadd.f32 %v2082_v14, %v2081_v41  ;;  %v2685_v21 = vmul.f32 %v4692_v54, %v2677_v57  ;;  %v958_v31 = vadd.f32 %v957_v25, %v956_v45  ;;  %v1519_v43 = vadd.f32 %v1518_v22, %v1517_v61  ;;  %v5334_v14 = vld [vmem:[#allocation55_spill] sm:$0xff]  ;;  %v5335_v57 = vld [vmem:[#allocation53_spill] sm:$0xff] }
0x15b2   :  { %v2674_v39 = vpop.xlane.xlu0 %2673  ;;  %v2965_v61 = vmax.f32 %v2961_v35, 0.0  ;;  %v2962_v45 = vadd.f32 %v3231_v60, %v4947_v0  ;;  %v2963_v22 = vmax.f32 %v2959_v16, 0.0  ;;  %v5336_v0 = vld [vmem:[#allocation54_spill] sm:$0xff] }
0x15b3   :  { %v2084_v9 = vrot.slane %v2083_v52, 2  ;;  %v2689_v23 = vsub.f32 %v2663_v40, %v2685_v21  ;;  %v2684_v7 = vmul.f32 %v5332_v30, %v2674_v39  ;;  %3502 = vpush %v958_v31  ;;  %v1520_v11 = vrot.slane %v1519_v43, 1 }
0x15b4   :  { %3504 = vpush %v1011_v10  ;;  %v2969_v41 = vadd.f32 %v2965_v61, %v4586_v44  ;;  %v2966_v62 = vmax.f32 %v2962_v45, 0.0  ;;  %v2964_v40 = vmax.f32 %v2960_v51, 0.0  ;;  %v2967_v32 = vadd.f32 %v2963_v22, %v5335_v57  ;;  %v2980_v44 = vpop.permute.xlu1 %2979 }
0x15b5   :  { %v2688_v48 = vsub.f32 %v2661_v33, %v2684_v7  ;;  %v1521_v34 = vadd.f32 %v1520_v11, %v1519_v43  ;;  %v2085_v19 = vadd.f32 %v2084_v9, %v2083_v52  ;;  %v2693_v29 = vsel %vm943_vm12, %v2689_v23, 0.0  ;;  %v5338_v9 = vld [vmem:[#allocation30_spill] sm:$0xff] }
0x15b6   :  { %v2628_v56 = vpop.xlane.xlu0 %2627  ;;  %v2970_v25 = vadd.f32 %v2966_v62, %v5334_v14  ;;  %v2968_v33 = vadd.f32 %v2964_v40, %v5336_v0  ;;  %v3021_v42 = vsel %vm284_vm0, %v5337_v36, %v2980_v44 }
0x15b7   :  { %v2692_v38 = vsel %vm943_vm12, %v2688_v48, 0.0  ;;  %v2636_v24 = vmul.f32 %v4692_v54, %v2628_v56  ;;  %3506 = vpush %v1521_v34  ;;  %v2086_v3 = vrot.slane %v2085_v19, 1  ;;  %v2642_v54 = vsel %vm943_vm12, %v2637_v63, 0.0 }
0x15b8   :  { %v2694_v37 = vadd.f32 %v2693_v29, %v2692_v38  ;;  %3508 = vpush %v1574_v4  ;;  %v2992_v2 = vpop.permute.xlu1 %2991  ;;  %v5339_v4 = vld [vmem:[#allocation29_spill] sm:$0xff] }
0x15b9   :  { %v2640_v18 = vsel %vm943_vm12, %v2636_v24, 0.0  ;;  %v2087_v5 = vadd.f32 %v2086_v3, %v2085_v19 }
0x15ba   :  { %v2641_v53 = vadd.f32 %v2640_v18, %v2639_v50  ;;  %v2696_v20 = vadd.f32 %v2695_v46, %v2694_v37  ;;  %v2976_v52 = vpop.permute.xlu0 %2975  ;;  %v5340_v37 = vld [vmem:[#allocation27_spill] sm:$0xff] }
0x15bb   :  { %3510 = vpush %v2087_v5  ;;  %v3019_v23 = vsel %vm284_vm0, %v5338_v9, %v2976_v52 }
0x15bc   :  { %v2643_v59 = vadd.f32 %v2642_v54, %v2641_v53  ;;  %v2698_v12 = vadd.f32 %v2697_v13, %v2696_v20  ;;  %3512 = vpush %v2140_v15  ;;  %v2996_v26 = vpop.permute.xlu1 %2995  ;;  %v3024_v63 = vsel %vm3023_vm13, %v3019_v23, %v2992_v2 }
0x15bd   :  { %v3026_v11 = vsel %vm3023_vm13, %v3021_v42, %v2996_v26 }
0x15be   :  { %2699 = vadd.xlane.f32.xlu1 %v2698_v12  ;;  %v2645_v55 = vadd.f32 %v2644_v17, %v2643_v59  ;;  %v2978_v31 = vpop.permute.xlu0 %2977 }
0x15bf   :  { %v3020_v3 = vsel %vm284_vm0, %v5340_v37, %v2978_v31 }
0x15c0   :  { %2646 = vadd.xlane.f32.xlu0 %v2645_v55  ;;  %v2982_v21 = vpop.permute.xlu1 %2981 }
0x15c1   :  { %v3022_v19 = vsel %vm284_vm0, %v5339_v4, %v2982_v21 }
0x15c2   :  { %v2994_v6 = vpop.permute.xlu0 %2993 }
0x15c3   :  { %v3025_v50 = vsel %vm3023_vm13, %v3020_v3, %v2994_v6 }
0x15c4   :  { %v2998_v43 = vpop.permute.xlu1 %2997 }
0x15c5   :  { %v3027_v38 = vsel %vm3023_vm13, %v3022_v19, %v2998_v43 }
0x15cf   :  { %3011 = vrot.lane.b32.xlu1 %v2969_v41, %s3858_s30 }
0x15d3   :  { %3013 = vrot.lane.b32.xlu1 %v2970_v25, %s3858_s30 }
0x15d6   :  { %3007 = vrot.lane.b32.xlu0 %v2967_v32, %s3858_s30 }
0x15da   :  { %3009 = vrot.lane.b32.xlu0 %v2968_v33, %s3858_s30 }
0x15e4   :  { %s3503_s10 = spop %3502 }
0x15e5   :  { %s962_s1 = smul.f32 0.03125, %s3503_s10  ;;  %s3505_s23 = spop %3504 }
0x15e6   :  { %s1015_s24 = smul.f32 0.03125, %s3505_s23 }
0x15e7   :  { %964 = sst [smem:[#allocation11]] %s962_s1 }
0x15e8   :  { %1017 = sst [smem:[#allocation12]] %s1015_s24  ;;  %s3507_s25 = spop %3506 }
0x15e9   :  { %s1525_s27 = smul.f32 0.03125, %s3507_s25  ;;  %s3509_s29 = spop %3508 }
0x15ea   :  { %s1578_s6 = smul.f32 0.03125, %s3509_s29 }
0x15eb   :  { %1527 = sst [smem:[#allocation11 + $0x1]] %s1525_s27 }
0x15ec   :  { %1580 = sst [smem:[#allocation12 + $0x1]] %s1578_s6  ;;  %s3511_s28 = spop %3510 }
0x15ed   :  { %s2091_s15 = smul.f32 0.03125, %s3511_s28  ;;  %s3513_s5 = spop %3512 }
0x15ee   :  { %s2144_s20 = smul.f32 0.03125, %s3513_s5 }
0x15ef   :  { %2093 = sst [smem:[#allocation11 + $0x2]] %s2091_s15 }
0x15f0   :  { %2146 = sst [smem:[#allocation12 + $0x2]] %s2144_s20 }
0x164b   :  { %v2700_v27 = vpop.xlane.xlu1 %2699 }
0x164c   :  { %v2701_v39 = vrot.slane %v2700_v27, 4 }
0x164d   :  { %v2647_v10 = vpop.xlane.xlu0 %2646 }
0x164e   :  { %v2702_v30 = vadd.f32 %v2701_v39, %v2700_v27  ;;  %v2648_v7 = vrot.slane %v2647_v10, 4 }
0x164f   :  { %v3012_v28 = vpop.permute.xlu1 %3011 }
0x1650   :  { %v2703_v8 = vrot.slane %v2702_v30, 2  ;;  %v2649_v48 = vadd.f32 %v2648_v7, %v2647_v10  ;;  %v3031_v34 = vsel %vm3028_vm14, %v3026_v11, %v3012_v28 }
0x1651   :  { %3065 = vxpose.xlu1.b32.start [1/2] (short) %v3031_v34, 128  ;;  %v3008_v56 = vpop.permute.xlu0 %3007 }
0x1652   :  { %v2650_v47 = vrot.slane %v2649_v48, 2  ;;  %v3029_v1 = vsel %vm3028_vm14, %v3024_v63, %v3008_v56  ;;  %v2704_v29 = vadd.f32 %v2703_v8, %v2702_v30 }
0x1653   :  { %v3014_v24 = vpop.permute.xlu1 %3013  ;;  %3033 = vxpose.xlu0.b32.start [1/2] (short) %v3029_v1, 128 }
0x1654   :  { %v3032_v58 = vsel %vm3028_vm14, %v3027_v38, %v3014_v24  ;;  %v2651_v46 = vadd.f32 %v2650_v47, %v2649_v48  ;;  %v2705_v18 = vrot.slane %v2704_v29, 1 }
0x1655   :  { %3066 = vxpose.xlu1.b32.end [2/2] (short) %v3032_v58, 128  ;;  %v3010_v49 = vpop.permute.xlu0 %3009 }
0x1656   :  { %v3030_v53 = vsel %vm3028_vm14, %v3025_v50, %v3010_v49  ;;  %v2652_v5 = vrot.slane %v2651_v46, 1  ;;  %v2706_v54 = vadd.f32 %v2705_v18, %v2704_v29 }
0x1657   :  { %3034 = vxpose.xlu0.b32.end [2/2] (short) %v3030_v53, 128 }
0x1658   :  { %v2653_v20 = vadd.f32 %v2652_v5, %v2651_v46 }
0x165a   :  { %3514 = vpush %v2653_v20 }
0x165b   :  { %3516 = vpush %v2706_v54 }
0x168b   :  { %s3515_s30 = spop %3514 }
0x168c   :  { %s2657_s16 = smul.f32 0.03125, %s3515_s30  ;;  %s3517_s4 = spop %3516 }
0x168d   :  { %s2710_s26 = smul.f32 0.03125, %s3517_s4 }
0x168e   :  { %2659 = sst [smem:[#allocation11 + $0x3]] %s2657_s16 }
0x168f   :  { %2712 = sst [smem:[#allocation12 + $0x3]] %s2710_s26 }
0x1690   :  { %3825 = shalt.err (!%p3822_p0)
}
0x1691   :  { %s3861_s3 = smov [#allocation11]   ;;  %s3826_s10 = scalar_lea.hbm %s5191_s13, 16 }
0x1692   :  { %3138 = dma.smem_to_hbm %s3861_s3, 16, %s5190_s12, [#allocation4]  }
0x1693   :  { %p3827_p1 = scmp.ne.s32.totalorder %s5191_s13, %s3826_s10  ;;  %p3830_p2 = scmp.lt.u32.totalorder %s3826_s10, %s5191_s13 }
0x1695   :  { %p3832_p3 = pnand %p3830_p2, %p3827_p1 }
0x1697   :  { %3835 = shalt.err (!%p3832_p3)
}
0x1698   :  { %s3862_s27 = smov [#allocation12]  }
0x1699   :  { %3146 = dma.smem_to_hbm %s3862_s27, 16, %s5191_s13, [#allocation13]  }
0x16d1   :  { %v3081_v13 = vpop.trf.xlu1 }
0x16d2   :  { %3113 = vst.msk [vmem:[%s5189_s11 + $0x80] sm:$0xff] %vm874_vm3, %v3081_v13 }
0x16d3   :  { %v3049_v15 = vpop.trf.xlu0 }
0x16d4   :  { %3097 = vst.msk [vmem:[%s5189_s11] sm:$0xff] %vm874_vm3, %v3049_v15 }
0x16d5   :  { %v3082_v59 = vpop.trf.xlu1 }
0x16d6   :  { %3114 = vst.msk [vmem:[%s5189_s11 + $0x88] sm:$0xff] %vm874_vm3, %v3082_v59 }
0x16d7   :  { %v3050_v12 = vpop.trf.xlu0 }
0x16d8   :  { %3098 = vst.msk [vmem:[%s5189_s11 + $0x8] sm:$0xff] %vm874_vm3, %v3050_v12 }
0x16d9   :  { %v3083_v17 = vpop.trf.xlu1 }
0x16da   :  { %3115 = vst.msk [vmem:[%s5189_s11 + $0x90] sm:$0xff] %vm874_vm3, %v3083_v17 }
0x16db   :  { %v3051_v55 = vpop.trf.xlu0 }
0x16dc   :  { %3099 = vst.msk [vmem:[%s5189_s11 + $0x10] sm:$0xff] %vm874_vm3, %v3051_v55 }
0x16dd   :  { %v3084_v60 = vpop.trf.xlu1 }
0x16de   :  { %3116 = vst.msk [vmem:[%s5189_s11 + $0x98] sm:$0xff] %vm874_vm3, %v3084_v60 }
0x16df   :  { %v3052_v35 = vpop.trf.xlu0 }
0x16e0   :  { %3100 = vst.msk [vmem:[%s5189_s11 + $0x18] sm:$0xff] %vm874_vm3, %v3052_v35 }
0x16e1   :  { %v3085_v61 = vpop.trf.xlu1 }
0x16e2   :  { %3117 = vst.msk [vmem:[%s5189_s11 + $0xa0] sm:$0xff] %vm874_vm3, %v3085_v61 }
0x16e3   :  { %v3053_v45 = vpop.trf.xlu0 }
0x16e4   :  { %3101 = vst.msk [vmem:[%s5189_s11 + $0x20] sm:$0xff] %vm874_vm3, %v3053_v45 }
0x16e5   :  { %v3086_v16 = vpop.trf.xlu1 }
0x16e6   :  { %3118 = vst.msk [vmem:[%s5189_s11 + $0xa8] sm:$0xff] %vm874_vm3, %v3086_v16 }
0x16e7   :  { %v3054_v41 = vpop.trf.xlu0 }
0x16e8   :  { %3102 = vst.msk [vmem:[%s5189_s11 + $0x28] sm:$0xff] %vm874_vm3, %v3054_v41 }
0x16e9   :  { %v3087_v62 = vpop.trf.xlu1 }
0x16ea   :  { %3119 = vst.msk [vmem:[%s5189_s11 + $0xb0] sm:$0xff] %vm874_vm3, %v3087_v62 }
0x16eb   :  { %v3055_v51 = vpop.trf.xlu0 }
0x16ec   :  { %3103 = vst.msk [vmem:[%s5189_s11 + $0x30] sm:$0xff] %vm874_vm3, %v3055_v51 }
0x16ed   :  { %v3088_v22 = vpop.trf.xlu1 }
0x16ee   :  { %3120 = vst.msk [vmem:[%s5189_s11 + $0xb8] sm:$0xff] %vm874_vm3, %v3088_v22 }
0x16ef   :  { %v3056_v14 = vpop.trf.xlu0 }
0x16f0   :  { %3104 = vst.msk [vmem:[%s5189_s11 + $0x38] sm:$0xff] %vm874_vm3, %v3056_v14 }
0x16f1   :  { %v3089_v25 = vpop.trf.xlu1 }
0x16f2   :  { %3121 = vst.msk [vmem:[%s5189_s11 + $0xc0] sm:$0xff] %vm874_vm3, %v3089_v25 }
0x16f3   :  { %v3057_v40 = vpop.trf.xlu0 }
0x16f4   :  { %3105 = vst.msk [vmem:[%s5189_s11 + $0x40] sm:$0xff] %vm874_vm3, %v3057_v40 }
0x16f5   :  { %v3090_v57 = vpop.trf.xlu1 }
0x16f6   :  { %3122 = vst.msk [vmem:[%s5189_s11 + $0xc8] sm:$0xff] %vm874_vm3, %v3090_v57 }
0x16f7   :  { %v3058_v32 = vpop.trf.xlu0 }
0x16f8   :  { %3106 = vst.msk [vmem:[%s5189_s11 + $0x48] sm:$0xff] %vm874_vm3, %v3058_v32 }
0x16f9   :  { %v3091_v0 = vpop.trf.xlu1 }
0x16fa   :  { %3123 = vst.msk [vmem:[%s5189_s11 + $0xd0] sm:$0xff] %vm874_vm3, %v3091_v0 }
0x16fb   :  { %v3059_v33 = vpop.trf.xlu0 }
0x16fc   :  { %3107 = vst.msk [vmem:[%s5189_s11 + $0x50] sm:$0xff] %vm874_vm3, %v3059_v33 }
0x16fd   :  { %v3092_v44 = vpop.trf.xlu1 }
0x16fe   :  { %3124 = vst.msk [vmem:[%s5189_s11 + $0xd8] sm:$0xff] %vm874_vm3, %v3092_v44 }
0x16ff   :  { %v3060_v2 = vpop.trf.xlu0 }
0x1700   :  { %3108 = vst.msk [vmem:[%s5189_s11 + $0x58] sm:$0xff] %vm874_vm3, %v3060_v2 }
0x1701   :  { %v3093_v26 = vpop.trf.xlu1 }
0x1702   :  { %3125 = vst.msk [vmem:[%s5189_s11 + $0xe0] sm:$0xff] %vm874_vm3, %v3093_v26 }
0x1703   :  { %v3061_v52 = vpop.trf.xlu0 }
0x1704   :  { %3109 = vst.msk [vmem:[%s5189_s11 + $0x60] sm:$0xff] %vm874_vm3, %v3061_v52 }
0x1705   :  { %v3094_v21 = vpop.trf.xlu1 }
0x1706   :  { %3126 = vst.msk [vmem:[%s5189_s11 + $0xe8] sm:$0xff] %vm874_vm3, %v3094_v21 }
0x1707   :  { %v3062_v31 = vpop.trf.xlu0 }
0x1708   :  { %3110 = vst.msk [vmem:[%s5189_s11 + $0x68] sm:$0xff] %vm874_vm3, %v3062_v31 }
0x1709   :  { %v3095_v43 = vpop.trf.xlu1 }
0x170a   :  { %3127 = vst.msk [vmem:[%s5189_s11 + $0xf0] sm:$0xff] %vm874_vm3, %v3095_v43 }
0x170b   :  { %v3063_v6 = vpop.trf.xlu0 }
0x170c   :  { %3111 = vst.msk [vmem:[%s5189_s11 + $0x70] sm:$0xff] %vm874_vm3, %v3063_v6 }
0x170d   :  { %v3096_v27 = vpop.trf.xlu1 }
0x170e   :  { %3128 = vst.msk [vmem:[%s5189_s11 + $0xf8] sm:$0xff] %vm874_vm3, %v3096_v27 }
0x170f   :  { %v3064_v39 = vpop.trf.xlu0 }
0x1710   :  { %3112 = vst.msk [vmem:[%s5189_s11 + $0x78] sm:$0xff] %vm874_vm3, %v3064_v39 }
0x1711   :  { %3842 = dma.done.wait [#allocation4], 16  }
0x1712   :  { %3843 = vsyncadd [#allocation4], 4294967280 }
0x1713   :  { %3844 = dma.done.wait [#allocation13], 16  }
0x1714   :  { %3845 = vsyncadd [#allocation13], 4294967280 }
0x1715   :  { %3155 = sfence }
0x1716   :  { %3156 = vsyncpa [#allocation3], 1 }
0x1717   :  { %3157 = vsyncpa [#allocation6], 1 }
0x1718   :  { %3158 = vsyncpa [#allocation9], 1 }
0x1719   :  { %3159 = vsyncpa [#allocation4], 1 }
0x171a   :  { %3160 = vsyncpa [#allocation13], 1 }

</bundles_post_ra>
